<compile_context>
chip_gen: v7x
topology: tpu7x:2x2x1
jax: 0.10.0
libtpu: 0.0.40
codegen_flags: <defaults>
</compile_context>

<pallas_src>
import math
import functools

import jax
import jax.numpy as jnp
from jax import lax
from jax.experimental import pallas as pl
from jax.experimental.pallas import tpu as pltpu


# ------------------------------------------------------------------ #
# In-kernel conv stack (shared by encoder / decoder kernels)
# ------------------------------------------------------------------ #
def _conv_stack(h, refs, cfgs):
    """Apply a stack of causal Conv1d / ConvTranspose1d layers to h of shape (C, L).

    refs : flat tuple of per-layer refs: w, b [, samp]
      w    : (Cout, K*Cin) bf16, flat index [co, k*Cin + ci]
      b    : (Cout, 1) f32
      samp : (Lin, Lout) bf16 0/1 lane sub-/up-sampling matrix (stride > 1 only)
    cfgs : tuple of (K, stride, transposed, elu, Lin, Lout, Cin, Cout, has_samp)
    """
    ri = 0
    n_layers = len(cfgs)
    for li, (K, stride, transposed, elu, lin, lout, cin, cout, has_samp) in enumerate(cfgs):
        w_ref = refs[ri]
        b_ref = refs[ri + 1]
        ri += 2
        samp_ref = None
        if has_samp:
            samp_ref = refs[ri]
            ri += 1

        hb = h.astype(jnp.bfloat16)

        if transposed:
            # 1) zero-interleave upsample (Cin, Lin) -> (Cin, Lout = Lin*stride)
            #    via precomputed 0/1 matrix (exact selection of bf16 values).
            if stride > 1:
                x_up = lax.dot_general(
                    hb, samp_ref[...],
                    dimension_numbers=(((1,), (0,)), ((), ())),
                    preferred_element_type=jnp.float32).astype(jnp.bfloat16)
            else:
                x_up = hb
            # 2) out[co, j] = sum_{k,ci} w[ci,co,k] * x_up[ci, j-k]
            #    build K left-shifted copies stacked on the channel axis.
            xp = jnp.concatenate(
                [jnp.zeros((cin, K - 1), jnp.bfloat16), x_up], axis=1)
            xs = jnp.concatenate(
                [xp[:, K - 1 - k:K - 1 - k + lout] for k in range(K)], axis=0)
            acc = lax.dot_general(
                w_ref[...], xs,
                dimension_numbers=(((1,), (0,)), ((), ())),
                preferred_element_type=jnp.float32)          # (Cout, Lout)
        else:
            pad = K - stride              # causal left pad
            rpad = K - 1 - pad            # = stride - 1 (unused taps are dropped)
            parts = []
            if pad > 0:
                parts.append(jnp.zeros((cin, pad), jnp.bfloat16))
            parts.append(hb)
            if rpad > 0:
                parts.append(jnp.zeros((cin, rpad), jnp.bfloat16))
            xp = jnp.concatenate(parts, axis=1) if len(parts) > 1 else hb
            # K shifted copies stacked on the channel axis -> (K*Cin, Lin)
            xs = jnp.concatenate([xp[:, k:k + lin] for k in range(K)], axis=0)
            if stride > 1:
                # lane subsample before the conv matmul (exact on bf16 inputs)
                xs = lax.dot_general(
                    xs, samp_ref[...],
                    dimension_numbers=(((1,), (0,)), ((), ())),
                    preferred_element_type=jnp.float32).astype(jnp.bfloat16)
            acc = lax.dot_general(
                w_ref[...], xs,
                dimension_numbers=(((1,), (0,)), ((), ())),
                preferred_element_type=jnp.float32)          # (Cout, Lout)

        h = acc + b_ref[...]
        if elu:
            # ELU(alpha=1); clamp exp arg so the unselected branch stays finite.
            h = jnp.where(h > 0.0, h, jnp.exp(jnp.minimum(h, 0.0)) - 1.0)
        if li != n_layers - 1:
            h = h.astype(jnp.bfloat16)    # keep activations bf16 between layers
    return h


# ------------------------------------------------------------------ #
# Fused kernels
# ------------------------------------------------------------------ #
def _encoder_rvq_kernel(x_ref, *refs, cfgs, n_q, bins):
    """SEANet encoder (conv stack) + residual VQ encode, one batch item."""
    codes_ref = refs[-1]
    cbsq_ref = refs[-2]
    cb_ref = refs[-3]
    layer_refs = refs[:-3]

    h = x_ref[0]                                             # (Cin_pad, L) f32
    emb = _conv_stack(h, layer_refs, cfgs)                   # (D, T) f32

    res = emb
    t = res.shape[1]
    iota_b = lax.broadcasted_iota(jnp.int32, (bins, t), 0)
    code_rows = []
    for q in range(n_q):
        cb = cb_ref[q]                                       # (bins, D)
        scores = lax.dot_general(                            # (bins, T) = cb . res
            cb, res, dimension_numbers=(((1,), (0,)), ((), ())),
            preferred_element_type=jnp.float32)
        dist = cbsq_ref[q] - 2.0 * scores                    # argmin == ||x-e||^2 argmin
        min_d = jnp.min(dist, axis=0, keepdims=True)         # (1, T)
        idx = jnp.min(jnp.where(dist <= min_d, iota_b, bins - 1),
                      axis=0, keepdims=True)                 # first match, (1, T) int32
        code_rows.append(idx)
        onehot = (iota_b == idx).astype(jnp.float32)         # (bins, T)
        quant = lax.dot_general(                             # (D, T) = cb^T . onehot
            cb, onehot, dimension_numbers=(((0,), (0,)), ((), ())),
            preferred_element_type=jnp.float32)
        res = res - quant
    codes_ref[0] = jnp.concatenate(code_rows, axis=0)        # (n_q, T)


def _rvq_decoder_kernel(codes_ref, cb_ref, *refs, cfgs, n_q, bins):
    """Residual VQ decode + SEANet decoder (conv stack), one batch item."""
    out_ref = refs[-1]
    layer_refs = refs[:-1]

    codes = codes_ref[0]                                     # (n_q, T) int32
    d = cb_ref.shape[2]
    t = codes.shape[1]
    iota_b = lax.broadcasted_iota(jnp.int32, (bins, t), 0)
    acc = jnp.zeros((d, t), jnp.float32)
    for q in range(n_q):
        idx = codes[q:q + 1, :]                              # (1, T)
        onehot = (iota_b == idx).astype(jnp.float32)         # (bins, T)
        acc = acc + lax.dot_general(
            cb_ref[q], onehot, dimension_numbers=(((0,), (0,)), ((), ())),
            preferred_element_type=jnp.float32)

    y = _conv_stack(acc, layer_refs, cfgs)                   # (ch, Lout) f32
    out_ref[0] = y


# ------------------------------------------------------------------ #
# EncodecModel (small synthetic SEANet encoder/decoder + residual VQ)
# ------------------------------------------------------------------ #
class EncodecModelPallas:
    def __init__(self, key, *, channels=1, dim=32, bins=64, n_q=2,
                 sample_rate=24000, normalize=False, segment=None, overlap=0.01):
        self.channels = channels
        self.dim = dim
        self.bins = bins
        self.n_q = n_q
        self.sample_rate = sample_rate
        self.normalize = normalize
        self.segment = segment
        self.overlap = overlap
        self.bandwidth = 0.0
        self.ratios = [2, 2]                       # encoder downsampling ratios
        self.hop_length = math.prod(self.ratios)
        self.frame_rate = math.ceil(sample_rate / self.hop_length)
        self.bits_per_codebook = int(math.log2(bins))
        assert 2 ** self.bits_per_codebook == bins

        self.cin_pad0 = 8                          # pad tiny audio-channel dim to one sublane tile
        keys = jax.random.split(key, 16)

        def make_conv(k, cout, cin, ksz, stride, elu, cin_pad=None):
            kw, kb = jax.random.split(k)
            w = jax.random.normal(kw, (cout, cin, ksz), jnp.float32) / math.sqrt(cin * ksz)
            b = 0.01 * jax.random.normal(kb, (cout,), jnp.float32)
            cp = cin if cin_pad is None else cin_pad
            if cp > cin:
                w = jnp.pad(w, ((0, 0), (0, cp - cin), (0, 0)))
            # flat layout: [co, k*Cin + ci] = w[co, ci, k]  (lane dim = K*Cin)
            wflat = jnp.transpose(w, (0, 2, 1)).reshape(cout, ksz * cp)
            return dict(w=wflat.astype(jnp.bfloat16), b=b.reshape(cout, 1),
                        K=ksz, stride=stride, transposed=False, elu=elu,
                        cin=cp, cout=cout)

        def make_convtr(k, cin, cout, ksz, stride, elu):
            kw, kb = jax.random.split(k)
            w = jax.random.normal(kw, (cin, cout, ksz), jnp.float32) / math.sqrt(cin * ksz)
            b = 0.01 * jax.random.normal(kb, (cout,), jnp.float32)
            # flat layout: [co, k*Cin + ci] = w[ci, co, k]
            wflat = jnp.transpose(w, (1, 2, 0)).reshape(cout, ksz * cin)
            return dict(w=wflat.astype(jnp.bfloat16), b=b.reshape(cout, 1),
                        K=ksz, stride=stride, transposed=True, elu=elu,
                        cin=cin, cout=cout)

        # Encoder: ch -> 8 -> 16 -> 32 -> dim   (downsample x4)
        self.enc_layers = [
            make_conv(keys[0], 8, channels, 7, 1, True, cin_pad=self.cin_pad0),
            make_conv(keys[1], 16, 8, 4, 2, True),
            make_conv(keys[2], 32, 16, 4, 2, True),
            make_conv(keys[3], dim, 32, 3, 1, False),
        ]
        # Decoder: dim -> 32 -> 16 -> 8 -> ch   (upsample x4)
        self.dec_layers = [
            make_conv(keys[4], 32, dim, 3, 1, True),
            make_convtr(keys[5], 32, 16, 4, 2, True),
            make_convtr(keys[6], 16, 8, 4, 2, True),
            make_conv(keys[7], channels, 8, 7, 1, False),
        ]
        # Residual VQ codebooks (+ precomputed squared norms)
        cbs = [jax.random.normal(keys[8 + q], (bins, dim), jnp.float32) for q in range(n_q)]
        self._cb = jnp.stack(cbs, axis=0)                                  # (n_q, bins, D)
        self._cbsq = jnp.sum(self._cb ** 2, axis=2, keepdims=True)         # (n_q, bins, 1)

        self._jit_forward = jax.jit(self._forward_impl)

    # ---- static planning: per-layer shapes + 0/1 sampling matrices -------
    @staticmethod
    def _plan(layers, lin0):
        cfgs, samps = [], []
        lin = lin0
        for lay in layers:
            K, s, tr = lay["K"], lay["stride"], lay["transposed"]
            cin, cout = lay["cin"], lay["cout"]
            samp = None
            if tr:
                lout = lin * s                     # causal: trim K-s from the right
                if s > 1:                          # zero-interleave upsample matrix
                    samp = (jnp.arange(lin)[:, None] * s
                            == jnp.arange(lout)[None, :]).astype(jnp.bfloat16)
            else:
                pad = K - s
                lout = (lin + pad - K) // s + 1
                if s > 1:                          # lane subsample matrix
                    samp = (jnp.arange(lin)[:, None]
                            == jnp.arange(lout)[None, :] * s).astype(jnp.bfloat16)
            cfgs.append((K, s, tr, lay["elu"], lin, lout, cin, cout, samp is not None))
            samps.append(samp)
            lin = lout
        return tuple(cfgs), samps, lin

    # ---- fused pallas calls ----------------------------------------------
    def _encode_pallas(self, x):
        # x: (B, channels, L) f32  ->  codes (B, n_q, T) int32
        B, ch, L = x.shape
        x_pad = x
        if ch < self.cin_pad0:
            x_pad = jnp.pad(x, ((0, 0), (0, self.cin_pad0 - ch), (0, 0)))
        cfgs, samps, t_out = self._plan(self.enc_layers, L)

        full2 = lambda b: (0, 0)
        full3 = lambda b: (0, 0, 0)
        args = [x_pad]
        in_specs = [pl.BlockSpec((1, self.cin_pad0, L), lambda b: (b, 0, 0))]
        flops, trans = 0, 0
        bytes_acc = x_pad.size * 4
        for lay, cfg, samp in zip(self.enc_layers, cfgs, samps):
            K, s, tr, elu, lin, lout, cin, cout, has_samp = cfg
            args += [lay["w"], lay["b"]]
            in_specs += [pl.BlockSpec(lay["w"].shape, full2),
                         pl.BlockSpec(lay["b"].shape, full2)]
            bytes_acc += lay["w"].size * 2 + lay["b"].size * 4
            if has_samp:
                args.append(samp)
                in_specs.append(pl.BlockSpec(samp.shape, full2))
                bytes_acc += samp.size * 2
                flops += 2 * K * cin * lin * lout            # lane-subsample matmul
            flops += 2 * cout * K * cin * lout               # conv matmul
            if elu:
                trans += cout * lout
        args += [self._cb, self._cbsq]
        in_specs += [pl.BlockSpec(self._cb.shape, full3),
                     pl.BlockSpec(self._cbsq.shape, full3)]
        bytes_acc += self._cb.size * 4 + self._cbsq.size * 4
        flops += self.n_q * 4 * self.bins * self.dim * t_out
        flops *= B
        trans *= B
        bytes_acc += B * self.n_q * t_out * 4

        kern = functools.partial(_encoder_rvq_kernel, cfgs=cfgs,
                                 n_q=self.n_q, bins=self.bins)
        return pl.pallas_call(
            kern,
            grid=(B,),
            in_specs=in_specs,
            out_specs=pl.BlockSpec((1, self.n_q, t_out), lambda b: (b, 0, 0)),
            out_shape=jax.ShapeDtypeStruct((B, self.n_q, t_out), jnp.int32),
            compiler_params=pltpu.CompilerParams(
                dimension_semantics=("parallel",),
                vmem_limit_bytes=32 * 1024 * 1024),
            cost_estimate=pl.CostEstimate(flops=int(flops),
                                          transcendentals=int(trans),
                                          bytes_accessed=int(bytes_acc)),
        )(*args)

    def _decode_pallas(self, codes):
        # codes: (B, n_q, T) int32  ->  waveform (B, channels, Lout) f32
        B, _, t = codes.shape
        cfgs, samps, l_out = self._plan(self.dec_layers, t)

        full2 = lambda b: (0, 0)
        full3 = lambda b: (0, 0, 0)
        args = [codes, self._cb]
        in_specs = [pl.BlockSpec((1, self.n_q, t), lambda b: (b, 0, 0)),
                    pl.BlockSpec(self._cb.shape, full3)]
        flops = self.n_q * 2 * self.dim * self.bins * t
        trans = 0
        bytes_acc = codes.size * 4 + self._cb.size * 4
        for lay, cfg, samp in zip(self.dec_layers, cfgs, samps):
            K, s, tr, elu, lin, lout, cin, cout, has_samp = cfg
            args += [lay["w"], lay["b"]]
            in_specs += [pl.BlockSpec(lay["w"].shape, full2),
                         pl.BlockSpec(lay["b"].shape, full2)]
            bytes_acc += lay["w"].size * 2 + lay["b"].size * 4
            if has_samp:
                args.append(samp)
                in_specs.append(pl.BlockSpec(samp.shape, full2))
                bytes_acc += samp.size * 2
                flops += 2 * cin * lin * lout                # zero-interleave upsample
            flops += 2 * cout * K * cin * lout               # conv matmul
            if elu:
                trans += cout * lout
        flops *= B
        trans *= B
        bytes_acc += B * self.channels * l_out * 4

        kern = functools.partial(_rvq_decoder_kernel, cfgs=cfgs,
                                 n_q=self.n_q, bins=self.bins)
        return pl.pallas_call(
            kern,
            grid=(B,),
            in_specs=in_specs,
            out_specs=pl.BlockSpec((1, self.channels, l_out), lambda b: (b, 0, 0)),
            out_shape=jax.ShapeDtypeStruct((B, self.channels, l_out), jnp.float32),
            compiler_params=pltpu.CompilerParams(
                dimension_semantics=("parallel",),
                vmem_limit_bytes=32 * 1024 * 1024),
            cost_estimate=pl.CostEstimate(flops=int(flops),
                                          transcendentals=int(trans),
                                          bytes_accessed=int(bytes_acc)),
        )(*args)

    # ---- EncodecModel API --------------------------------------------------
    def _encode_frame(self, x):
        scale = None
        if self.normalize:
            mono = jnp.mean(x, axis=1, keepdims=True)
            volume = jnp.sqrt(jnp.mean(mono ** 2, axis=2, keepdims=True))
            scale = 1e-8 + volume
            x = x / scale
            scale = scale.reshape(-1, 1)
        codes = self._encode_pallas(x)               # (B, K, T)
        return codes, scale

    def encode(self, x):
        # segment=None -> a single frame spanning the whole input
        return [self._encode_frame(x)]

    def _decode_frame(self, frame):
        codes, scale = frame
        out = self._decode_pallas(codes)             # (B, ch, L)
        if scale is not None:
            out = out * scale.reshape(-1, 1, 1)
        return out

    def decode(self, frames):
        assert len(frames) == 1                      # segment=None path
        return self._decode_frame(frames[0])

    def _forward_impl(self, x):
        frames = self.encode(x)
        return self.decode(frames)[:, :, :x.shape[-1]]

    def forward(self, x):
        return self._jit_forward(x)


# ------------------------------------------------------------------ #
if __name__ == "__main__":
    key = jax.random.PRNGKey(0)
    k_param, k_data = jax.random.split(key)

    model = EncodecModelPallas(k_param, channels=1, dim=32, bins=64, n_q=2,
                               sample_rate=24000, normalize=False, segment=None)

    B, C, L = 2, 1, 128
    x = jax.random.normal(k_data, (B, C, L), jnp.float32)

    y = model.forward(x)
    y = jax.block_until_ready(y)

    assert y.shape == (B, C, L), y.shape
    assert bool(jnp.all(jnp.isfinite(y)))
    print("KERNEL_OK")
</pallas_src>

<mosaic_0001>
module attributes {stable_mosaic.version = 11 : i64} {
  func.func @_encoder_rvq_kernel(%arg0: i32, %arg1: memref<1x8x128xf32, #tpu.memory_space<vmem>>, %arg2: memref<8x56xbf16, #tpu.memory_space<vmem>>, %arg3: memref<8x1xf32, #tpu.memory_space<vmem>>, %arg4: memref<16x32xbf16, #tpu.memory_space<vmem>>, %arg5: memref<16x1xf32, #tpu.memory_space<vmem>>, %arg6: memref<128x64xbf16, #tpu.memory_space<vmem>>, %arg7: memref<32x64xbf16, #tpu.memory_space<vmem>>, %arg8: memref<32x1xf32, #tpu.memory_space<vmem>>, %arg9: memref<64x32xbf16, #tpu.memory_space<vmem>>, %arg10: memref<32x96xbf16, #tpu.memory_space<vmem>>, %arg11: memref<32x1xf32, #tpu.memory_space<vmem>>, %arg12: memref<2x64x32xf32, #tpu.memory_space<vmem>>, %arg13: memref<2x64x1xf32, #tpu.memory_space<vmem>>, %arg14: memref<1x2x32xi32, #tpu.memory_space<vmem>>) attributes {dimension_semantics = [#tpu.dimension_semantics<parallel>], iteration_bounds = array<i64: 2>, scalar_prefetch = 0 : i64, scratch_operands = 0 : i64, tpu.core_type = #tpu.core_type<tc>, window_params = [{transform_indices = @transform_0, window_bounds = array<i64: 1, 8, 128>}, {pipeline_mode = #tpu.pipeline_mode<synchronous>, transform_indices = @transform_1, window_bounds = array<i64: 8, 56>}, {pipeline_mode = #tpu.pipeline_mode<synchronous>, transform_indices = @transform_2, window_bounds = array<i64: 8, 1>}, {pipeline_mode = #tpu.pipeline_mode<synchronous>, transform_indices = @transform_3, window_bounds = array<i64: 16, 32>}, {pipeline_mode = #tpu.pipeline_mode<synchronous>, transform_indices = @transform_4, window_bounds = array<i64: 16, 1>}, {pipeline_mode = #tpu.pipeline_mode<synchronous>, transform_indices = @transform_5, window_bounds = array<i64: 128, 64>}, {pipeline_mode = #tpu.pipeline_mode<synchronous>, transform_indices = @transform_6, window_bounds = array<i64: 32, 64>}, {pipeline_mode = #tpu.pipeline_mode<synchronous>, transform_indices = @transform_7, window_bounds = array<i64: 32, 1>}, {pipeline_mode = #tpu.pipeline_mode<synchronous>, transform_indices = @transform_8, window_bounds = array<i64: 64, 32>}, {pipeline_mode = #tpu.pipeline_mode<synchronous>, transform_indices = @transform_9, window_bounds = array<i64: 32, 96>}, {pipeline_mode = #tpu.pipeline_mode<synchronous>, transform_indices = @transform_10, window_bounds = array<i64: 32, 1>}, {pipeline_mode = #tpu.pipeline_mode<synchronous>, transform_indices = @transform_11, window_bounds = array<i64: 2, 64, 32>}, {pipeline_mode = #tpu.pipeline_mode<synchronous>, transform_indices = @transform_12, window_bounds = array<i64: 2, 64, 1>}, {transform_indices = @transform_13, window_bounds = array<i64: 1, 2, 32>}]} {
    %c0 = arith.constant 0 : index
    %c0_0 = arith.constant 0 : index
    %c0_1 = arith.constant 0 : index
    %0 = vector.load %arg1[%c0, %c0_0, %c0_1] : memref<1x8x128xf32, #tpu.memory_space<vmem>>, vector<1x8x128xf32>
    %1 = vector.shape_cast %0 : vector<1x8x128xf32> to vector<8x128xf32>
    %2 = arith.truncf %1 : vector<8x128xf32> to vector<8x128xbf16>
    %cst = arith.constant 0.000000e+00 : bf16
    %3 = vector.broadcast %cst : bf16 to vector<8x6xbf16>
    %4 = tpu.concatenate %3, %2 in 1 : vector<8x6xbf16>, vector<8x128xbf16> -> vector<8x134xbf16>
    %5 = vector.extract_strided_slice %4 {offsets = [0, 0], sizes = [8, 128], strides = [1, 1]} : vector<8x134xbf16> to vector<8x128xbf16>
    %6 = vector.extract_strided_slice %4 {offsets = [0, 1], sizes = [8, 128], strides = [1, 1]} : vector<8x134xbf16> to vector<8x128xbf16>
    %7 = vector.extract_strided_slice %4 {offsets = [0, 2], sizes = [8, 128], strides = [1, 1]} : vector<8x134xbf16> to vector<8x128xbf16>
    %8 = vector.extract_strided_slice %4 {offsets = [0, 3], sizes = [8, 128], strides = [1, 1]} : vector<8x134xbf16> to vector<8x128xbf16>
    %9 = vector.extract_strided_slice %4 {offsets = [0, 4], sizes = [8, 128], strides = [1, 1]} : vector<8x134xbf16> to vector<8x128xbf16>
    %10 = vector.extract_strided_slice %4 {offsets = [0, 5], sizes = [8, 128], strides = [1, 1]} : vector<8x134xbf16> to vector<8x128xbf16>
    %11 = vector.extract_strided_slice %4 {offsets = [0, 6], sizes = [8, 128], strides = [1, 1]} : vector<8x134xbf16> to vector<8x128xbf16>
    %12 = tpu.concatenate %5, %6, %7, %8, %9, %10, %11 in 0 : vector<8x128xbf16>, vector<8x128xbf16>, vector<8x128xbf16>, vector<8x128xbf16>, vector<8x128xbf16>, vector<8x128xbf16>, vector<8x128xbf16> -> vector<56x128xbf16>
    %c0_2 = arith.constant 0 : index
    %c0_3 = arith.constant 0 : index
    %13 = vector.load %arg2[%c0_2, %c0_3] : memref<8x56xbf16, #tpu.memory_space<vmem>>, vector<8x56xbf16>
    %cst_4 = arith.constant dense<0.000000e+00> : vector<8x128xf32>
    %14 = tpu.matmul %13, %12, %cst_4 {dimension_numbers = #tpu.dot_dimension_numbers<[1], [0], [0], [1], [0, 0, 1, 1], [], []>} : vector<8x56xbf16>, vector<56x128xbf16>, vector<8x128xf32> -> vector<8x128xf32>
    %c0_5 = arith.constant 0 : index
    %c0_6 = arith.constant 0 : index
    %15 = vector.load %arg3[%c0_5, %c0_6] : memref<8x1xf32, #tpu.memory_space<vmem>>, vector<8x1xf32>
    %16 = vector.broadcast %15 : vector<8x1xf32> to vector<8x128xf32>
    %17 = arith.addf %14, %16 : vector<8x128xf32>
    %cst_7 = arith.constant 0.000000e+00 : f32
    %18 = vector.broadcast %cst_7 : f32 to vector<8x128xf32>
    %19 = arith.cmpf ogt, %17, %18 : vector<8x128xf32>
    %cst_8 = arith.constant 0.000000e+00 : f32
    %20 = vector.broadcast %cst_8 : f32 to vector<8x128xf32>
    %21 = arith.minimumf %17, %20 : vector<8x128xf32>
    %22 = math.exp %21 : vector<8x128xf32>
    %cst_9 = arith.constant 1.000000e+00 : f32
    %23 = vector.broadcast %cst_9 : f32 to vector<8x128xf32>
    %24 = arith.subf %22, %23 : vector<8x128xf32>
    %25 = arith.select %19, %17, %24 : vector<8x128xi1>, vector<8x128xf32>
    %26 = arith.truncf %25 : vector<8x128xf32> to vector<8x128xbf16>
    %cst_10 = arith.constant 0.000000e+00 : bf16
    %27 = vector.broadcast %cst_10 : bf16 to vector<8x2xbf16>
    %cst_11 = arith.constant 0.000000e+00 : bf16
    %28 = vector.broadcast %cst_11 : bf16 to vector<8x1xbf16>
    %29 = tpu.concatenate %27, %26, %28 in 1 : vector<8x2xbf16>, vector<8x128xbf16>, vector<8x1xbf16> -> vector<8x131xbf16>
    %30 = vector.extract_strided_slice %29 {offsets = [0, 0], sizes = [8, 128], strides = [1, 1]} : vector<8x131xbf16> to vector<8x128xbf16>
    %31 = vector.extract_strided_slice %29 {offsets = [0, 1], sizes = [8, 128], strides = [1, 1]} : vector<8x131xbf16> to vector<8x128xbf16>
    %32 = vector.extract_strided_slice %29 {offsets = [0, 2], sizes = [8, 128], strides = [1, 1]} : vector<8x131xbf16> to vector<8x128xbf16>
    %33 = vector.extract_strided_slice %29 {offsets = [0, 3], sizes = [8, 128], strides = [1, 1]} : vector<8x131xbf16> to vector<8x128xbf16>
    %34 = tpu.concatenate %30, %31, %32, %33 in 0 : vector<8x128xbf16>, vector<8x128xbf16>, vector<8x128xbf16>, vector<8x128xbf16> -> vector<32x128xbf16>
    %c0_12 = arith.constant 0 : index
    %c0_13 = arith.constant 0 : index
    %35 = vector.load %arg6[%c0_12, %c0_13] : memref<128x64xbf16, #tpu.memory_space<vmem>>, vector<128x64xbf16>
    %cst_14 = arith.constant dense<0.000000e+00> : vector<32x64xf32>
    %36 = tpu.matmul %34, %35, %cst_14 {dimension_numbers = #tpu.dot_dimension_numbers<[1], [0], [0], [1], [0, 0, 1, 1], [], []>} : vector<32x128xbf16>, vector<128x64xbf16>, vector<32x64xf32> -> vector<32x64xf32>
    %37 = arith.truncf %36 : vector<32x64xf32> to vector<32x64xbf16>
    %c0_15 = arith.constant 0 : index
    %c0_16 = arith.constant 0 : index
    %38 = vector.load %arg4[%c0_15, %c0_16] : memref<16x32xbf16, #tpu.memory_space<vmem>>, vector<16x32xbf16>
    %cst_17 = arith.constant dense<0.000000e+00> : vector<16x64xf32>
    %39 = tpu.matmul %38, %37, %cst_17 {dimension_numbers = #tpu.dot_dimension_numbers<[1], [0], [0], [1], [0, 0, 1, 1], [], []>} : vector<16x32xbf16>, vector<32x64xbf16>, vector<16x64xf32> -> vector<16x64xf32>
    %c0_18 = arith.constant 0 : index
    %c0_19 = arith.constant 0 : index
    %40 = vector.load %arg5[%c0_18, %c0_19] : memref<16x1xf32, #tpu.memory_space<vmem>>, vector<16x1xf32>
    %41 = vector.broadcast %40 : vector<16x1xf32> to vector<16x64xf32>
    %42 = arith.addf %39, %41 : vector<16x64xf32>
    %cst_20 = arith.constant 0.000000e+00 : f32
    %43 = vector.broadcast %cst_20 : f32 to vector<16x64xf32>
    %44 = arith.cmpf ogt, %42, %43 : vector<16x64xf32>
    %cst_21 = arith.constant 0.000000e+00 : f32
    %45 = vector.broadcast %cst_21 : f32 to vector<16x64xf32>
    %46 = arith.minimumf %42, %45 : vector<16x64xf32>
    %47 = math.exp %46 : vector<16x64xf32>
    %cst_22 = arith.constant 1.000000e+00 : f32
    %48 = vector.broadcast %cst_22 : f32 to vector<16x64xf32>
    %49 = arith.subf %47, %48 : vector<16x64xf32>
    %50 = arith.select %44, %42, %49 : vector<16x64xi1>, vector<16x64xf32>
    %51 = arith.truncf %50 : vector<16x64xf32> to vector<16x64xbf16>
    %cst_23 = arith.constant 0.000000e+00 : bf16
    %52 = vector.broadcast %cst_23 : bf16 to vector<16x2xbf16>
    %cst_24 = arith.constant 0.000000e+00 : bf16
    %53 = vector.broadcast %cst_24 : bf16 to vector<16x1xbf16>
    %54 = tpu.concatenate %52, %51, %53 in 1 : vector<16x2xbf16>, vector<16x64xbf16>, vector<16x1xbf16> -> vector<16x67xbf16>
    %55 = vector.extract_strided_slice %54 {offsets = [0, 0], sizes = [16, 64], strides = [1, 1]} : vector<16x67xbf16> to vector<16x64xbf16>
    %56 = vector.extract_strided_slice %54 {offsets = [0, 1], sizes = [16, 64], strides = [1, 1]} : vector<16x67xbf16> to vector<16x64xbf16>
    %57 = vector.extract_strided_slice %54 {offsets = [0, 2], sizes = [16, 64], strides = [1, 1]} : vector<16x67xbf16> to vector<16x64xbf16>
    %58 = vector.extract_strided_slice %54 {offsets = [0, 3], sizes = [16, 64], strides = [1, 1]} : vector<16x67xbf16> to vector<16x64xbf16>
    %59 = tpu.concatenate %55, %56, %57, %58 in 0 : vector<16x64xbf16>, vector<16x64xbf16>, vector<16x64xbf16>, vector<16x64xbf16> -> vector<64x64xbf16>
    %c0_25 = arith.constant 0 : index
    %c0_26 = arith.constant 0 : index
    %60 = vector.load %arg9[%c0_25, %c0_26] : memref<64x32xbf16, #tpu.memory_space<vmem>>, vector<64x32xbf16>
    %cst_27 = arith.constant dense<0.000000e+00> : vector<64x32xf32>
    %61 = tpu.matmul %59, %60, %cst_27 {dimension_numbers = #tpu.dot_dimension_numbers<[1], [0], [0], [1], [0, 0, 1, 1], [], []>} : vector<64x64xbf16>, vector<64x32xbf16>, vector<64x32xf32> -> vector<64x32xf32>
    %62 = arith.truncf %61 : vector<64x32xf32> to vector<64x32xbf16>
    %c0_28 = arith.constant 0 : index
    %c0_29 = arith.constant 0 : index
    %63 = vector.load %arg7[%c0_28, %c0_29] : memref<32x64xbf16, #tpu.memory_space<vmem>>, vector<32x64xbf16>
    %cst_30 = arith.constant dense<0.000000e+00> : vector<32x32xf32>
    %64 = tpu.matmul %63, %62, %cst_30 {dimension_numbers = #tpu.dot_dimension_numbers<[1], [0], [0], [1], [0, 0, 1, 1], [], []>} : vector<32x64xbf16>, vector<64x32xbf16>, vector<32x32xf32> -> vector<32x32xf32>
    %c0_31 = arith.constant 0 : index
    %c0_32 = arith.constant 0 : index
    %65 = vector.load %arg8[%c0_31, %c0_32] : memref<32x1xf32, #tpu.memory_space<vmem>>, vector<32x1xf32>
    %66 = vector.broadcast %65 : vector<32x1xf32> to vector<32x32xf32>
    %67 = arith.addf %64, %66 : vector<32x32xf32>
    %cst_33 = arith.constant 0.000000e+00 : f32
    %68 = vector.broadcast %cst_33 : f32 to vector<32x32xf32>
    %69 = arith.cmpf ogt, %67, %68 : vector<32x32xf32>
    %cst_34 = arith.constant 0.000000e+00 : f32
    %70 = vector.broadcast %cst_34 : f32 to vector<32x32xf32>
    %71 = arith.minimumf %67, %70 : vector<32x32xf32>
    %72 = math.exp %71 : vector<32x32xf32>
    %cst_35 = arith.constant 1.000000e+00 : f32
    %73 = vector.broadcast %cst_35 : f32 to vector<32x32xf32>
    %74 = arith.subf %72, %73 : vector<32x32xf32>
    %75 = arith.select %69, %67, %74 : vector<32x32xi1>, vector<32x32xf32>
    %76 = arith.truncf %75 : vector<32x32xf32> to vector<32x32xbf16>
    %cst_36 = arith.constant 0.000000e+00 : bf16
    %77 = vector.broadcast %cst_36 : bf16 to vector<32x2xbf16>
    %78 = tpu.concatenate %77, %76 in 1 : vector<32x2xbf16>, vector<32x32xbf16> -> vector<32x34xbf16>
    %79 = vector.extract_strided_slice %78 {offsets = [0, 0], sizes = [32, 32], strides = [1, 1]} : vector<32x34xbf16> to vector<32x32xbf16>
    %80 = vector.extract_strided_slice %78 {offsets = [0, 1], sizes = [32, 32], strides = [1, 1]} : vector<32x34xbf16> to vector<32x32xbf16>
    %81 = vector.extract_strided_slice %78 {offsets = [0, 2], sizes = [32, 32], strides = [1, 1]} : vector<32x34xbf16> to vector<32x32xbf16>
    %82 = tpu.concatenate %79, %80, %81 in 0 : vector<32x32xbf16>, vector<32x32xbf16>, vector<32x32xbf16> -> vector<96x32xbf16>
    %c0_37 = arith.constant 0 : index
    %c0_38 = arith.constant 0 : index
    %83 = vector.load %arg10[%c0_37, %c0_38] : memref<32x96xbf16, #tpu.memory_space<vmem>>, vector<32x96xbf16>
    %cst_39 = arith.constant dense<0.000000e+00> : vector<32x32xf32>
    %84 = tpu.matmul %83, %82, %cst_39 {dimension_numbers = #tpu.dot_dimension_numbers<[1], [0], [0], [1], [0, 0, 1, 1], [], []>} : vector<32x96xbf16>, vector<96x32xbf16>, vector<32x32xf32> -> vector<32x32xf32>
    %c0_40 = arith.constant 0 : index
    %c0_41 = arith.constant 0 : index
    %85 = vector.load %arg11[%c0_40, %c0_41] : memref<32x1xf32, #tpu.memory_space<vmem>>, vector<32x1xf32>
    %86 = vector.broadcast %85 : vector<32x1xf32> to vector<32x32xf32>
    %87 = arith.addf %84, %86 : vector<32x32xf32>
    %88 = tpu.iota {dimensions = array<i32: 0>} : vector<64x32xi32>
    %c0_42 = arith.constant 0 : index
    %c0_43 = arith.constant 0 : index
    %c0_44 = arith.constant 0 : index
    %89 = vector.load %arg12[%c0_42, %c0_43, %c0_44] : memref<2x64x32xf32, #tpu.memory_space<vmem>>, vector<1x64x32xf32>
    %90 = vector.shape_cast %89 : vector<1x64x32xf32> to vector<64x32xf32>
    %cst_45 = arith.constant dense<0.000000e+00> : vector<64x32xf32>
    %91 = tpu.matmul %90, %87, %cst_45 {dimension_numbers = #tpu.dot_dimension_numbers<[1], [0], [0], [1], [0, 0, 1, 1], [], []>} : vector<64x32xf32>, vector<32x32xf32>, vector<64x32xf32> -> vector<64x32xf32>
    %c0_46 = arith.constant 0 : index
    %c0_47 = arith.constant 0 : index
    %c0_48 = arith.constant 0 : index
    %92 = vector.load %arg13[%c0_46, %c0_47, %c0_48] : memref<2x64x1xf32, #tpu.memory_space<vmem>>, vector<1x64x1xf32>
    %93 = vector.shape_cast %92 : vector<1x64x1xf32> to vector<64x1xf32>
    %cst_49 = arith.constant 2.000000e+00 : f32
    %94 = vector.broadcast %cst_49 : f32 to vector<64x32xf32>
    %95 = arith.mulf %94, %91 : vector<64x32xf32>
    %96 = vector.broadcast %93 : vector<64x1xf32> to vector<64x32xf32>
    %97 = arith.subf %96, %95 : vector<64x32xf32>
    %cst_50 = arith.constant dense<0x7F800000> : vector<32xf32>
    %98 = vector.multi_reduction <minimumf>, %97, %cst_50 [0] : vector<64x32xf32> to vector<32xf32>
    %99 = vector.shape_cast %98 : vector<32xf32> to vector<1x32xf32>
    %100 = vector.broadcast %99 : vector<1x32xf32> to vector<64x32xf32>
    %101 = arith.cmpf ole, %97, %100 : vector<64x32xf32>
    %c63_i32 = arith.constant 63 : i32
    %102 = vector.broadcast %c63_i32 : i32 to vector<64x32xi32>
    %103 = arith.select %101, %88, %102 : vector<64x32xi1>, vector<64x32xi32>
    %cst_51 = arith.constant dense<2147483647> : vector<32xi32>
    %104 = vector.multi_reduction <minsi>, %103, %cst_51 [0] : vector<64x32xi32> to vector<32xi32>
    %105 = vector.shape_cast %104 : vector<32xi32> to vector<1x32xi32>
    %106 = vector.broadcast %105 : vector<1x32xi32> to vector<64x32xi32>
    %107 = arith.cmpi eq, %88, %106 : vector<64x32xi32>
    %108 = arith.extui %107 : vector<64x32xi1> to vector<64x32xi32>
    %109 = arith.sitofp %108 : vector<64x32xi32> to vector<64x32xf32>
    %cst_52 = arith.constant dense<0.000000e+00> : vector<32x32xf32>
    %110 = tpu.matmul %90, %109, %cst_52 {dimension_numbers = #tpu.dot_dimension_numbers<[0], [0], [1], [1], [0, 1, 1, 1], [], []>} : vector<64x32xf32>, vector<64x32xf32>, vector<32x32xf32> -> vector<32x32xf32>
    %111 = arith.subf %87, %110 : vector<32x32xf32>
    %c1 = arith.constant 1 : index
    %c0_53 = arith.constant 0 : index
    %c0_54 = arith.constant 0 : index
    %112 = vector.load %arg12[%c1, %c0_53, %c0_54] : memref<2x64x32xf32, #tpu.memory_space<vmem>>, vector<1x64x32xf32>
    %113 = vector.shape_cast %112 : vector<1x64x32xf32> to vector<64x32xf32>
    %cst_55 = arith.constant dense<0.000000e+00> : vector<64x32xf32>
    %114 = tpu.matmul %113, %111, %cst_55 {dimension_numbers = #tpu.dot_dimension_numbers<[1], [0], [0], [1], [0, 0, 1, 1], [], []>} : vector<64x32xf32>, vector<32x32xf32>, vector<64x32xf32> -> vector<64x32xf32>
    %c1_56 = arith.constant 1 : index
    %c0_57 = arith.constant 0 : index
    %c0_58 = arith.constant 0 : index
    %115 = vector.load %arg13[%c1_56, %c0_57, %c0_58] : memref<2x64x1xf32, #tpu.memory_space<vmem>>, vector<1x64x1xf32>
    %116 = vector.shape_cast %115 : vector<1x64x1xf32> to vector<64x1xf32>
    %cst_59 = arith.constant 2.000000e+00 : f32
    %117 = vector.broadcast %cst_59 : f32 to vector<64x32xf32>
    %118 = arith.mulf %117, %114 : vector<64x32xf32>
    %119 = vector.broadcast %116 : vector<64x1xf32> to vector<64x32xf32>
    %120 = arith.subf %119, %118 : vector<64x32xf32>
    %cst_60 = arith.constant dense<0x7F800000> : vector<32xf32>
    %121 = vector.multi_reduction <minimumf>, %120, %cst_60 [0] : vector<64x32xf32> to vector<32xf32>
    %122 = vector.shape_cast %121 : vector<32xf32> to vector<1x32xf32>
    %123 = vector.broadcast %122 : vector<1x32xf32> to vector<64x32xf32>
    %124 = arith.cmpf ole, %120, %123 : vector<64x32xf32>
    %c63_i32_61 = arith.constant 63 : i32
    %125 = vector.broadcast %c63_i32_61 : i32 to vector<64x32xi32>
    %126 = arith.select %124, %88, %125 : vector<64x32xi1>, vector<64x32xi32>
    %cst_62 = arith.constant dense<2147483647> : vector<32xi32>
    %127 = vector.multi_reduction <minsi>, %126, %cst_62 [0] : vector<64x32xi32> to vector<32xi32>
    %128 = vector.shape_cast %127 : vector<32xi32> to vector<1x32xi32>
    %129 = tpu.concatenate %105, %128 in 0 : vector<1x32xi32>, vector<1x32xi32> -> vector<2x32xi32>
    %c0_63 = arith.constant 0 : index
    %c0_64 = arith.constant 0 : index
    %c0_65 = arith.constant 0 : index
    %130 = vector.load %arg14[%c0_63, %c0_64, %c0_65] : memref<1x2x32xi32, #tpu.memory_space<vmem>>, vector<1x2x32xi32>
    %131 = vector.shape_cast %130 : vector<1x2x32xi32> to vector<2x32xi32>
    %132 = vector.shape_cast %129 : vector<2x32xi32> to vector<1x2x32xi32>
    tpu.vector_store %arg14[%c0_63, %c0_64, %c0_65], %132 {strides = array<i32>} : memref<1x2x32xi32, #tpu.memory_space<vmem>>, vector<1x2x32xi32>,
    return
  }
  func.func @transform_0(%arg0: i32) -> (i32, i32, i32) {
    %c0_i32 = arith.constant 0 : i32
    %c0_i32_0 = arith.constant 0 : i32
    %c0_i32_1 = arith.constant 0 : i32
    return %arg0, %c0_i32, %c0_i32_0 : i32, i32, i32
  }
  func.func @transform_1(%arg0: i32) -> (i32, i32) {
    %c0_i32 = arith.constant 0 : i32
    %c0_i32_0 = arith.constant 0 : i32
    %c0_i32_1 = arith.constant 0 : i32
    return %c0_i32, %c0_i32_0 : i32, i32
  }
  func.func @transform_2(%arg0: i32) -> (i32, i32) {
    %c0_i32 = arith.constant 0 : i32
    %c0_i32_0 = arith.constant 0 : i32
    %c0_i32_1 = arith.constant 0 : i32
    return %c0_i32, %c0_i32_0 : i32, i32
  }
  func.func @transform_3(%arg0: i32) -> (i32, i32) {
    %c0_i32 = arith.constant 0 : i32
    %c0_i32_0 = arith.constant 0 : i32
    %c0_i32_1 = arith.constant 0 : i32
    return %c0_i32, %c0_i32_0 : i32, i32
  }
  func.func @transform_4(%arg0: i32) -> (i32, i32) {
    %c0_i32 = arith.constant 0 : i32
    %c0_i32_0 = arith.constant 0 : i32
    %c0_i32_1 = arith.constant 0 : i32
    return %c0_i32, %c0_i32_0 : i32, i32
  }
  func.func @transform_5(%arg0: i32) -> (i32, i32) {
    %c0_i32 = arith.constant 0 : i32
    %c0_i32_0 = arith.constant 0 : i32
    %c0_i32_1 = arith.constant 0 : i32
    return %c0_i32, %c0_i32_0 : i32, i32
  }
  func.func @transform_6(%arg0: i32) -> (i32, i32) {
    %c0_i32 = arith.constant 0 : i32
    %c0_i32_0 = arith.constant 0 : i32
    %c0_i32_1 = arith.constant 0 : i32
    return %c0_i32, %c0_i32_0 : i32, i32
  }
  func.func @transform_7(%arg0: i32) -> (i32, i32) {
    %c0_i32 = arith.constant 0 : i32
    %c0_i32_0 = arith.constant 0 : i32
    %c0_i32_1 = arith.constant 0 : i32
    return %c0_i32, %c0_i32_0 : i32, i32
  }
  func.func @transform_8(%arg0: i32) -> (i32, i32) {
    %c0_i32 = arith.constant 0 : i32
    %c0_i32_0 = arith.constant 0 : i32
    %c0_i32_1 = arith.constant 0 : i32
    return %c0_i32, %c0_i32_0 : i32, i32
  }
  func.func @transform_9(%arg0: i32) -> (i32, i32) {
    %c0_i32 = arith.constant 0 : i32
    %c0_i32_0 = arith.constant 0 : i32
    %c0_i32_1 = arith.constant 0 : i32
    return %c0_i32, %c0_i32_0 : i32, i32
  }
  func.func @transform_10(%arg0: i32) -> (i32, i32) {
    %c0_i32 = arith.constant 0 : i32
    %c0_i32_0 = arith.constant 0 : i32
    %c0_i32_1 = arith.constant 0 : i32
    return %c0_i32, %c0_i32_0 : i32, i32
  }
  func.func @transform_11(%arg0: i32) -> (i32, i32, i32) {
    %c0_i32 = arith.constant 0 : i32
    %c0_i32_0 = arith.constant 0 : i32
    %c0_i32_1 = arith.constant 0 : i32
    %c0_i32_2 = arith.constant 0 : i32
    return %c0_i32, %c0_i32_0, %c0_i32_1 : i32, i32, i32
  }
  func.func @transform_12(%arg0: i32) -> (i32, i32, i32) {
    %c0_i32 = arith.constant 0 : i32
    %c0_i32_0 = arith.constant 0 : i32
    %c0_i32_1 = arith.constant 0 : i32
    %c0_i32_2 = arith.constant 0 : i32
    return %c0_i32, %c0_i32_0, %c0_i32_1 : i32, i32, i32
  }
  func.func @transform_13(%arg0: i32) -> (i32, i32, i32) {
    %c0_i32 = arith.constant 0 : i32
    %c0_i32_0 = arith.constant 0 : i32
    %c0_i32_1 = arith.constant 0 : i32
    return %arg0, %c0_i32, %c0_i32_0 : i32, i32, i32
  }
}

module attributes {stable_mosaic.version = 11 : i64} {
  func.func @_rvq_decoder_kernel(%arg0: i32, %arg1: memref<1x2x32xi32, #tpu.memory_space<vmem>>, %arg2: memref<2x64x32xf32, #tpu.memory_space<vmem>>, %arg3: memref<32x96xbf16, #tpu.memory_space<vmem>>, %arg4: memref<32x1xf32, #tpu.memory_space<vmem>>, %arg5: memref<16x128xbf16, #tpu.memory_space<vmem>>, %arg6: memref<16x1xf32, #tpu.memory_space<vmem>>, %arg7: memref<32x64xbf16, #tpu.memory_space<vmem>>, %arg8: memref<8x64xbf16, #tpu.memory_space<vmem>>, %arg9: memref<8x1xf32, #tpu.memory_space<vmem>>, %arg10: memref<64x128xbf16, #tpu.memory_space<vmem>>, %arg11: memref<1x56xbf16, #tpu.memory_space<vmem>>, %arg12: memref<1x1xf32, #tpu.memory_space<vmem>>, %arg13: memref<1x1x128xf32, #tpu.memory_space<vmem>>) attributes {dimension_semantics = [#tpu.dimension_semantics<parallel>], iteration_bounds = array<i64: 2>, scalar_prefetch = 0 : i64, scratch_operands = 0 : i64, tpu.core_type = #tpu.core_type<tc>, window_params = [{transform_indices = @transform_0, window_bounds = array<i64: 1, 2, 32>}, {pipeline_mode = #tpu.pipeline_mode<synchronous>, transform_indices = @transform_1, window_bounds = array<i64: 2, 64, 32>}, {pipeline_mode = #tpu.pipeline_mode<synchronous>, transform_indices = @transform_2, window_bounds = array<i64: 32, 96>}, {pipeline_mode = #tpu.pipeline_mode<synchronous>, transform_indices = @transform_3, window_bounds = array<i64: 32, 1>}, {pipeline_mode = #tpu.pipeline_mode<synchronous>, transform_indices = @transform_4, window_bounds = array<i64: 16, 128>}, {pipeline_mode = #tpu.pipeline_mode<synchronous>, transform_indices = @transform_5, window_bounds = array<i64: 16, 1>}, {pipeline_mode = #tpu.pipeline_mode<synchronous>, transform_indices = @transform_6, window_bounds = array<i64: 32, 64>}, {pipeline_mode = #tpu.pipeline_mode<synchronous>, transform_indices = @transform_7, window_bounds = array<i64: 8, 64>}, {pipeline_mode = #tpu.pipeline_mode<synchronous>, transform_indices = @transform_8, window_bounds = array<i64: 8, 1>}, {pipeline_mode = #tpu.pipeline_mode<synchronous>, transform_indices = @transform_9, window_bounds = array<i64: 64, 128>}, {pipeline_mode = #tpu.pipeline_mode<synchronous>, transform_indices = @transform_10, window_bounds = array<i64: 1, 56>}, {pipeline_mode = #tpu.pipeline_mode<synchronous>, transform_indices = @transform_11, window_bounds = array<i64: 1, 1>}, {transform_indices = @transform_12, window_bounds = array<i64: 1, 1, 128>}]} {
    %c0 = arith.constant 0 : index
    %c0_0 = arith.constant 0 : index
    %c0_1 = arith.constant 0 : index
    %0 = vector.load %arg1[%c0, %c0_0, %c0_1] : memref<1x2x32xi32, #tpu.memory_space<vmem>>, vector<1x2x32xi32>
    %1 = vector.shape_cast %0 : vector<1x2x32xi32> to vector<2x32xi32>
    %2 = tpu.iota {dimensions = array<i32: 0>} : vector<64x32xi32>
    %cst = arith.constant 0.000000e+00 : f32
    %3 = vector.broadcast %cst : f32 to vector<32x32xf32>
    %4 = vector.extract_strided_slice %1 {offsets = [0, 0], sizes = [1, 32], strides = [1, 1]} : vector<2x32xi32> to vector<1x32xi32>
    %5 = vector.broadcast %4 : vector<1x32xi32> to vector<64x32xi32>
    %6 = arith.cmpi eq, %2, %5 : vector<64x32xi32>
    %7 = arith.extui %6 : vector<64x32xi1> to vector<64x32xi32>
    %8 = arith.sitofp %7 : vector<64x32xi32> to vector<64x32xf32>
    %c0_2 = arith.constant 0 : index
    %c0_3 = arith.constant 0 : index
    %c0_4 = arith.constant 0 : index
    %9 = vector.load %arg2[%c0_2, %c0_3, %c0_4] : memref<2x64x32xf32, #tpu.memory_space<vmem>>, vector<1x64x32xf32>
    %10 = vector.shape_cast %9 : vector<1x64x32xf32> to vector<64x32xf32>
    %cst_5 = arith.constant dense<0.000000e+00> : vector<32x32xf32>
    %11 = tpu.matmul %10, %8, %cst_5 {dimension_numbers = #tpu.dot_dimension_numbers<[0], [0], [1], [1], [0, 1, 1, 1], [], []>} : vector<64x32xf32>, vector<64x32xf32>, vector<32x32xf32> -> vector<32x32xf32>
    %12 = arith.addf %3, %11 : vector<32x32xf32>
    %13 = vector.extract_strided_slice %1 {offsets = [1, 0], sizes = [1, 32], strides = [1, 1]} : vector<2x32xi32> to vector<1x32xi32>
    %14 = vector.broadcast %13 : vector<1x32xi32> to vector<64x32xi32>
    %15 = arith.cmpi eq, %2, %14 : vector<64x32xi32>
    %16 = arith.extui %15 : vector<64x32xi1> to vector<64x32xi32>
    %17 = arith.sitofp %16 : vector<64x32xi32> to vector<64x32xf32>
    %c1 = arith.constant 1 : index
    %c0_6 = arith.constant 0 : index
    %c0_7 = arith.constant 0 : index
    %18 = vector.load %arg2[%c1, %c0_6, %c0_7] : memref<2x64x32xf32, #tpu.memory_space<vmem>>, vector<1x64x32xf32>
    %19 = vector.shape_cast %18 : vector<1x64x32xf32> to vector<64x32xf32>
    %cst_8 = arith.constant dense<0.000000e+00> : vector<32x32xf32>
    %20 = tpu.matmul %19, %17, %cst_8 {dimension_numbers = #tpu.dot_dimension_numbers<[0], [0], [1], [1], [0, 1, 1, 1], [], []>} : vector<64x32xf32>, vector<64x32xf32>, vector<32x32xf32> -> vector<32x32xf32>
    %21 = arith.addf %12, %20 : vector<32x32xf32>
    %22 = arith.truncf %21 : vector<32x32xf32> to vector<32x32xbf16>
    %cst_9 = arith.constant 0.000000e+00 : bf16
    %23 = vector.broadcast %cst_9 : bf16 to vector<32x2xbf16>
    %24 = tpu.concatenate %23, %22 in 1 : vector<32x2xbf16>, vector<32x32xbf16> -> vector<32x34xbf16>
    %25 = vector.extract_strided_slice %24 {offsets = [0, 0], sizes = [32, 32], strides = [1, 1]} : vector<32x34xbf16> to vector<32x32xbf16>
    %26 = vector.extract_strided_slice %24 {offsets = [0, 1], sizes = [32, 32], strides = [1, 1]} : vector<32x34xbf16> to vector<32x32xbf16>
    %27 = vector.extract_strided_slice %24 {offsets = [0, 2], sizes = [32, 32], strides = [1, 1]} : vector<32x34xbf16> to vector<32x32xbf16>
    %28 = tpu.concatenate %25, %26, %27 in 0 : vector<32x32xbf16>, vector<32x32xbf16>, vector<32x32xbf16> -> vector<96x32xbf16>
    %c0_10 = arith.constant 0 : index
    %c0_11 = arith.constant 0 : index
    %29 = vector.load %arg3[%c0_10, %c0_11] : memref<32x96xbf16, #tpu.memory_space<vmem>>, vector<32x96xbf16>
    %cst_12 = arith.constant dense<0.000000e+00> : vector<32x32xf32>
    %30 = tpu.matmul %29, %28, %cst_12 {dimension_numbers = #tpu.dot_dimension_numbers<[1], [0], [0], [1], [0, 0, 1, 1], [], []>} : vector<32x96xbf16>, vector<96x32xbf16>, vector<32x32xf32> -> vector<32x32xf32>
    %c0_13 = arith.constant 0 : index
    %c0_14 = arith.constant 0 : index
    %31 = vector.load %arg4[%c0_13, %c0_14] : memref<32x1xf32, #tpu.memory_space<vmem>>, vector<32x1xf32>
    %32 = vector.broadcast %31 : vector<32x1xf32> to vector<32x32xf32>
    %33 = arith.addf %30, %32 : vector<32x32xf32>
    %cst_15 = arith.constant 0.000000e+00 : f32
    %34 = vector.broadcast %cst_15 : f32 to vector<32x32xf32>
    %35 = arith.cmpf ogt, %33, %34 : vector<32x32xf32>
    %cst_16 = arith.constant 0.000000e+00 : f32
    %36 = vector.broadcast %cst_16 : f32 to vector<32x32xf32>
    %37 = arith.minimumf %33, %36 : vector<32x32xf32>
    %38 = math.exp %37 : vector<32x32xf32>
    %cst_17 = arith.constant 1.000000e+00 : f32
    %39 = vector.broadcast %cst_17 : f32 to vector<32x32xf32>
    %40 = arith.subf %38, %39 : vector<32x32xf32>
    %41 = arith.select %35, %33, %40 : vector<32x32xi1>, vector<32x32xf32>
    %42 = arith.truncf %41 : vector<32x32xf32> to vector<32x32xbf16>
    %c0_18 = arith.constant 0 : index
    %c0_19 = arith.constant 0 : index
    %43 = vector.load %arg7[%c0_18, %c0_19] : memref<32x64xbf16, #tpu.memory_space<vmem>>, vector<32x64xbf16>
    %cst_20 = arith.constant dense<0.000000e+00> : vector<32x64xf32>
    %44 = tpu.matmul %42, %43, %cst_20 {dimension_numbers = #tpu.dot_dimension_numbers<[1], [0], [0], [1], [0, 0, 1, 1], [], []>} : vector<32x32xbf16>, vector<32x64xbf16>, vector<32x64xf32> -> vector<32x64xf32>
    %45 = arith.truncf %44 : vector<32x64xf32> to vector<32x64xbf16>
    %cst_21 = arith.constant 0.000000e+00 : bf16
    %46 = vector.broadcast %cst_21 : bf16 to vector<32x3xbf16>
    %47 = tpu.concatenate %46, %45 in 1 : vector<32x3xbf16>, vector<32x64xbf16> -> vector<32x67xbf16>
    %48 = vector.extract_strided_slice %47 {offsets = [0, 3], sizes = [32, 64], strides = [1, 1]} : vector<32x67xbf16> to vector<32x64xbf16>
    %49 = vector.extract_strided_slice %47 {offsets = [0, 2], sizes = [32, 64], strides = [1, 1]} : vector<32x67xbf16> to vector<32x64xbf16>
    %50 = vector.extract_strided_slice %47 {offsets = [0, 1], sizes = [32, 64], strides = [1, 1]} : vector<32x67xbf16> to vector<32x64xbf16>
    %51 = vector.extract_strided_slice %47 {offsets = [0, 0], sizes = [32, 64], strides = [1, 1]} : vector<32x67xbf16> to vector<32x64xbf16>
    %52 = tpu.concatenate %48, %49, %50, %51 in 0 : vector<32x64xbf16>, vector<32x64xbf16>, vector<32x64xbf16>, vector<32x64xbf16> -> vector<128x64xbf16>
    %c0_22 = arith.constant 0 : index
    %c0_23 = arith.constant 0 : index
    %53 = vector.load %arg5[%c0_22, %c0_23] : memref<16x128xbf16, #tpu.memory_space<vmem>>, vector<16x128xbf16>
    %cst_24 = arith.constant dense<0.000000e+00> : vector<16x64xf32>
    %54 = tpu.matmul %53, %52, %cst_24 {dimension_numbers = #tpu.dot_dimension_numbers<[1], [0], [0], [1], [0, 0, 1, 1], [], []>} : vector<16x128xbf16>, vector<128x64xbf16>, vector<16x64xf32> -> vector<16x64xf32>
    %c0_25 = arith.constant 0 : index
    %c0_26 = arith.constant 0 : index
    %55 = vector.load %arg6[%c0_25, %c0_26] : memref<16x1xf32, #tpu.memory_space<vmem>>, vector<16x1xf32>
    %56 = vector.broadcast %55 : vector<16x1xf32> to vector<16x64xf32>
    %57 = arith.addf %54, %56 : vector<16x64xf32>
    %cst_27 = arith.constant 0.000000e+00 : f32
    %58 = vector.broadcast %cst_27 : f32 to vector<16x64xf32>
    %59 = arith.cmpf ogt, %57, %58 : vector<16x64xf32>
    %cst_28 = arith.constant 0.000000e+00 : f32
    %60 = vector.broadcast %cst_28 : f32 to vector<16x64xf32>
    %61 = arith.minimumf %57, %60 : vector<16x64xf32>
    %62 = math.exp %61 : vector<16x64xf32>
    %cst_29 = arith.constant 1.000000e+00 : f32
    %63 = vector.broadcast %cst_29 : f32 to vector<16x64xf32>
    %64 = arith.subf %62, %63 : vector<16x64xf32>
    %65 = arith.select %59, %57, %64 : vector<16x64xi1>, vector<16x64xf32>
    %66 = arith.truncf %65 : vector<16x64xf32> to vector<16x64xbf16>
    %c0_30 = arith.constant 0 : index
    %c0_31 = arith.constant 0 : index
    %67 = vector.load %arg10[%c0_30, %c0_31] : memref<64x128xbf16, #tpu.memory_space<vmem>>, vector<64x128xbf16>
    %cst_32 = arith.constant dense<0.000000e+00> : vector<16x128xf32>
    %68 = tpu.matmul %66, %67, %cst_32 {dimension_numbers = #tpu.dot_dimension_numbers<[1], [0], [0], [1], [0, 0, 1, 1], [], []>} : vector<16x64xbf16>, vector<64x128xbf16>, vector<16x128xf32> -> vector<16x128xf32>
    %69 = arith.truncf %68 : vector<16x128xf32> to vector<16x128xbf16>
    %cst_33 = arith.constant 0.000000e+00 : bf16
    %70 = vector.broadcast %cst_33 : bf16 to vector<16x3xbf16>
    %71 = tpu.concatenate %70, %69 in 1 : vector<16x3xbf16>, vector<16x128xbf16> -> vector<16x131xbf16>
    %72 = vector.extract_strided_slice %71 {offsets = [0, 3], sizes = [16, 128], strides = [1, 1]} : vector<16x131xbf16> to vector<16x128xbf16>
    %73 = vector.extract_strided_slice %71 {offsets = [0, 2], sizes = [16, 128], strides = [1, 1]} : vector<16x131xbf16> to vector<16x128xbf16>
    %74 = vector.extract_strided_slice %71 {offsets = [0, 1], sizes = [16, 128], strides = [1, 1]} : vector<16x131xbf16> to vector<16x128xbf16>
    %75 = vector.extract_strided_slice %71 {offsets = [0, 0], sizes = [16, 128], strides = [1, 1]} : vector<16x131xbf16> to vector<16x128xbf16>
    %76 = tpu.concatenate %72, %73, %74, %75 in 0 : vector<16x128xbf16>, vector<16x128xbf16>, vector<16x128xbf16>, vector<16x128xbf16> -> vector<64x128xbf16>
    %c0_34 = arith.constant 0 : index
    %c0_35 = arith.constant 0 : index
    %77 = vector.load %arg8[%c0_34, %c0_35] : memref<8x64xbf16, #tpu.memory_space<vmem>>, vector<8x64xbf16>
    %cst_36 = arith.constant dense<0.000000e+00> : vector<8x128xf32>
    %78 = tpu.matmul %77, %76, %cst_36 {dimension_numbers = #tpu.dot_dimension_numbers<[1], [0], [0], [1], [0, 0, 1, 1], [], []>} : vector<8x64xbf16>, vector<64x128xbf16>, vector<8x128xf32> -> vector<8x128xf32>
    %c0_37 = arith.constant 0 : index
    %c0_38 = arith.constant 0 : index
    %79 = vector.load %arg9[%c0_37, %c0_38] : memref<8x1xf32, #tpu.memory_space<vmem>>, vector<8x1xf32>
    %80 = vector.broadcast %79 : vector<8x1xf32> to vector<8x128xf32>
    %81 = arith.addf %78, %80 : vector<8x128xf32>
    %cst_39 = arith.constant 0.000000e+00 : f32
    %82 = vector.broadcast %cst_39 : f32 to vector<8x128xf32>
    %83 = arith.cmpf ogt, %81, %82 : vector<8x128xf32>
    %cst_40 = arith.constant 0.000000e+00 : f32
    %84 = vector.broadcast %cst_40 : f32 to vector<8x128xf32>
    %85 = arith.minimumf %81, %84 : vector<8x128xf32>
    %86 = math.exp %85 : vector<8x128xf32>
    %cst_41 = arith.constant 1.000000e+00 : f32
    %87 = vector.broadcast %cst_41 : f32 to vector<8x128xf32>
    %88 = arith.subf %86, %87 : vector<8x128xf32>
    %89 = arith.select %83, %81, %88 : vector<8x128xi1>, vector<8x128xf32>
    %90 = arith.truncf %89 : vector<8x128xf32> to vector<8x128xbf16>
    %cst_42 = arith.constant 0.000000e+00 : bf16
    %91 = vector.broadcast %cst_42 : bf16 to vector<8x6xbf16>
    %92 = tpu.concatenate %91, %90 in 1 : vector<8x6xbf16>, vector<8x128xbf16> -> vector<8x134xbf16>
    %93 = vector.extract_strided_slice %92 {offsets = [0, 0], sizes = [8, 128], strides = [1, 1]} : vector<8x134xbf16> to vector<8x128xbf16>
    %94 = vector.extract_strided_slice %92 {offsets = [0, 1], sizes = [8, 128], strides = [1, 1]} : vector<8x134xbf16> to vector<8x128xbf16>
    %95 = vector.extract_strided_slice %92 {offsets = [0, 2], sizes = [8, 128], strides = [1, 1]} : vector<8x134xbf16> to vector<8x128xbf16>
    %96 = vector.extract_strided_slice %92 {offsets = [0, 3], sizes = [8, 128], strides = [1, 1]} : vector<8x134xbf16> to vector<8x128xbf16>
    %97 = vector.extract_strided_slice %92 {offsets = [0, 4], sizes = [8, 128], strides = [1, 1]} : vector<8x134xbf16> to vector<8x128xbf16>
    %98 = vector.extract_strided_slice %92 {offsets = [0, 5], sizes = [8, 128], strides = [1, 1]} : vector<8x134xbf16> to vector<8x128xbf16>
    %99 = vector.extract_strided_slice %92 {offsets = [0, 6], sizes = [8, 128], strides = [1, 1]} : vector<8x134xbf16> to vector<8x128xbf16>
    %100 = tpu.concatenate %93, %94, %95, %96, %97, %98, %99 in 0 : vector<8x128xbf16>, vector<8x128xbf16>, vector<8x128xbf16>, vector<8x128xbf16>, vector<8x128xbf16>, vector<8x128xbf16>, vector<8x128xbf16> -> vector<56x128xbf16>
    %c0_43 = arith.constant 0 : index
    %c0_44 = arith.constant 0 : index
    %101 = vector.load %arg11[%c0_43, %c0_44] : memref<1x56xbf16, #tpu.memory_space<vmem>>, vector<1x56xbf16>
    %cst_45 = arith.constant dense<0.000000e+00> : vector<1x128xf32>
    %102 = tpu.matmul %101, %100, %cst_45 {dimension_numbers = #tpu.dot_dimension_numbers<[1], [0], [0], [1], [0, 0, 1, 1], [], []>} : vector<1x56xbf16>, vector<56x128xbf16>, vector<1x128xf32> -> vector<1x128xf32>
    %c0_46 = arith.constant 0 : index
    %c0_47 = arith.constant 0 : index
    %103 = vector.load %arg12[%c0_46, %c0_47] : memref<1x1xf32, #tpu.memory_space<vmem>>, vector<1x1xf32>
    %104 = vector.broadcast %103 : vector<1x1xf32> to vector<1x128xf32>
    %105 = arith.addf %102, %104 : vector<1x128xf32>
    %c0_48 = arith.constant 0 : index
    %c0_49 = arith.constant 0 : index
    %c0_50 = arith.constant 0 : index
    %106 = vector.load %arg13[%c0_48, %c0_49, %c0_50] : memref<1x1x128xf32, #tpu.memory_space<vmem>>, vector<1x1x128xf32>
    %107 = vector.shape_cast %106 : vector<1x1x128xf32> to vector<1x128xf32>
    %108 = vector.shape_cast %105 : vector<1x128xf32> to vector<1x1x128xf32>
    tpu.vector_store %arg13[%c0_48, %c0_49, %c0_50], %108 {strides = array<i32>} : memref<1x1x128xf32, #tpu.memory_space<vmem>>, vector<1x1x128xf32>,
    return
  }
  func.func @transform_0(%arg0: i32) -> (i32, i32, i32) {
    %c0_i32 = arith.constant 0 : i32
    %c0_i32_0 = arith.constant 0 : i32
    %c0_i32_1 = arith.constant 0 : i32
    return %arg0, %c0_i32, %c0_i32_0 : i32, i32, i32
  }
  func.func @transform_1(%arg0: i32) -> (i32, i32, i32) {
    %c0_i32 = arith.constant 0 : i32
    %c0_i32_0 = arith.constant 0 : i32
    %c0_i32_1 = arith.constant 0 : i32
    %c0_i32_2 = arith.constant 0 : i32
    return %c0_i32, %c0_i32_0, %c0_i32_1 : i32, i32, i32
  }
  func.func @transform_2(%arg0: i32) -> (i32, i32) {
    %c0_i32 = arith.constant 0 : i32
    %c0_i32_0 = arith.constant 0 : i32
    %c0_i32_1 = arith.constant 0 : i32
    return %c0_i32, %c0_i32_0 : i32, i32
  }
  func.func @transform_3(%arg0: i32) -> (i32, i32) {
    %c0_i32 = arith.constant 0 : i32
    %c0_i32_0 = arith.constant 0 : i32
    %c0_i32_1 = arith.constant 0 : i32
    return %c0_i32, %c0_i32_0 : i32, i32
  }
  func.func @transform_4(%arg0: i32) -> (i32, i32) {
    %c0_i32 = arith.constant 0 : i32
    %c0_i32_0 = arith.constant 0 : i32
    %c0_i32_1 = arith.constant 0 : i32
    return %c0_i32, %c0_i32_0 : i32, i32
  }
  func.func @transform_5(%arg0: i32) -> (i32, i32) {
    %c0_i32 = arith.constant 0 : i32
    %c0_i32_0 = arith.constant 0 : i32
    %c0_i32_1 = arith.constant 0 : i32
    return %c0_i32, %c0_i32_0 : i32, i32
  }
  func.func @transform_6(%arg0: i32) -> (i32, i32) {
    %c0_i32 = arith.constant 0 : i32
    %c0_i32_0 = arith.constant 0 : i32
    %c0_i32_1 = arith.constant 0 : i32
    return %c0_i32, %c0_i32_0 : i32, i32
  }
  func.func @transform_7(%arg0: i32) -> (i32, i32) {
    %c0_i32 = arith.constant 0 : i32
    %c0_i32_0 = arith.constant 0 : i32
    %c0_i32_1 = arith.constant 0 : i32
    return %c0_i32, %c0_i32_0 : i32, i32
  }
  func.func @transform_8(%arg0: i32) -> (i32, i32) {
    %c0_i32 = arith.constant 0 : i32
    %c0_i32_0 = arith.constant 0 : i32
    %c0_i32_1 = arith.constant 0 : i32
    return %c0_i32, %c0_i32_0 : i32, i32
  }
  func.func @transform_9(%arg0: i32) -> (i32, i32) {
    %c0_i32 = arith.constant 0 : i32
    %c0_i32_0 = arith.constant 0 : i32
    %c0_i32_1 = arith.constant 0 : i32
    return %c0_i32, %c0_i32_0 : i32, i32
  }
  func.func @transform_10(%arg0: i32) -> (i32, i32) {
    %c0_i32 = arith.constant 0 : i32
    %c0_i32_0 = arith.constant 0 : i32
    %c0_i32_1 = arith.constant 0 : i32
    return %c0_i32, %c0_i32_0 : i32, i32
  }
  func.func @transform_11(%arg0: i32) -> (i32, i32) {
    %c0_i32 = arith.constant 0 : i32
    %c0_i32_0 = arith.constant 0 : i32
    %c0_i32_1 = arith.constant 0 : i32
    return %c0_i32, %c0_i32_0 : i32, i32
  }
  func.func @transform_12(%arg0: i32) -> (i32, i32, i32) {
    %c0_i32 = arith.constant 0 : i32
    %c0_i32_0 = arith.constant 0 : i32
    %c0_i32_1 = arith.constant 0 : i32
    return %arg0, %c0_i32, %c0_i32_0 : i32, i32, i32
  }
}

</mosaic_0001>

<bundles_post_ra>
// kernel: _forward_impl.3
= control target key start
LH: loop header
LB: loop body
LE: loop exit
PB: predicated region body
PF: predicated region fallthrough
CT: control target
= control target key end

     0   :  { %s2366_s0 = inlined_call_operand.vmem [shape: s32[2,2,32], index: 0, kind: input, shape index: {}]   ;;  %s2367_s1 = inlined_call_operand.vmem [shape: f32[2,64,32], index: 1, kind: input, shape index: {}]   ;;  %s2368_s2 = inlined_call_operand.vmem [shape: bf16[32,96], index: 2, kind: input, shape index: {}]   ;;  %s2369_s3 = inlined_call_operand.vmem [shape: f32[32,1], index: 3, kind: input, shape index: {}]   ;;  %s2370_s4 = inlined_call_operand.vmem [shape: bf16[16,128], index: 4, kind: input, shape index: {}]   ;;  %s2371_s5 = inlined_call_operand.vmem [shape: f32[16,1], index: 5, kind: input, shape index: {}]   ;;  %s2372_s6 = inlined_call_operand.vmem [shape: bf16[32,64], index: 6, kind: input, shape index: {}]   ;;  %s2373_s7 = inlined_call_operand.vmem [shape: bf16[8,64], index: 7, kind: input, shape index: {}]   ;;  %s2374_s8 = inlined_call_operand.vmem [shape: f32[8,1], index: 8, kind: input, shape index: {}]   ;;  %s2375_s9 = inlined_call_operand.vmem [shape: bf16[64,128], index: 9, kind: input, shape index: {}]   ;;  %s2376_s10 = inlined_call_operand.vmem [shape: bf16[1,56], index: 10, kind: input, shape index: {}]   ;;  %s2377_s11 = inlined_call_operand.<no memory space> [shape: f32[1,1], index: 11, kind: input, shape index: {}]   ;;  %s2378_s12 = inlined_call_operand.hbm [shape: f32[2,1,128], index: 12, kind: output, shape index: {}]  }
   0x1   :  { %v17_v0 = vstv %s2377_s11 }
   0x2   :  { %18 = vst [vmem:[#allocation2] sm:$0x1] %v17_v0 }
   0x3   :  { %19 = vsyncpa [#allocation4], 0 }
   0x4   :  { %21 = vsyncpa [#allocation4 + $0x1], 0  ;;  %s1987_s23 = smov 0   ;;  %s1989_s24 = smov 0  }
   0x5   :  { %s1991_s25 = smov 0   ;;  %s1993_s26 = smov 0  }
   0x6 LB: > { %s2008_s11 = sadd.s32 4294967295, %s1902_s26   ;;  %s1459_s27 = sadd.s32 4294967294, %s1902_s26   ;;  %s1902_s26 = sphi %s1993_s26, %s2404_s26   ;;  %s1898_s25 = sphi %s1991_s25, %s2403_s25   ;;  %s1894_s24 = sphi %s1989_s24, %s2402_s24   ;;  %s1890_s23 = sphi %s1987_s23, %s2401_s23  }
   0x7   : > { %s2012_s28 = sadd.s32 1, %s1902_s26   ;;  %s291_s29 = sadd.s32 1, %s1898_s25 }
   0x8   : > { %s288_s30 = ssub.s32 %s1902_s26, %s2012_s28  ;;  %p301_p0 = scmp.ne.s32.totalorder %s1898_s25, %s1894_s24 }
   0x9   : > { %p289_p1 = scmp.eq.s32.totalorder %s288_s30, 0  ;;  %p302_p2 = scmp.eq.s32.totalorder %s2008_s11, 1 }
   0xa   : > { %p307_p3 = scmp.ne.s32.totalorder %s1894_s24, %s1890_s23  ;;  %p308_p4 = scmp.eq.s32.totalorder %s1459_s27, 1 }
   0xb   : > { %s2023_s13 = scalar_select %p289_p1, %s1898_s25, %s291_s29  }
   0xc   : > { %p2025_p5 = por %p302_p2, %p301_p0  ;;  %p2029_p6 = por %p308_p4, %p307_p3 }
   0xd   : > { %2383 = sst [smem:[#allocation6_spill]] %s2023_s13  ;;  %p1462_p7 = scmp.ge.s32.totalorder %s1902_s26, 1 }
   0xe   : > { %p366_p8 = scmp.lt.s32.totalorder %s1902_s26, 3 }
  0x10   : > { %p367_p9 = pnand %p1462_p7, %p366_p8 }
  0x11   : > { %v1480_v1 = vld [vmem:[%s2367_s1 + $0x40] sm:$0xff] (!%p367_p9)  ;;  %p406_p10 = scmp.lt.s32.totalorder (!%p367_p9), %s2008_s11, 1  ;;  %v412_v2 = vlaneseq (!%p367_p9)  ;;  %v1481_v4 = vld [vmem:[%s2367_s1 + $0x48] sm:$0xff] (!%p367_p9)  ;;  %v1482_v7 = vld [vmem:[%s2367_s1 + $0x50] sm:$0xff] (!%p367_p9)  ;;  %v1904_v23 = vmov (!%p367_p9), 1.0|1.0  }
  0x12   : > { %370 = sbr.rel (%p367_p9) target bundleno = 2984 (0xba8), region = 68  ;;  %494 = vxpose.xlu0.b32.start [1/8] (short) (narrow) (!%p367_p9), %v1480_v1, 32  ;;  %v449_v3 = vld [vmem:[%s2367_s1] sm:$0xff] (!%p367_p9)  ;;  %v450_v6 = vld [vmem:[%s2367_s1 + $0x8] sm:$0xff] (!%p367_p9)  ;;  %v451_v9 = vld [vmem:[%s2367_s1 + $0x10] sm:$0xff] (!%p367_p9)  ;;  %s1905_s20 = smov (!%p367_p9), 2  }
  0x13   : > { %624 = vxpose.xlu1.b32.start [1/8] (short) (narrow) (!%p367_p9), %v449_v3, 32  ;;  %v2046_v5 = vshrl.u32 (!%p367_p9), %v412_v2, 7  ;;  %v1483_v19 = vld [vmem:[%s2367_s1 + $0x58] sm:$0xff] (!%p367_p9)  ;;  %v1484_v25 = vld [vmem:[%s2367_s1 + $0x60] sm:$0xff] (!%p367_p9)  ;;  %v1485_v31 = vld [vmem:[%s2367_s1 + $0x68] sm:$0xff] (!%p367_p9)  ;;  %s2379_s21 = smov (!%p367_p9), 127  }
  0x14   : > { %v452_v21 = vld [vmem:[%s2367_s1 + $0x18] sm:$0xff] (!%p367_p9)  ;;  %v453_v27 = vld [vmem:[%s2367_s1 + $0x20] sm:$0xff] (!%p367_p9)  ;;  %v454_v32 = vld [vmem:[%s2367_s1 + $0x28] sm:$0xff] (!%p367_p9)  ;;  %s2381_s29 = smov (!%p367_p9), 126   ;;  %v1908_v57 = vmov (!%p367_p9), 0   ;;  %s1911_s27 = smov (!%p367_p9), 1  }
  0x15   : > { %v423_v8 = vsub.s32 (!%p367_p9), 0, %v2046_v5  ;;  %v414_v10 = vadd.s32 (!%p367_p9), 8, %v2046_v5  ;;  %v459_v11 = vsub.s32 (!%p367_p9), 1, %v2046_v5  ;;  %v415_v12 = vadd.s32 (!%p367_p9), 16, %v2046_v5  ;;  %v1486_v33 = vld [vmem:[%s2367_s1 + $0x70] sm:$0xff] (!%p367_p9)  ;;  %v1487_v36 = vld [vmem:[%s2367_s1 + $0x78] sm:$0xff] (!%p367_p9) }
  0x16   : > { %495 = vxpose.xlu0.b32.cont [2/8] (short) (narrow) (!%p367_p9), %v1481_v4, 32  ;;  %v416_v13 = vadd.s32 (!%p367_p9), 24, %v2046_v5  ;;  %v417_v15 = vadd.s32 (!%p367_p9), 32, %v2046_v5  ;;  %v418_v16 = vadd.s32 (!%p367_p9), 40, %v2046_v5  ;;  %v419_v17 = vadd.s32 (!%p367_p9), 48, %v2046_v5  ;;  %v455_v35 = vld [vmem:[%s2367_s1 + $0x30] sm:$0xff] (!%p367_p9) }
  0x17   : > { %625 = vxpose.xlu1.b32.cont [2/8] (short) (narrow) (!%p367_p9), %v450_v6, 32  ;;  %v420_v22 = vadd.s32 (!%p367_p9), 56, %v2046_v5  ;;  %v456_v37 = vld [vmem:[%s2367_s1 + $0x38] sm:$0xff] (!%p367_p9)  ;;  %v1817_v54 = vld [vmem:[%s2368_s2] sm:$0xff] (!%p367_p9)   ;;  %v788_v58 = vld [vmem:[%s2369_s3 + $0x8] sm:$0xff] (!%p367_p9)  ;;  %s1912_s30 = smov (!%p367_p9), 125  }
  0x18   : > { %v787_v59 = vld [vmem:[%s2369_s3] sm:$0xff] (!%p367_p9)  ;;  %v789_v60 = vld [vmem:[%s2369_s3 + $0x10] sm:$0xff] (!%p367_p9)  ;;  %v790_v61 = vld [vmem:[%s2369_s3 + $0x18] sm:$0xff] (!%p367_p9)  ;;  %s1915_s18 = smov (!%p367_p9), 124   ;;  %s2399_s19 = smov (!%p367_p9), 127  }
  0x19   : > { %s407_s22 = scalar_select %p406_p10, %s2008_s11, 1  ;;  %v1818_v2 = vld [vmem:[%s2368_s2 + $0x8] sm:$0xff]   ;;  %v1819_v3 = vld [vmem:[%s2372_s6] sm:$0xff]  }
  0x1a   : > { %496 = vxpose.xlu0.b32.cont [3/8] (short) (narrow) %v1482_v7, 32  ;;  %v1820_v4 = vld [vmem:[%s2372_s6 + $0x8] sm:$0xff]   ;;  %s1917_s16 = smov 122  }
  0x1b   : > { %s1463_s17 = sshll.u32 %s407_s22, 1  ;;  %626 = vxpose.xlu1.b32.cont [3/8] (short) (narrow) %v451_v9, 32  ;;  %s1909_s22 = smov 3  }
  0x1c   : > { %s409_s13 = scalar_lea.vmem %s2366_s0, %s1463_s17  ;;  %s2398_s17 = smov 126  }
  0x1d   : > { %v411_v14 = vld [vmem:[%s409_s13] sm:$0x3]  ;;  %s1916_s13 = smov 123  }
  0x1e   : > { %v460_v18 = vrot.slane %v411_v14, %v459_v11  ;;  %v424_v20 = vrot.slane %v411_v14, %v423_v8  ;;  %497 = vxpose.xlu0.b32.cont [4/8] (short) (narrow) %v1483_v19, 32 }
  0x1f   : > { %627 = vxpose.xlu1.b32.cont [4/8] (short) (narrow) %v452_v21, 32 }
  0x20   : > { %vm461_vm0 = vcmp.eq.s32.totalorder %v2046_v5, %v460_v18  ;;  %vm462_vm1 = vcmp.eq.s32.totalorder %v414_v10, %v460_v18  ;;  %vm463_vm2 = vcmp.eq.s32.totalorder %v415_v12, %v460_v18  ;;  %vm464_vm3 = vcmp.eq.s32.totalorder %v416_v13, %v460_v18 }
  0x21   : > { %vm1726_vm4 = vmpackc.low %vm462_vm1, %vm461_vm0  ;;  %vm465_vm6 = vcmp.eq.s32.totalorder %v417_v15, %v460_v18  ;;  %vm466_vm7 = vcmp.eq.s32.totalorder %v418_v16, %v460_v18  ;;  %vm427_vm8 = vcmp.eq.s32.totalorder %v415_v12, %v424_v20  ;;  %vm428_vm9 = vcmp.eq.s32.totalorder %v416_v13, %v424_v20 }
  0x22   : > { %1727 = vmatprep.subr.msk.bf16.mxu0 %vm1726_vm4, %v1904_v23  ;;  %vm2079_vm5 = vmpackc.low %vm464_vm3, %vm463_vm2  ;;  %vm429_vm10 = vcmp.eq.s32.totalorder %v417_v15, %v424_v20  ;;  %vm430_vm11 = vcmp.eq.s32.totalorder %v418_v16, %v424_v20  ;;  %vm467_vm13 = vcmp.eq.s32.totalorder %v419_v17, %v460_v18  ;;  %vm468_vm14 = vcmp.eq.s32.totalorder %v420_v22, %v460_v18 }
  0x23   : > { %1729 = vmatpush3.bf16.msk.msra.mxu0 %vm1726_vm4, %v1904_v23  ;;  %vm2090_vm12 = vmpackc.low %vm466_vm7, %vm465_vm6  ;;  %vm431_vm0 = vcmp.eq.s32.totalorder %v419_v17, %v424_v20  ;;  %vm432_vm1 = vcmp.eq.s32.totalorder %v420_v22, %v424_v20  ;;  %498 = vxpose.xlu0.b32.cont [5/8] (short) (narrow) %v1484_v25, 32  ;;  %vm426_vm6 = vcmp.eq.s32.totalorder %v414_v10, %v424_v20 }
  0x24   : > { %1731 = vmatprep.subr.msk.bf16.mxu0 %vm2079_vm5, %v1904_v23  ;;  %vm2097_vm15 = vmpackc.low %vm428_vm9, %vm427_vm8  ;;  %628 = vxpose.xlu1.b32.cont [5/8] (short) (narrow) %v453_v27, 32  ;;  %vm526_vm8 = vcmask 523264   ;;  %vm761_vm9 = vcmask 15360  }
  0x25   : > { %vm2104_vm2 = vmpackc.low %vm430_vm11, %vm429_vm10  ;;  %vm821_vm11 = vcmask 785408  }
  0x26   : > { %vm2111_vm3 = vmpackc.low %vm432_vm1, %vm431_vm0  ;;  %1658 = vmatprep.mubr.msk.bf16.mxu1 %vm821_vm11, %v1817_v54  ;;  %vm919_vm0 = vcmask 261120   ;;  %vm983_vm1 = vcmask 23552  }
  0x27   : > { %1733 = vmatpush3.bf16.msk.msra.mxu0 %vm2079_vm5, %v1904_v23  ;;  %vm1738_vm4 = vmpackc.low %vm468_vm14, %vm467_vm13  ;;  %vm425_vm5 = vcmp.eq.s32.totalorder %v2046_v5, %v424_v20  ;;  %499 = vxpose.xlu0.b32.cont [6/8] (short) (narrow) %v1485_v31, 32 }
  0x28   : > { %1735 = vmatprep.subr.msk.bf16.mxu0 %vm2090_vm12, %v1904_v23  ;;  %629 = vxpose.xlu1.b32.cont [6/8] (short) (narrow) %v454_v32, 32  ;;  %vm2129_vm7 = vmpackc.low %vm426_vm6, %vm425_vm5  ;;  %vm1187_vm5 = vcmask 7168   ;;  %vm1218_vm6 = vcmask 1022976  }
  0x29   : > { %vm1514_vm10 = vmneg %vm761_vm9 }
  0x2b   : > { %1737 = vmatpush3.bf16.msk.msra.mxu0 %vm2090_vm12, %v1904_v23  ;;  %500 = vxpose.xlu0.b32.cont [7/8] (short) (narrow) %v1486_v33, 32 }
  0x2c   : > { %1739 = vmatprep.subr.msk.bf16.mxu0 %vm1738_vm4, %v1904_v23  ;;  %630 = vxpose.xlu1.b32.cont [7/8] (short) (narrow) %v455_v35, 32 }
  0x2f   : > { %1741 = vmatpush3.bf16.msk.msra.mxu0 %vm1738_vm4, %v1904_v23  ;;  %501 = vxpose.xlu0.b32.end [8/8] (short) (narrow) %v1487_v36, 32 }
  0x30   : > { %1743 = vmatprep.subr.msk.bf16.mxu0 %vm2129_vm7, %v1904_v23  ;;  %631 = vxpose.xlu1.b32.end [8/8] (short) (narrow) %v456_v37, 32 }
  0x4e   : > { %1815 = vset.pattern.permute.xlu1 %v1908_v57 }
  0x58   : > { %1816 = vset.pattern.permute.xlu0 %v1908_v57 }
  0x93   : > { %v510_v38 = vpop.trf.xlu0 }
  0x94   : > { %1618 = vmatprep.mubr.msk.f32.mxu0 %vm526_vm8, %v510_v38  ;;  %v640_v40 = vpop.trf.xlu1 }
  0x97   : > { %v511_v39 = vpop.trf.xlu0 }
  0x98   : > { %1619 = vmatmul.mubr.msk.f32.vlgmr.msra.gmra.mrb[0].mxu0 %vm526_vm8, %v511_v39  ;;  %v641_v42 = vpop.trf.xlu1 }
  0x99   : > { %1745 = vmatpush3.bf16.msk.msra.mxu0 %vm2129_vm7, %v1904_v23 }
  0x9a   : > { %1747 = vmatprep.subr.msk.bf16.mxu0 %vm2097_vm15, %v1904_v23 }
  0x9b   : > { %v512_v41 = vpop.trf.xlu0 }
  0x9c   : > { %1621 = vmatprep.mubr.msk.f32.mxu0 %vm526_vm8, %v512_v41  ;;  %v642_v44 = vpop.trf.xlu1 }
  0x9d   : > { %1749 = vmatpush3.bf16.msk.msra.mxu0 %vm2097_vm15, %v1904_v23 }
  0x9e   : > { %1751 = vmatprep.subr.msk.bf16.mxu0 %vm2104_vm2, %v1904_v23 }
  0x9f   : > { %v513_v43 = vpop.trf.xlu0 }
  0xa0   : > { %1622 = vmatmul.mubr.msk.f32.gmra.mrb[2].mxu0 %vm526_vm8, %v513_v43  ;;  %v643_v45 = vpop.trf.xlu1 }
  0xa1   : > { %1753 = vmatpush3.bf16.msk.msra.mxu0 %vm2104_vm2, %v1904_v23  ;;  %1640 = vmatprep.mubr.msk.f32.mxu0 %vm526_vm8, %v640_v40  ;;  %vm1913_vm2 = vmmov 0  }
  0xa2   : > { %1755 = vmatprep.subr.msk.bf16.mxu0 %vm2111_vm3, %v1904_v23 }
  0xa5   : > { %1757 = vmatpush3.bf16.msk.msra.mxu0 %vm2111_vm3, %v1904_v23 }
  0xa8   : > { %1641 = vmatmul.mubr.msk.f32.vlgmr.msra.gmra.mrb[0].mxu0 %vm526_vm8, %v641_v42 }
  0xa9   : > { %1643 = vmatprep.mubr.msk.f32.mxu0 %vm526_vm8, %v642_v44 }
  0xac   : > { %1644 = vmatmul.mubr.msk.f32.gmra.mrb[2].mxu0 %vm526_vm8, %v643_v45 }
 0x17b   : > { %v1642_v46 = vpop.f32.mrb[0].mxu0 }
 0x17c   : > { %v734_v47 = vpop.f32.mrb[1].mxu0 }
 0x17d   : > { %v753_v48 = vpack.c.bf16 %v1642_v46, %v734_v47 }
 0x17f   : > { %757 = vrot.lane.b32.xlu0 %v753_v48, %s1905_s20  ;;  %v1645_v49 = vpop.f32.mrb[2].mxu0 }
 0x180   : > { %v744_v50 = vpop.f32.mrb[3].mxu0 }
 0x181   : > { %v754_v51 = vpack.c.bf16 %v1645_v49, %v744_v50  ;;  %v1910_v50 = vmov 0.0  }
 0x182   : > { %1670 = vmatprep.subr.bf16.mxu0 %v1910_v50  ;;  %1686 = vmatprep.mubr.msk.bf16.mxu0 %vm1913_vm2, %v1910_v50 }
 0x183   : > { %759 = vrot.lane.b32.xlu1 %v754_v51, %s1905_s20 }
 0x1f1   : > { %v758_v52 = vpop.permute.xlu0 %757 }
 0x1f2   : > { %1646 = vmatprep.subr.msk.bf16.mxu1 %vm1514_vm10, %v758_v52  ;;  %v764_v53 = vsel %vm761_vm9, 0, %v758_v52 }
 0x1f3   : > { %1647 = vmatpush3.bf16.msk.msra.mxu1 %vm1514_vm10, %v758_v52  ;;  %771 = vrot.lane.b32.xlu1 %v764_v53, %s2379_s21 }
 0x1f5   : > { %v760_v55 = vpop.permute.xlu1 %759 }
 0x1f6   : > { %1648 = vmatprep.subr.msk.bf16.mxu1 %vm1514_vm10, %v760_v55  ;;  %v767_v56 = vsel %vm761_vm9, 0, %v760_v55 }
 0x1f7   : > { %1649 = vmatpush3.bf16.msk.msra.mxu1 %vm1514_vm10, %v760_v55  ;;  %779 = vrot.lane.b32.xlu0 %v767_v56, %s2381_s29  ;;  %vm1320_vm10 = vcmask 1043456  }
 0x1f8   : > { %773 = vrot.lane.b32.xlu1 %v767_v56, %s2379_s21  ;;  %s404_s21 = sand.u32 1, %s1894_s24  }
 0x1fb   : > { %798 = vperm.xlu0 %1816, %v788_v58   ;;  %v1005_v58 = vld [vmem:[%s2371_s5 + $0x8] sm:$0xff] }
 0x1fc   : > { %777 = vrot.lane.b32.xlu1 %v764_v53, %s2381_s29  ;;  %s1539_s29 = sshll.u32 %s2008_s11, 4  ;;  %s1392_s11 = scalar_lea.sflag [#allocation4], %s404_s21 }
 0x200   : > { %793 = vperm.xlu1 %1815, %v787_v59   ;;  %v1004_v59 = vld [vmem:[%s2371_s5] sm:$0xff] }
 0x204   : > { %803 = vperm.xlu1 %1815, %v789_v60  }
 0x208   : > { %808 = vperm.xlu1 %1815, %v790_v61  }
 0x265   : > { %v772_v62 = vpop.permute.xlu1 %771 }
 0x266   : > { %1650 = vmatprep.subr.bf16.mxu1 %v772_v62 }
 0x267   : > { %1651 = vmatpush3.bf16.msra.mxu1 %v772_v62 }
 0x269   : > { %v780_v1 = vpop.permute.xlu0 %779 }
 0x26a   : > { %v774_v63 = vpop.permute.xlu1 %773 }
 0x26b   : > { %1652 = vmatprep.subr.bf16.mxu1 %v774_v63 }
 0x26c   : > { %1653 = vmatpush3.bf16.msra.mxu1 %v774_v63 }
 0x26e   : > { %v778_v0 = vpop.permute.xlu1 %777 }
 0x26f   : > { %1654 = vmatprep.subr.bf16.mxu1 %v778_v0 }
 0x270   : > { %1655 = vmatpush3.bf16.msra.mxu1 %v778_v0 }
 0x271   : > { %1656 = vmatprep.subr.bf16.mxu1 %v780_v1 }
 0x274   : > { %1657 = vmatpush3.bf16.msra.mxu1 %v780_v1 }
 0x275   : > { %1662 = vmatprep.subr.bf16.mxu1 %v1819_v3 }
 0x277   : > { %1659 = vmatmul.mubr.msk.bf16.vlgmr.msra.gmra.mrb[0].mxu1 %vm821_vm11, %v1818_v2  ;;  %vm1295_vm11 = vcmask 1031168  }
 0x278   : > { %1663 = vmatpush3.bf16.msra.mxu1 %v1819_v3 }
 0x279   : > { %1664 = vmatprep.subr.bf16.mxu1 %v1820_v4 }
 0x27a   : > { %v799_v12 = vpop.permute.xlu0 %798 }
 0x27c   : > { %1665 = vmatpush3.bf16.msra.mxu1 %v1820_v4  ;;  %v1821_v4 = vld [vmem:[%s2370_s4] sm:$0xff]  }
 0x27d   : > { %1690 = vmatprep.subr.bf16.mxu1 %v1910_v50 }
 0x27f   : > { %v794_v6 = vpop.permute.xlu1 %793 }
 0x283   : > { %v804_v7 = vpop.permute.xlu1 %803 }
 0x287   : > { %v809_v13 = vpop.permute.xlu1 %808 }
 0x34a   : > { %v1660_v9 = vpop.f32.mrb[0].mxu1 }
 0x34b   : > { %v871_v10 = vadd.f32 %v1660_v9, %v804_v7  ;;  %v862_v11 = vpop.f32.mrb[1].mxu1  ;;  %v1823_v7 = vld [vmem:[%s2375_s9 + $0x8] sm:$0xff]   ;;  %v1824_v9 = vld [vmem:[%s2375_s9 + $0x10] sm:$0xff]  }
 0x34c   : > { %v863_v14 = vadd.f32 %v862_v11, %v794_v6  ;;  %v1661_v15 = vpop.f32.mrb[2].mxu1  ;;  %v1822_v6 = vld [vmem:[%s2375_s9] sm:$0xff]  }
 0x34d   : > { %v883_v16 = vmin.f32 %v871_v10, 0.0  ;;  %v874_v17 = vadd.f32 %v1661_v15, %v809_v13  ;;  %v865_v18 = vpop.f32.mrb[3].mxu1  ;;  %vm879_vm12 = vcmp.gt.f32.partialorder %v871_v10, 0.0 }
 0x34e   : > { %v881_v19 = vmin.f32 %v863_v14, 0.0  ;;  %v866_v20 = vadd.f32 %v865_v18, %v799_v12  ;;  %vm877_vm14 = vcmp.gt.f32.partialorder %v863_v14, 0.0 }
 0x34f   : > { %v889_v21 = vmul.f32 1.442695, %v883_v16  ;;  %v884_v22 = vmin.f32 %v874_v17, 0.0  ;;  %vm880_vm13 = vcmp.gt.f32.partialorder %v874_v17, 0.0 }
 0x350   : > { %v885_v23 = vmul.f32 1.442695, %v881_v19  ;;  %v882_v24 = vmin.f32 %v866_v20, 0.0  ;;  %vm878_vm15 = vcmp.gt.f32.partialorder %v866_v20, 0.0 }
 0x351   : > { %1826 = vpow2.f32 %v889_v21  ;;  %v891_v25 = vmul.f32 1.442695, %v884_v22 }
 0x352   : > { %1828 = vpow2.f32 %v885_v23  ;;  %v887_v26 = vmul.f32 1.442695, %v882_v24 }
 0x353   : > { %1830 = vpow2.f32 %v891_v25 }
 0x354   : > { %1832 = vpow2.f32 %v887_v26 }
 0x35b   : > { %v1827_v27 = vpop.eup %1826 }
 0x35c   : > { %v1829_v28 = vpop.eup %1828  ;;  %v1522_v29 = vadd.f32 -1.0, %v1827_v27 }
 0x35d   : > { %v1831_v30 = vpop.eup %1830  ;;  %v1520_v31 = vadd.f32 -1.0, %v1829_v28 }
 0x35e   : > { %v1833_v32 = vpop.eup %1832  ;;  %v1523_v33 = vadd.f32 -1.0, %v1831_v30  ;;  %v899_v35 = vsel %vm879_vm12, %v871_v10, %v1522_v29  ;;  %v1825_v10 = vld [vmem:[%s2375_s9 + $0x18] sm:$0xff]   ;;  %vm1306_vm12 = vcmask 1014784  }
 0x35f   : > { %v1521_v34 = vadd.f32 -1.0, %v1833_v32  ;;  %v897_v37 = vsel %vm877_vm14, %v863_v14, %v1520_v31  ;;  %vm1318_vm14 = vcmask 998400  }
 0x360   : > { %v900_v36 = vsel %vm880_vm13, %v874_v17, %v1523_v33  ;;  %vm1312_vm13 = vcmask 1006592  }
 0x361   : > { %v902_v38 = vpack.c.bf16 %v900_v36, %v899_v35  ;;  %v898_v39 = vsel %vm878_vm15, %v866_v20, %v1521_v34  ;;  %vm1343_vm15 = vcmask 457728  }
 0x362   : > { %v901_v40 = vpack.c.bf16 %v898_v39, %v897_v37 }
 0x364   : > { %1666 = vmatprep.mubr.msk.bf16.mxu1 %vm919_vm0, %v901_v40 }
 0x365   : > { %1667 = vmatmul.mubr.msk.bf16.vlgmr.msra.gmra.mrb[4].mxu1 %vm919_vm0, %v902_v38 }
 0x366   : > { %1698 = vmatprep.mubr.msk.bf16.mxu1 %vm1913_vm2, %v1910_v50  ;;  %1691 = vmatpush3.bf16.msra.mxu1 %v1822_v6 }
 0x367   : > { %1692 = vmatprep.subr.bf16.mxu1 %v1910_v50 }
 0x36a   : > { %1693 = vmatpush3.bf16.msra.mxu1 %v1823_v7 }
 0x36b   : > { %1694 = vmatprep.subr.bf16.mxu1 %v1910_v50 }
 0x36e   : > { %1695 = vmatpush3.bf16.msra.mxu1 %v1824_v9 }
 0x36f   : > { %1696 = vmatprep.subr.bf16.mxu1 %v1910_v50 }
 0x372   : > { %1697 = vmatpush3.bf16.msra.mxu1 %v1825_v10 }
 0x373   : > { %1702 = vmatprep.subr.bf16.mxu1 %v1910_v50 }
 0x438   : > { %v1668_v41 = vpop.f32.mrb[4].mxu1 }
 0x439   : > { %v960_v42 = vpop.f32.mrb[5].mxu1 }
 0x43a   : > { %v1669_v43 = vpop.f32.mrb[6].mxu1 }
 0x43b   : > { %v976_v44 = vpack.c.bf16 %v1669_v43, %v1668_v41  ;;  %v963_v45 = vpop.f32.mrb[7].mxu1  ;;  %v1198_v43 = vld [vmem:[%s2374_s8] sm:$0xff] }
 0x43c   : > { %v975_v46 = vpack.c.bf16 %v963_v45, %v960_v42 }
 0x43d   : > { %981 = vrot.lane.b32.xlu1 %v976_v44, %s1909_s22 }
 0x43e   : > { %979 = vrot.lane.b32.xlu0 %v975_v46, %s1909_s22 }
 0x4af   : > { %v982_v47 = vpop.permute.xlu1 %981 }
 0x4b0   : > { %v987_v48 = vsel %vm983_vm1, 0, %v982_v47  ;;  %v980_v49 = vpop.permute.xlu0 %979 }
 0x4b1   : > { %v985_v51 = vsel %vm983_vm1, 0, %v980_v49  ;;  %992 = vrot.lane.b32.xlu1 %v987_v48, %s1911_s27 }
 0x4b2   : > { %990 = vrot.lane.b32.xlu0 %v985_v51, %s1911_s27 }
 0x4b5   : > { %996 = vrot.lane.b32.xlu1 %v987_v48, %s1905_s20 }
 0x4b6   : > { %994 = vrot.lane.b32.xlu0 %v985_v51, %s1905_s20 }
 0x4b9   : > { %1000 = vrot.lane.b32.xlu1 %v987_v48, %s1909_s22 }
 0x4ba   : > { %998 = vrot.lane.b32.xlu0 %v985_v51, %s1909_s22 }
 0x4bd   : > { %1024 = vrot.lane.b32.xlu1 %v987_v48, %s1912_s30 }
 0x4be   : > { %1022 = vrot.lane.b32.xlu0 %v985_v51, %s1912_s30 }
 0x523   : > { %v993_v52 = vpop.permute.xlu1 %992 }
 0x524   : > { %1028 = vrot.lane.b32.xlu1 %v993_v52, %s1912_s30  ;;  %v991_v53 = vpop.permute.xlu0 %990 }
 0x525   : > { %1026 = vrot.lane.b32.xlu0 %v991_v53, %s1912_s30 }
 0x527   : > { %v997_v54 = vpop.permute.xlu1 %996 }
 0x528   : > { %1032 = vrot.lane.b32.xlu1 %v997_v54, %s1912_s30  ;;  %v995_v55 = vpop.permute.xlu0 %994 }
 0x529   : > { %1030 = vrot.lane.b32.xlu0 %v995_v55, %s1912_s30 }
 0x52b   : > { %v1001_v56 = vpop.permute.xlu1 %1000 }
 0x52c   : > { %1036 = vrot.lane.b32.xlu1 %v1001_v56, %s1912_s30  ;;  %v999_v57 = vpop.permute.xlu0 %998  ;;  %v1197_v56 = vld [vmem:[%s2373_s7] sm:$0xf] }
 0x52d   : > { %1034 = vrot.lane.b32.xlu0 %v999_v57, %s1912_s30 }
 0x52f   : > { %v1025_v61 = vpop.permute.xlu1 %1024 }
 0x530   : > { %1013 = vperm.xlu1 %1815, %v1005_v58   ;;  %v1023_v60 = vpop.permute.xlu0 %1022 }
 0x531   : > { %1008 = vperm.xlu0 %1816, %v1004_v59   ;;  %1671 = vmatpush3.bf16.msra.mxu0 %v1023_v60 }
 0x532   : > { %1672 = vmatprep.subr.bf16.mxu0 %v1910_v50 }
 0x535   : > { %1673 = vmatpush3.bf16.msra.mxu0 %v1025_v61 }
 0x536   : > { %1674 = vmatprep.subr.bf16.mxu0 %v1910_v50 }
 0x596   : > { %v1029_v63 = vpop.permute.xlu1 %1028 }
 0x597   : > { %v1027_v62 = vpop.permute.xlu0 %1026 }
 0x598   : > { %1675 = vmatpush3.bf16.msra.mxu0 %v1027_v62 }
 0x599   : > { %1676 = vmatprep.subr.bf16.mxu0 %v1910_v50 }
 0x59a   : > { %v1033_v1 = vpop.permute.xlu1 %1032 }
 0x59b   : > { %v1031_v0 = vpop.permute.xlu0 %1030 }
 0x59c   : > { %1677 = vmatpush3.bf16.msra.mxu0 %v1029_v63 }
 0x59d   : > { %1678 = vmatprep.subr.bf16.mxu0 %v1910_v50 }
 0x59e   : > { %v1037_v3 = vpop.permute.xlu1 %1036 }
 0x59f   : > { %v1035_v2 = vpop.permute.xlu0 %1034 }
 0x5a0   : > { %1679 = vmatpush3.bf16.msra.mxu0 %v1031_v0 }
 0x5a1   : > { %1680 = vmatprep.subr.bf16.mxu0 %v1910_v50 }
 0x5a4   : > { %1681 = vmatpush3.bf16.msra.mxu0 %v1033_v1 }
 0x5a5   : > { %1682 = vmatprep.subr.bf16.mxu0 %v1910_v50 }
 0x5a8   : > { %1683 = vmatpush3.bf16.msra.mxu0 %v1035_v2 }
 0x5a9   : > { %1684 = vmatprep.subr.bf16.mxu0 %v1910_v50 }
 0x5ac   : > { %1685 = vmatpush3.bf16.msra.mxu0 %v1037_v3 }
 0x5ad   : > { %1714 = vmatprep.subr.bf16.mxu0 %v1910_v50 }
 0x5af   : > { %1687 = vmatmul.mubr.bf16.vlgmr.msra.gmra.mrb[4].mxu0 %v1821_v4  ;;  %v1014_v15 = vpop.permute.xlu1 %1013 }
 0x5b0   : > { %1722 = vmatprep.mubr.msk.bf16.mxu0 %vm1913_vm2, %v1910_v50  ;;  %v1009_v11 = vpop.permute.xlu0 %1008 }
 0x682   : > { %v1080_v12 = vpop.f32.mrb[4].mxu0 }
 0x683   : > { %v1081_v13 = vadd.f32 %v1080_v12, %v1009_v11  ;;  %v1688_v14 = vpop.f32.mrb[5].mxu0  ;;  %v1333_v11 = vld [vmem:[#allocation2] sm:$0x1] }
 0x684   : > { %v1083_v16 = vpop.f32.mrb[6].mxu0 }
 0x685   : > { %v1089_v17 = vmin.f32 %v1081_v13, 0.0  ;;  %v1084_v18 = vadd.f32 %v1083_v16, %v1014_v15  ;;  %v1689_v19 = vpop.f32.mrb[7].mxu0  ;;  %vm1087_vm3 = vcmp.gt.f32.partialorder %v1081_v13, 0.0 }
 0x687   : > { %v1091_v20 = vmul.f32 1.442695, %v1089_v17  ;;  %v1090_v21 = vmin.f32 %v1084_v18, 0.0  ;;  %vm1088_vm4 = vcmp.gt.f32.partialorder %v1084_v18, 0.0 }
 0x689   : > { %1834 = vpow2.f32 %v1091_v20  ;;  %v1093_v22 = vmul.f32 1.442695, %v1090_v21 }
 0x68b   : > { %1836 = vpow2.f32 %v1093_v22 }
 0x693   : > { %v1835_v23 = vpop.eup %1834 }
 0x694   : > { %v1529_v24 = vadd.f32 -1.0, %v1835_v23 }
 0x695   : > { %v1837_v25 = vpop.eup %1836 }
 0x696   : > { %v1530_v26 = vadd.f32 -1.0, %v1837_v25  ;;  %v1097_v27 = vsel %vm1087_vm3, %v1081_v13, %v1529_v24 }
 0x698   : > { %v1098_v28 = vsel %vm1088_vm4, %v1084_v18, %v1530_v26 }
 0x699   : > { %v1099_v29 = vpack.c.bf16 %v1098_v28, %v1097_v27 }
 0x69b   : > { %1699 = vmatmul.mubr.msk.bf16.vlgmr.msra.gmra.mrb[8].mxu1 %vm526_vm8, %v1099_v29 }
 0x69c   : > { %1710 = vmatprep.mubr.msk.bf16.mxu1 %vm1913_vm2, %v1910_v50 }
 0x76e   : > { %v1169_v30 = vpop.f32.mrb[8].mxu1 }
 0x76f   : > { %v1700_v31 = vpop.f32.mrb[9].mxu1 }
 0x770   : > { %v1172_v32 = vpop.f32.mrb[10].mxu1 }
 0x771   : > { %v1176_v33 = vpack.c.bf16 %v1172_v32, %v1169_v30  ;;  %v1701_v34 = vpop.f32.mrb[11].mxu1 }
 0x772   : > { %v1332_v34 = vld [vmem:[%s2376_s10] sm:$0x1] }
 0x773   : > { %1178 = vrot.lane.b32.xlu0 %v1176_v33, %s1909_s22 }
 0x7e5   : > { %v1179_v35 = vpop.permute.xlu0 %1178 }
 0x7e6   : > { %1185 = vrot.lane.b32.xlu0 %v1179_v35, %s1911_s27  ;;  %v1181_v36 = vsel %vm983_vm1, 0, %v1179_v35 }
 0x7e7   : > { %1183 = vrot.lane.b32.xlu1 %v1181_v36, %s1911_s27  ;;  %s1914_s27 = smov 6  }
 0x7ea   : > { %1191 = vrot.lane.b32.xlu0 %v1179_v35, %s1905_s20 }
 0x7eb   : > { %1189 = vrot.lane.b32.xlu1 %v1181_v36, %s1905_s20 }
 0x7ee   : > { %1204 = vrot.lane.b32.xlu0 %v1181_v36, %s1912_s30 }
 0x7ef   : > { %1195 = vrot.lane.b32.xlu1 %v1181_v36, %s1909_s22  ;;  %s405_s22 = scalar_lea.vmem [#allocation3], %s404_s21 }
 0x7f3   : > { %1206 = vrot.lane.b32.xlu1 %v1179_v35, %s1912_s30 }
 0x858   : > { %v1186_v37 = vpop.permute.xlu0 %1185 }
 0x859   : > { %v1184_v38 = vpop.permute.xlu1 %1183 }
 0x85a   : > { %1208 = vrot.lane.b32.xlu0 %v1184_v38, %s1912_s30  ;;  %v1188_v39 = vsel %vm1187_vm5, %v1184_v38, %v1186_v37 }
 0x85b   : > { %1210 = vrot.lane.b32.xlu1 %v1188_v39, %s1912_s30 }
 0x85c   : > { %v1192_v40 = vpop.permute.xlu0 %1191 }
 0x85d   : > { %v1190_v41 = vpop.permute.xlu1 %1189 }
 0x85e   : > { %1212 = vrot.lane.b32.xlu0 %v1190_v41, %s1912_s30  ;;  %v1194_v42 = vsel %vm761_vm9, %v1190_v41, %v1192_v40  ;;  %vm1279_vm9 = vcmask 48128  }
 0x85f   : > { %1214 = vrot.lane.b32.xlu1 %v1194_v42, %s1912_s30 }
 0x860   : > { %v1205_v45 = vpop.permute.xlu0 %1204 }
 0x861   : > { %v1196_v44 = vpop.permute.xlu1 %1195 }
 0x862   : > { %1216 = vrot.lane.b32.xlu0 %v1196_v44, %s1912_s30 }
 0x863   : > { %1201 = vperm.xlu1 %1815, %v1198_v43  }
 0x865   : > { %v1207_v46 = vpop.permute.xlu1 %1206 }
 0x866   : > { %v1219_v47 = vsel %vm1218_vm6, %v1205_v45, %v1207_v46 }
 0x867   : > { %1703 = vmatpush3.bf16.msra.mxu1 %v1219_v47 }
 0x868   : > { %1704 = vmatprep.subr.bf16.mxu1 %v1910_v50 }
 0x8cc   : > { %v1209_v48 = vpop.permute.xlu0 %1208 }
 0x8cd   : > { %v1211_v49 = vpop.permute.xlu1 %1210 }
 0x8ce   : > { %v1220_v51 = vsel %vm1218_vm6, %v1209_v48, %v1211_v49 }
 0x8cf   : > { %1705 = vmatpush3.bf16.msra.mxu1 %v1220_v51 }
 0x8d0   : > { %v1213_v52 = vpop.permute.xlu0 %1212  ;;  %1706 = vmatprep.subr.bf16.mxu1 %v1910_v50 }
 0x8d1   : > { %v1215_v53 = vpop.permute.xlu1 %1214 }
 0x8d2   : > { %v1221_v54 = vsel %vm1218_vm6, %v1213_v52, %v1215_v53 }
 0x8d3   : > { %1707 = vmatpush3.bf16.msra.mxu1 %v1221_v54 }
 0x8d4   : > { %1708 = vmatprep.subr.bf16.mxu1 %v1910_v50  ;;  %v1217_v55 = vpop.permute.xlu0 %1216 }
 0x8d7   : > { %1709 = vmatpush3.bf16.msra.mxu1 %v1217_v55 }
 0x8da   : > { %1711 = vmatmul.mubr.msk.bf16.vlgmr.msra.gmra.mrb[12].mxu1 %vm526_vm8, %v1197_v56  ;;  %vm1289_vm8 = vcmask 1039360  }
 0x8e2   : > { %v1202_v57 = vpop.permute.xlu1 %1201 }
 0x9ad   : > { %v1263_v58 = vpop.f32.mrb[12].mxu1 }
 0x9ae   : > { %v1264_v59 = vadd.f32 %v1263_v58, %v1202_v57  ;;  %v1712_v60 = vpop.f32.mrb[13].mxu1 }
 0x9af   : > { %v1266_v61 = vpop.f32.mrb[14].mxu1 }
 0x9b0   : > { %v1270_v62 = vmin.f32 %v1264_v59, 0.0  ;;  %v1713_v63 = vpop.f32.mrb[15].mxu1  ;;  %vm1269_vm7 = vcmp.gt.f32.partialorder %v1264_v59, 0.0 }
 0x9b2   : > { %v1271_v0 = vmul.f32 1.442695, %v1270_v62 }
 0x9b4   : > { %1838 = vpow2.f32 %v1271_v0 }
 0x9be   : > { %v1839_v1 = vpop.eup %1838 }
 0x9bf   : > { %v1537_v2 = vadd.f32 -1.0, %v1839_v1 }
 0x9c1   : > { %v1274_v3 = vsel %vm1269_vm7, %v1264_v59, %v1537_v2 }
 0x9c2   : > { %v1275_v4 = vpack.c.bf16 %v1274_v3, %v1274_v3 }
 0x9c4   : > { %1277 = vrot.lane.b32.xlu0 %v1275_v4, %s1914_s27  ;;  %s1404_s27 = sshll.u32 %s405_s22, 4  ;;  %s2326_s27 = int_to_ptr.vmem [resolvable:$true] %s1404_s27 }
 0xa36   : > { %v1278_v6 = vpop.permute.xlu0 %1277 }
 0xa37   : > { %1293 = vrot.lane.b32.xlu0 %v1278_v6, %s2398_s17  ;;  %v1281_v7 = vsel %vm1279_vm9, 0, %v1278_v6  ;;  %v1284_v9 = vrot.slane %v1278_v6, 4 }
 0xa38   : > { %1291 = vrot.lane.b32.xlu1 %v1281_v7, %s2398_s17  ;;  %v1283_v10 = vrot.slane %v1281_v7, 4 }
 0xa3b   : > { %1304 = vrot.lane.b32.xlu0 %v1278_v6, %s1915_s18 }
 0xa3c   : > { %1302 = vrot.lane.b32.xlu1 %v1281_v7, %s1915_s18 }
 0xa3f   : > { %1287 = vrot.lane.b32.xlu0 %v1284_v9, %s2399_s19 }
 0xa40   : > { %1285 = vrot.lane.b32.xlu1 %v1283_v10, %s2399_s19  ;;  %s2324_s19 = scalar_lea.hbm %s2378_s12, %s1539_s29 }
 0xa43   : > { %1299 = vrot.lane.b32.xlu0 %v1284_v9, %s1912_s30 }
 0xa44   : > { %1297 = vrot.lane.b32.xlu1 %v1283_v10, %s1912_s30 }
 0xa47   : > { %1310 = vrot.lane.b32.xlu0 %v1284_v9, %s1916_s13 }
 0xa48   : > { %1308 = vrot.lane.b32.xlu1 %v1283_v10, %s1916_s13  ;;  %s1840_s13 = scalar_lea.vmem %s2326_s27, 16 }
 0xa49   : > { %p1841_p11 = scmp.ne.s32.totalorder %s2326_s27, %s1840_s13 }
 0xa4b   : > { %1316 = vrot.lane.b32.xlu0 %v1278_v6, %s1917_s16  ;;  %p1842_p12 = pnand %p1841_p11, %p2025_p5 }
 0xa4c   : > { %1314 = vrot.lane.b32.xlu1 %v1281_v7, %s1917_s16  ;;  %s1918_s16 = smov [#allocation3]  }
 0xa4d   : > { %p1843_p13 = pneg %p1842_p12  ;;  %s1844_s30 = sshll.u32 %s1918_s16, 4  ;;  %s1845_s30 = int_to_ptr.vmem [resolvable:$false] %s1844_s30 }
 0xa4e   : > { %s1846_s20 = scalar_lea.vmem %s1845_s30, 32  ;;  %p1847_p0 = scmp.lt.s32.totalorder %s2326_s27, %s1845_s30 }
 0xa4f   : > { %p1848_p1 = scmp.lt.s32.totalorder %s1846_s20, %s1840_s13 }
 0xa50   : > { %1336 = vperm.xlu1 %1815, %v1333_v11  }
 0xa51   : > { %p1849_p2 = por %p1848_p1, %p1847_p0 }
 0xa53   : > { %p1850_p3 = pnand %p1849_p2, %p1843_p13 }
 0xaa9   : > { %v1294_v12 = vpop.permute.xlu0 %1293 }
 0xaaa   : > { %v1292_v13 = vpop.permute.xlu1 %1291 }
 0xaab   : > { %v1296_v22 = vsel %vm1295_vm11, %v1292_v13, %v1294_v12 }
 0xaad   : > { %v1305_v14 = vpop.permute.xlu0 %1304 }
 0xaae   : > { %v1303_v15 = vpop.permute.xlu1 %1302 }
 0xaaf   : > { %v1307_v27 = vsel %vm1306_vm12, %v1303_v15, %v1305_v14 }
 0xab1   : > { %v1288_v16 = vpop.permute.xlu0 %1287 }
 0xab2   : > { %v1286_v17 = vpop.permute.xlu1 %1285 }
 0xab3   : > { %v1290_v18 = vsel %vm1289_vm8, %v1286_v17, %v1288_v16 }
 0xab4   : > { %v1322_v19 = vsel %vm1320_vm10, %v1281_v7, %v1290_v18 }
 0xab5   : > { %1715 = vmatpush3.bf16.msra.mxu0 %v1322_v19  ;;  %v1300_v20 = vpop.permute.xlu0 %1299 }
 0xab6   : > { %v1298_v21 = vpop.permute.xlu1 %1297  ;;  %1716 = vmatprep.subr.bf16.mxu0 %v1910_v50 }
 0xab7   : > { %v1301_v23 = vsel %vm1218_vm6, %v1298_v21, %v1300_v20 }
 0xab8   : > { %v1326_v24 = vsel %vm1320_vm10, %v1296_v22, %v1301_v23 }
 0xab9   : > { %1717 = vmatpush3.bf16.msra.mxu0 %v1326_v24  ;;  %v1311_v25 = vpop.permute.xlu0 %1310 }
 0xaba   : > { %v1309_v26 = vpop.permute.xlu1 %1308  ;;  %1718 = vmatprep.subr.bf16.mxu0 %v1910_v50 }
 0xabb   : > { %v1313_v28 = vsel %vm1312_vm13, %v1309_v26, %v1311_v25 }
 0xabc   : > { %v1330_v29 = vsel %vm1320_vm10, %v1307_v27, %v1313_v28 }
 0xabd   : > { %1719 = vmatpush3.bf16.msra.mxu0 %v1330_v29  ;;  %v1317_v30 = vpop.permute.xlu0 %1316 }
 0xabe   : > { %v1315_v31 = vpop.permute.xlu1 %1314  ;;  %1720 = vmatprep.subr.bf16.mxu0 %v1910_v50 }
 0xabf   : > { %v1319_v32 = vsel %vm1318_vm14, %v1315_v31, %v1317_v30 }
 0xac0   : > { %v1348_v33 = vsel %vm1320_vm10, %v1319_v32, 0 }
 0xac1   : > { %1721 = vmatpush3.bf16.msra.mxu0 %v1348_v33 }
 0xac4   : > { %1723 = vmatmul.mubr.msk.bf16.vlgmr.msra.gmra.mrb[8].mxu0 %vm1343_vm15, %v1332_v34 }
 0xacf   : > { %v1337_v35 = vpop.permute.xlu1 %1336 }
 0xad0   : > { %v1342_v36 = vrot.slane %v1337_v35, %v423_v8 }
 0xb97   : > { %v1384_v50 = vpop.f32.mrb[8].mxu0 }
 0xb98   : > { %v1385_v37 = vadd.f32 %v1384_v50, %v1342_v36  ;;  %v1724_v38 = vpop.f32.mrb[9].mxu0 }
 0xb99   : > { %v1387_v39 = vpop.f32.mrb[10].mxu0 }
 0xb9a   : > { %1390 = vst [vmem:[%s405_s22] sm:$0x1] %v1385_v37  ;;  %v1725_v40 = vpop.f32.mrb[11].mxu0 }
 0xb9b   : > { %1853 = shalt.err (!%p1850_p3)
}
 0xb9c   : > { %s1854_s21 = scalar_lea.hbm %s2324_s19, 16  ;;  %s1858_s17 = scalar_lea.hbm %s2378_s12, 32 }
 0xb9d   : > { %p1855_p4 = scmp.ne.s32.totalorder %s2324_s19, %s1854_s21  ;;  %p1859_p9 = scmp.lt.u32.totalorder %s2324_s19, %s2378_s12 }
 0xb9e   : > { %p1860_p10 = scmp.lt.u32.totalorder %s1858_s17, %s1854_s21  ;;  %p1862_p12 = scmp.lt.u32.totalorder %s1854_s21, %s2324_s19 }
 0xb9f   : > { %p1856_p7 = pnand %p1855_p4, %p2025_p5 }
 0xba0   : > { %p1861_p11 = por %p1860_p10, %p1859_p9 }
 0xba1   : > { %p1857_p8 = pneg %p1856_p7 }
 0xba2   : > { %p1863_p13 = por %p1862_p12, %p1861_p11 }
 0xba4   : > { %p1864_p0 = pnand %p1863_p13, %p1857_p8 }
 0xba6   : > { %1867 = shalt.err (!%p1864_p0)
}
 0xba7   : > { %1762 = dma.vmem_to_hbm [thread:$0]  (%p2025_p5), %s2326_s27, 16, %s2324_s19, %s1392_s11  }
 0xba8 PF: > { %p1768_p1 = scmp.ge.s32.totalorder %s1902_s26, 2  ;;  %s1416_s13 = sand.u32 1, %s1890_s23  }
 0xba9   : > { %s1417_s30 = scalar_lea.sflag [#allocation4], %s1416_s13 }
 0xbaa   : > { %p1765_p2 = pnand %p1768_p1, %p2029_p6 }
 0xbac   : > { %1885 = dma.done.wait (!%p1765_p2), %s1417_s30, 16  }
 0xbad   : > { %1887 = vsyncadd (!%p1765_p2), %s1417_s30, 4294967280  ;;  %s2400_s20 = sld [smem:[#allocation6_spill]]  ;;  %p24_p3 = scmp.ge.s32.totalorder %s2012_s28, 4  }
 0xbae   : > { %s2401_s23 = smov %s1894_s24  ;;  %s2402_s24 = smov %s1898_s25 }
 0xbaf   : > { %s2404_s26 = smov %s2012_s28  ;;  %26 = sbr.rel (!%p24_p3) target bundleno = 6 (0x6), region = 104 }
 0xbb3   : > { %s2403_s25 = smov %s2400_s20 }
 0xbb6   :  { %1421 = vsyncpa [#allocation4], 1 }
 0xbb7   :  { %1423 = vsyncpa [#allocation4 + $0x1], 1 }

// kernel: _forward_impl.2
= control target key start
LH: loop header
LB: loop body
LE: loop exit
PB: predicated region body
PF: predicated region fallthrough
CT: control target
= control target key end

     0   :  { %s3235_s0 = inlined_call_operand.vmem [shape: f32[2,8,128], index: 0, kind: input, shape index: {}]   ;;  %s3236_s1 = inlined_call_operand.hbm [shape: bf16[8,56], index: 1, kind: input, shape index: {}]   ;;  %s3237_s2 = inlined_call_operand.hbm [shape: f32[8,1], index: 2, kind: input, shape index: {}]   ;;  %s3238_s3 = inlined_call_operand.vmem [shape: bf16[16,32], index: 3, kind: input, shape index: {}]   ;;  %s3239_s4 = inlined_call_operand.hbm [shape: f32[16,1], index: 4, kind: input, shape index: {}]   ;;  %s3240_s5 = inlined_call_operand.vmem [shape: bf16[128,64], index: 5, kind: input, shape index: {}]   ;;  %s3241_s6 = inlined_call_operand.vmem [shape: bf16[32,64], index: 6, kind: input, shape index: {}]   ;;  %s3242_s7 = inlined_call_operand.vmem [shape: f32[32,1], index: 7, kind: input, shape index: {}]   ;;  %s3243_s8 = inlined_call_operand.vmem [shape: bf16[64,32], index: 8, kind: input, shape index: {}]   ;;  %s3244_s9 = inlined_call_operand.vmem [shape: bf16[32,96], index: 9, kind: input, shape index: {}]   ;;  %s3245_s10 = inlined_call_operand.hbm [shape: f32[32,1], index: 10, kind: input, shape index: {}]   ;;  %s3246_s11 = inlined_call_operand.vmem [shape: f32[2,64,32], index: 11, kind: input, shape index: {}]   ;;  %s3247_s12 = inlined_call_operand.hbm [shape: f32[2,64,1], index: 12, kind: input, shape index: {}]   ;;  %s3248_s13 = inlined_call_operand.vmem [shape: s32[2,2,32], index: 13, kind: output, shape index: {}]  }
   0x1   :  { %3252 = sst [smem:[#allocation14_spill]] %s3237_s2 }
   0x2   :  { %18 = vsyncpa [#allocation3], 0 }
   0x3   :  { %19 = vsyncpa [#allocation5], 0 }
   0x4   :  { %20 = vsyncpa [#allocation8], 0  ;;  %s2745_s25 = smov 0  }
   0x5 LB: > { %3253 = sst [smem:[#allocation13_spill]] %s2654_s25  ;;  %s2656_s26 = smov [#allocation4]   ;;  %s2654_s25 = sphi %s2745_s25, %s26_s25  }
   0x6   : > { %s359_s27 = sshll.u32 %s2656_s26, 4  ;;  %s2751_s28 = sadd.s32 4294967295, %s2654_s25   ;;  %s2756_s27 = int_to_ptr.vmem [resolvable:$true] %s359_s27 }
   0x7   : > { %p2033_p0 = scmp.ge.s32.totalorder %s2654_s25, 1  ;;  %p335_p1 = scmp.lt.s32.totalorder %s2654_s25, 3 }
   0x8   : > { %p3250_p2 = scmp.eq.s32.totalorder %s2751_s28, 0  ;;  %s2657_s30 = smov [#allocation7]  }
   0x9   : > { %p2758_p3 = pnand %p2033_p0, %p335_p1  ;;  %s400_s14 = sshll.u32 %s2657_s30, 4  ;;  %s2764_s14 = int_to_ptr.vmem [resolvable:$true] %s400_s14 }
   0xa   : > { %s2658_s16 = smov [#allocation2]   ;;  %s2659_s18 = smov [#allocation6]  }
   0xb   : > { %s3254_s29 = scalar_select %p2758_p3, 1, 0 }
   0xc   : > { %p2410_p4 = pneg %p2758_p3  ;;  %s348_s17 = sshll.u32 %s2658_s16, 4  ;;  %s2772_s17 = int_to_ptr.vmem [resolvable:$true] %s348_s17 }
   0xd   : > { %s2774_s19 = sshll.u32 %s2659_s18, 4  ;;  %s3256_s2 = sld [smem:[#allocation14_spill]]  ;;  %s373_s19 = int_to_ptr.vmem [resolvable:$true] %s2774_s19 }
   0xe   : > { %p2768_p5 = pnand %p3250_p2, %p2410_p4 }
  0x10   : > { %p2784_p7 = pneg %p2768_p5 }
  0x13   : > { %s2496_s22 = scalar_lea.hbm %s3256_s2, 128 }
  0x14   : > { %p2497_p6 = scmp.ne.s32.totalorder %s3256_s2, %s2496_s22  ;;  %p2503_p10 = scmp.lt.u32.totalorder %s2496_s22, %s3256_s2 }
  0x16   : > { %p2499_p8 = pnand %p2784_p7, %p2497_p6 }
  0x18   : > { %p2500_p9 = pneg %p2499_p8 }
  0x1a   : > { %p2505_p11 = pnand %p2503_p10, %p2500_p9 }
  0x1c   : > { %2508 = shalt.err (!%p2505_p11)
}
  0x1d   : > { %s2509_s18 = scalar_lea.vmem %s2756_s27, 128  ;;  %p2517_p1 = scmp.lt.s32.totalorder %s2756_s27, %s2756_s27 }
  0x1e   : > { %p2510_p12 = scmp.ne.s32.totalorder %s2756_s27, %s2509_s18  ;;  %p2518_p4 = scmp.lt.s32.totalorder %s2509_s18, %s2509_s18 }
  0x20   : > { %p2512_p13 = pnand %p2510_p12, %p2784_p7  ;;  %p2519_p6 = por %p2518_p4, %p2517_p1 }
  0x22   : > { %p2513_p0 = pneg %p2512_p13 }
  0x24   : > { %p2520_p8 = pnand %p2519_p6, %p2513_p0 }
  0x26   : > { %2523 = shalt.err (!%p2520_p8)
}
  0x27   : > { %2416 = dma.hbm_to_vmem [thread:$0]  (!%p2768_p5), %s3256_s2, 128, %s2756_s27, [#allocation5]  }
  0x28   : > { %s2524_s24 = scalar_lea.hbm %s3245_s10, 512 }
  0x29   : > { %p2525_p9 = scmp.ne.s32.totalorder %s3245_s10, %s2524_s24  ;;  %p2531_p12 = scmp.lt.u32.totalorder %s2524_s24, %s3245_s10 }
  0x2b   : > { %p2527_p10 = pnand %p2525_p9, %p2784_p7 }
  0x2d   : > { %p2528_p11 = pneg %p2527_p10 }
  0x2f   : > { %p2533_p13 = pnand %p2531_p12, %p2528_p11 }
  0x31   : > { %2536 = shalt.err (!%p2533_p13)
}
  0x32   : > { %s2537_s27 = scalar_lea.vmem %s2764_s14, 512  ;;  %p2545_p6 = scmp.lt.s32.totalorder %s2764_s14, %s2764_s14 }
  0x33   : > { %p2538_p0 = scmp.ne.s32.totalorder %s2764_s14, %s2537_s27  ;;  %p2546_p8 = scmp.lt.s32.totalorder %s2537_s27, %s2537_s27 }
  0x35   : > { %p2540_p1 = pnand %p2538_p0, %p2784_p7  ;;  %p2547_p9 = por %p2546_p8, %p2545_p6 }
  0x37   : > { %p2541_p4 = pneg %p2540_p1 }
  0x39   : > { %p2548_p10 = pnand %p2547_p9, %p2541_p4 }
  0x3b   : > { %2551 = shalt.err (!%p2548_p10)
}
  0x3c   : > { %s2660_s20 = smov 128   ;;  %s2661_s25 = smov 8  }
  0x3d   : > { %2422 = dma.hbm_to_vmem [thread:$0]  (!%p2768_p5), %s3245_s10, 512, %s2764_s14, [#allocation8], %s2660_s20, %s2660_s20, %s2661_s25  }
  0x3e   : > { %s2552_s30 = scalar_lea.hbm %s3236_s1, 64 }
  0x3f   : > { %p2553_p11 = scmp.ne.s32.totalorder %s3236_s1, %s2552_s30  ;;  %p2559_p0 = scmp.lt.u32.totalorder %s2552_s30, %s3236_s1 }
  0x41   : > { %p2555_p12 = pnand %p2553_p11, %p2784_p7 }
  0x43   : > { %p2556_p13 = pneg %p2555_p12 }
  0x45   : > { %p2561_p1 = pnand %p2559_p0, %p2556_p13 }
  0x47   : > { %2564 = shalt.err (!%p2561_p1)
}
  0x48   : > { %s2565_s14 = scalar_lea.vmem %s2772_s17, 64  ;;  %p2573_p9 = scmp.lt.s32.totalorder %s2772_s17, %s2772_s17 }
  0x49   : > { %p2566_p4 = scmp.ne.s32.totalorder %s2772_s17, %s2565_s14  ;;  %p2574_p10 = scmp.lt.s32.totalorder %s2565_s14, %s2565_s14 }
  0x4b   : > { %p2568_p6 = pnand %p2566_p4, %p2784_p7  ;;  %p2575_p11 = por %p2574_p10, %p2573_p9 }
  0x4d   : > { %p2569_p8 = pneg %p2568_p6 }
  0x4f   : > { %p2576_p12 = pnand %p2575_p11, %p2569_p8 }
  0x51   : > { %2579 = shalt.err (!%p2576_p12)
}
  0x52   : > { %2413 = dma.hbm_to_vmem [thread:$0]  (!%p2768_p5), %s3236_s1, 64, %s2772_s17, [#allocation3]  }
  0x53   : > { %s2580_s24 = scalar_lea.hbm %s3239_s4, 256 }
  0x54   : > { %p2581_p13 = scmp.ne.s32.totalorder %s3239_s4, %s2580_s24  ;;  %p2587_p4 = scmp.lt.u32.totalorder %s2580_s24, %s3239_s4 }
  0x56   : > { %p2583_p0 = pnand %p2581_p13, %p2784_p7 }
  0x58   : > { %p2584_p1 = pneg %p2583_p0 }
  0x5a   : > { %p2589_p6 = pnand %p2587_p4, %p2584_p1 }
  0x5c   : > { %2592 = shalt.err (!%p2589_p6)
}
  0x5d   : > { %s2593_s14 = scalar_lea.vmem %s373_s19, 256  ;;  %p2601_p11 = scmp.lt.s32.totalorder %s373_s19, %s373_s19 }
  0x5e   : > { %p2594_p8 = scmp.ne.s32.totalorder %s373_s19, %s2593_s14  ;;  %p2602_p12 = scmp.lt.s32.totalorder %s2593_s14, %s2593_s14 }
  0x60   : > { %p2596_p9 = pnand %p2594_p8, %p2784_p7  ;;  %p2603_p2 = por %p2602_p12, %p2601_p11 }
  0x62   : > { %p2597_p10 = pneg %p2596_p9 }
  0x64   : > { %p2604_p3 = pnand %p2603_p2, %p2597_p10 }
  0x66   : > { %2607 = shalt.err (!%p2604_p3)
}
  0x67   : > { %2419 = dma.hbm_to_vmem [thread:$0]  (!%p2768_p5), %s3239_s4, 256, %s373_s19, [#allocation5], %s2660_s20, %s2660_s20, %s2661_s25  }
  0x68   : > { %s2662_s21 = smov [#allocation9]   ;;  %s2608_s30 = scalar_lea.hbm %s3247_s12, 2048 }
  0x69   : > { %s416_s22 = sshll.u32 %s2662_s21, 4  ;;  %p2609_p2 = scmp.ne.s32.totalorder %s3247_s12, %s2608_s30  ;;  %s417_s22 = int_to_ptr.vmem [resolvable:$true] %s416_s22 }
  0x6a   : > { %p2615_p0 = scmp.lt.u32.totalorder %s2608_s30, %s3247_s12 }
  0x6b   : > { %p2611_p3 = pnand %p2609_p2, %p2784_p7 }
  0x6d   : > { %p2612_p13 = pneg %p2611_p3 }
  0x6f   : > { %p2617_p1 = pnand %p2615_p0, %p2612_p13 }
  0x71   : > { %2620 = shalt.err (!%p2617_p1)
}
  0x72   : > { %s2621_s19 = scalar_lea.vmem %s417_s22, 2048  ;;  %p2629_p9 = scmp.lt.s32.totalorder %s417_s22, %s417_s22 }
  0x73   : > { %p2622_p4 = scmp.ne.s32.totalorder %s417_s22, %s2621_s19  ;;  %p2630_p10 = scmp.lt.s32.totalorder %s2621_s19, %s2621_s19 }
  0x75   : > { %p2624_p6 = pnand %p2622_p4, %p2784_p7  ;;  %p2631_p11 = por %p2630_p10, %p2629_p9 }
  0x77   : > { %p2625_p8 = pneg %p2624_p6 }
  0x79   : > { %p2632_p12 = pnand %p2631_p11, %p2625_p8 }
  0x7b   : > { %2635 = shalt.err (!%p2632_p12)
}
  0x7c   : > { %2425 = dma.hbm_to_vmem [thread:$0]  (!%p2768_p5), %s3247_s12, 2048, %s417_s22, [#allocation8], %s2660_s20, %s2660_s20, %s2661_s25  }
  0x7d   : > { %p3258_p2 = scmp.ne.s32.totalorder %s3254_s29, 0 }
  0x7e   : > { %p3259_p7 = scmp.eq.s32.totalorder (!%p3258_p2), %s2751_s28, 0 }
  0x7f   : > { %439 = sbr.rel (%p3258_p2) target bundleno = 3305 (0xce9), region = 72 }
  0x86   : > { %2641 = dma.done.wait (%p3259_p7), [#allocation3], 64   ;;  %p3260_p3 = pmov %p3259_p7 }
  0x88   : > { %2643 = vsyncadd (%p3260_p3), [#allocation3], 4294967232  ;;  %p3261_p13 = pmov %p3260_p3 }
  0x89   : > { %p3262_p0 = pmov %p3260_p3 }
  0x8a   : > { %2645 = dma.done.wait (%p3261_p13), [#allocation5], 384  }
  0x8b   : > { %2647 = vsyncadd (%p3262_p0), [#allocation5], 4294966912  ;;  %p3263_p1 = pmov %p3262_p0 }
  0x8c   : > { %p3264_p5 = pmov %p3262_p0 }
  0x8d   : > { %2649 = dma.done.wait (%p3263_p1), [#allocation8], 2560  }
  0x8e   : > { %2651 = vsyncadd (%p3264_p5), [#allocation8], 4294964736  ;;  %p497_p4 = scmp.lt.s32.totalorder %s2751_s28, 1  ;;  %s2663_s25 = smov 6   ;;  %vm511_vm0 = vcmask 48128   ;;  %v2664_v2 = vmov 0.0  }
  0x8f   : > { %2208 = vmatprep.subr.bf16.mxu0 %v2664_v2  ;;  %s2665_s21 = smov 126   ;;  %s2666_s22 = smov 125   ;;  %vm2669_vm1 = vmmov 0   ;;  %v2670_v7 = vmov 0   ;;  %v567_v8 = vld [vmem:[#allocation4] sm:$0xff]  ;;  %vm522_vm2 = vcmask 1039360  }
  0x90   : > { %s3267_s28 = smov (!%p497_p4, %s2751_s28), 1  ;;  %s2667_s23 = smov 124   ;;  %2216 = vmatprep.mubr.msk.bf16.mxu0 %vm2669_vm1, %v2664_v2  ;;  %2463 = vset.pattern.permute.xlu1 %v2670_v7  ;;  %vm554_vm3 = vcmask 1043456   ;;  %vm528_vm4 = vcmask 1031168   ;;  %vm534_vm5 = vcmask 1022976   ;;  %vm540_vm6 = vcmask 1014784  }
  0x91   : > { %s2046_s29 = sshll.u32 %s3267_s28, 3  ;;  %s2668_s24 = smov 127   ;;  %2464 = vset.pattern.permute.xlu0 %v2670_v7  ;;  %vm546_vm7 = vcmask 1006592   ;;  %vm552_vm8 = vcmask 998400   ;;  %v566_v31 = vld [vmem:[#allocation2] sm:$0xf] }
  0x92   : > { %s500_s20 = scalar_lea.vmem %s3235_s0, %s2046_s29  ;;  %s2671_s30 = smov 123   ;;  %vm573_vm9 = vcmask 457728   ;;  %v2465_v44 = vld [vmem:[%s3240_s5] sm:$0xff]   ;;  %v2466_v45 = vld [vmem:[%s3240_s5 + $0x8] sm:$0xff]   ;;  %v2467_v46 = vld [vmem:[%s3240_s5 + $0x10] sm:$0xff]   ;;  %vm630_vm11 = vcmask 15360  }
  0x93   : > { %v506_v0 = vld [vmem:[%s500_s20] sm:$0xff]  ;;  %s2672_s16 = smov 122   ;;  %s2673_s18 = smov 2   ;;  %2220 = vmatprep.subr.bf16.mxu1 %v2465_v44  ;;  %v2468_v47 = vld [vmem:[%s3240_s5 + $0x18] sm:$0xff]   ;;  %v2470_v49 = vld [vmem:[%s3240_s5 + $0x28] sm:$0xff]   ;;  %vm794_vm12 = vcmask 261120  }
  0x94   : > { %v507_v1 = vpack.c.bf16 %v506_v0, %v506_v0  ;;  %2221 = vmatpush3.bf16.msra.mxu1 %v2465_v44  ;;  %v2469_v48 = vld [vmem:[%s3240_s5 + $0x20] sm:$0xff]   ;;  %v2471_v50 = vld [vmem:[%s3240_s5 + $0x30] sm:$0xff]   ;;  %v2472_v51 = vld [vmem:[%s3240_s5 + $0x38] sm:$0xff]   ;;  %vm857_vm15 = vcmask 539648  }
  0x95   : > { %2222 = vmatprep.subr.bf16.mxu1 %v2466_v45  ;;  %v777_v57 = vld [vmem:[#allocation6] sm:$0xff] }
  0x96   : > { %509 = vrot.lane.b32.xlu0 %v507_v1, %s2663_s25 }
  0x98   : > { %2223 = vmatpush3.bf16.msra.mxu1 %v2466_v45 }
  0x99   : > { %2224 = vmatprep.subr.bf16.mxu1 %v2467_v46 }
  0x9c   : > { %2225 = vmatpush3.bf16.msra.mxu1 %v2467_v46  ;;  %v2478_v46 = vld [vmem:[%s3241_s6] sm:$0xff]  }
  0x9d   : > { %2226 = vmatprep.subr.bf16.mxu1 %v2468_v47 }
  0xa0   : > { %2227 = vmatpush3.bf16.msra.mxu1 %v2468_v47 }
  0xa1   : > { %2228 = vmatprep.subr.bf16.mxu1 %v2469_v48 }
  0xa4   : > { %2229 = vmatpush3.bf16.msra.mxu1 %v2469_v48 }
  0xa5   : > { %2230 = vmatprep.subr.bf16.mxu1 %v2470_v49 }
  0xa8   : > { %2231 = vmatpush3.bf16.msra.mxu1 %v2470_v49 }
  0xa9   : > { %2232 = vmatprep.subr.bf16.mxu1 %v2471_v50 }
  0xac   : > { %2233 = vmatpush3.bf16.msra.mxu1 %v2471_v50 }
  0xad   : > { %2234 = vmatprep.subr.bf16.mxu1 %v2472_v51 }
  0xb0   : > { %2235 = vmatpush3.bf16.msra.mxu1 %v2472_v51 }
 0x108   : > { %v510_v3 = vpop.permute.xlu0 %509 }
 0x109   : > { %526 = vrot.lane.b32.xlu0 %v510_v3, %s2665_s21  ;;  %v514_v4 = vsel %vm511_vm0, 0, %v510_v3  ;;  %v517_v5 = vrot.slane %v510_v3, 4  ;;  %vm898_vm0 = vcmask 523264  }
 0x10a   : > { %524 = vrot.lane.b32.xlu1 %v514_v4, %s2665_s21  ;;  %v516_v6 = vrot.slane %v514_v4, 4 }
 0x10d   : > { %532 = vrot.lane.b32.xlu0 %v517_v5, %s2666_s22 }
 0x10e   : > { %536 = vrot.lane.b32.xlu1 %v514_v4, %s2667_s23 }
 0x111   : > { %518 = vrot.lane.b32.xlu0 %v516_v6, %s2668_s24 }
 0x112   : > { %520 = vrot.lane.b32.xlu1 %v517_v5, %s2668_s24 }
 0x115   : > { %538 = vrot.lane.b32.xlu0 %v510_v3, %s2667_s23 }
 0x116   : > { %530 = vrot.lane.b32.xlu1 %v516_v6, %s2666_s22 }
 0x119   : > { %544 = vrot.lane.b32.xlu0 %v517_v5, %s2671_s30 }
 0x11a   : > { %542 = vrot.lane.b32.xlu1 %v516_v6, %s2671_s30  ;;  %v778_v6 = vld [vmem:[#allocation6 + $0x8] sm:$0xff] }
 0x11d   : > { %550 = vrot.lane.b32.xlu0 %v510_v3, %s2672_s16 }
 0x11e   : > { %548 = vrot.lane.b32.xlu1 %v514_v4, %s2672_s16 }
 0x122   : > { %570 = vperm.xlu1 %2463, %v567_v8  }
 0x17b   : > { %v527_v9 = vpop.permute.xlu0 %526 }
 0x17c   : > { %v525_v10 = vpop.permute.xlu1 %524 }
 0x17d   : > { %v529_v19 = vsel %vm528_vm4, %v525_v10, %v527_v9 }
 0x17f   : > { %v533_v11 = vpop.permute.xlu0 %532 }
 0x180   : > { %v537_v12 = vpop.permute.xlu1 %536 }
 0x183   : > { %v519_v13 = vpop.permute.xlu0 %518 }
 0x184   : > { %v521_v14 = vpop.permute.xlu1 %520 }
 0x185   : > { %v523_v15 = vsel %vm522_vm2, %v519_v13, %v521_v14  ;;  %v2473_v13 = vld [vmem:[%s3238_s3] sm:$0xff]  }
 0x186   : > { %v556_v16 = vsel %vm554_vm3, %v514_v4, %v523_v15 }
 0x187   : > { %2209 = vmatpush3.bf16.msra.mxu0 %v556_v16  ;;  %v539_v17 = vpop.permute.xlu0 %538 }
 0x188   : > { %v531_v18 = vpop.permute.xlu1 %530  ;;  %2210 = vmatprep.subr.bf16.mxu0 %v2664_v2  ;;  %v541_v24 = vsel %vm540_vm6, %v537_v12, %v539_v17  ;;  %vm1162_vm6 = vcmask 785408  }
 0x189   : > { %v535_v20 = vsel %vm534_vm5, %v531_v18, %v533_v11 }
 0x18a   : > { %v560_v21 = vsel %vm554_vm3, %v529_v19, %v535_v20 }
 0x18b   : > { %2211 = vmatpush3.bf16.msra.mxu0 %v560_v21  ;;  %v545_v22 = vpop.permute.xlu0 %544 }
 0x18c   : > { %v543_v23 = vpop.permute.xlu1 %542  ;;  %2212 = vmatprep.subr.bf16.mxu0 %v2664_v2 }
 0x18d   : > { %v547_v25 = vsel %vm546_vm7, %v543_v23, %v545_v22 }
 0x18e   : > { %v564_v26 = vsel %vm554_vm3, %v541_v24, %v547_v25 }
 0x18f   : > { %2213 = vmatpush3.bf16.msra.mxu0 %v564_v26  ;;  %v551_v27 = vpop.permute.xlu0 %550 }
 0x190   : > { %v549_v28 = vpop.permute.xlu1 %548  ;;  %2214 = vmatprep.subr.bf16.mxu0 %v2664_v2 }
 0x191   : > { %v553_v29 = vsel %vm552_vm8, %v549_v28, %v551_v27 }
 0x192   : > { %v578_v30 = vsel %vm554_vm3, %v553_v29, 0 }
 0x193   : > { %2215 = vmatpush3.bf16.msra.mxu0 %v578_v30 }
 0x194   : > { %2240 = vmatprep.subr.bf16.mxu0 %v2664_v2 }
 0x196   : > { %2217 = vmatmul.mubr.msk.bf16.vlgmr.msra.gmra.mrb[0].mxu0 %vm573_vm9, %v566_v31 }
 0x197   : > { %2244 = vmatprep.mubr.msk.bf16.mxu0 %vm2669_vm1, %v2664_v2 }
 0x1a1   : > { %v571_v32 = vpop.permute.xlu1 %570 }
 0x269   : > { %v614_v33 = vpop.f32.mrb[0].mxu0 }
 0x26a   : > { %v615_v34 = vadd.f32 %v614_v33, %v571_v32  ;;  %v2218_v35 = vpop.f32.mrb[1].mxu0  ;;  %v2474_v32 = vld [vmem:[%s3243_s8] sm:$0xff]   ;;  %v2475_v33 = vld [vmem:[%s3243_s8 + $0x8] sm:$0xff]  }
 0x26b   : > { %v617_v36 = vpop.f32.mrb[2].mxu0  ;;  %v2477_v35 = vld [vmem:[%s3243_s8 + $0x18] sm:$0xff]  }
 0x26c   : > { %v621_v37 = vmin.f32 %v615_v34, 0.0  ;;  %v2219_v38 = vpop.f32.mrb[3].mxu0  ;;  %vm620_vm10 = vcmp.gt.f32.partialorder %v615_v34, 0.0 }
 0x26e   : > { %v622_v39 = vmul.f32 1.442695, %v621_v37 }
 0x270   : > { %2482 = vpow2.f32 %v622_v39  ;;  %v983_v39 = vld [vmem:[%s3242_s7] sm:$0xff] }
 0x27a   : > { %v2483_v40 = vpop.eup %2482 }
 0x27b   : > { %v2049_v41 = vadd.f32 -1.0, %v2483_v40  ;;  %v985_v40 = vld [vmem:[%s3242_s7 + $0x10] sm:$0xff] }
 0x27d   : > { %v625_v42 = vsel %vm620_vm10, %v615_v34, %v2049_v41  ;;  %v2476_v34 = vld [vmem:[%s3243_s8 + $0x10] sm:$0xff]   ;;  %v984_v41 = vld [vmem:[%s3242_s7 + $0x8] sm:$0xff] }
 0x27e   : > { %v626_v43 = vpack.c.bf16 %v625_v42, %v625_v42  ;;  %v986_v42 = vld [vmem:[%s3242_s7 + $0x18] sm:$0xff] }
 0x280   : > { %628 = vrot.lane.b32.xlu0 %v626_v43, %s2673_s18 }
 0x2f2   : > { %v629_v52 = vpop.permute.xlu0 %628 }
 0x2f3   : > { %v633_v53 = vsel %vm630_vm11, %v629_v52, 0  ;;  %v632_v54 = vsel %vm630_vm11, 0, %v629_v52 }
 0x2f4   : > { %645 = vrot.lane.b32.xlu0 %v633_v53, %s2665_s21  ;;  %643 = vrot.lane.b32.xlu1 %v632_v54, %s2665_s21  ;;  %v637_v55 = vrot.slane %v633_v53, 4  ;;  %v636_v56 = vrot.slane %v632_v54, 4 }
 0x2f8   : > { %640 = vrot.lane.b32.xlu0 %v637_v55, %s2668_s24  ;;  %638 = vrot.lane.b32.xlu1 %v636_v56, %s2668_s24 }
 0x2fc   : > { %650 = vrot.lane.b32.xlu0 %v637_v55, %s2666_s22  ;;  %648 = vrot.lane.b32.xlu1 %v636_v56, %s2666_s22 }
 0x300   : > { %781 = vperm.xlu1 %2463, %v777_v57   ;;  %786 = vperm.xlu0 %2464, %v778_v6  }
 0x366   : > { %v646_v58 = vpop.permute.xlu0 %645  ;;  %v644_v59 = vpop.permute.xlu1 %643 }
 0x367   : > { %v647_v3 = vsel %vm528_vm4, %v644_v59, %v646_v58  ;;  %v2479_v59 = vld [vmem:[%s3241_s6 + $0x8] sm:$0xff]  }
 0x36a   : > { %v641_v60 = vpop.permute.xlu0 %640  ;;  %v639_v61 = vpop.permute.xlu1 %638 }
 0x36b   : > { %v642_v62 = vsel %vm522_vm2, %v639_v61, %v641_v60 }
 0x36c   : > { %v654_v63 = vsel %vm554_vm3, %v632_v54, %v642_v62 }
 0x36d   : > { %2236 = vmatprep.mubr.bf16.mxu1 %v654_v63 }
 0x36e   : > { %v651_v0 = vpop.permute.xlu0 %650  ;;  %v649_v1 = vpop.permute.xlu1 %648 }
 0x36f   : > { %v652_v4 = vsel %vm534_vm5, %v649_v1, %v651_v0  ;;  %vm2080_vm5 = vmneg %vm630_vm11 }
 0x370   : > { %v658_v5 = vsel %vm554_vm3, %v647_v3, %v652_v4 }
 0x371   : > { %2237 = vmatmul.mubr.bf16.vlgmr.msra.gmra.mrb[0].mxu1 %v658_v5 }
 0x372   : > { %2272 = vmatprep.mubr.msk.bf16.mxu1 %vm898_vm0, %v2478_v46  ;;  %v1370_v46 = vld [vmem:[#allocation9 + $0x30] sm:$0xff] }
 0x37f   : > { %v782_v14 = vpop.permute.xlu1 %781  ;;  %v787_v16 = vpop.permute.xlu0 %786 }
 0x444   : > { %v2238_v7 = vpop.f32.mrb[0].mxu1 }
 0x445   : > { %v758_v8 = vpop.f32.mrb[1].mxu1 }
 0x446   : > { %v2239_v9 = vpop.f32.mrb[2].mxu1 }
 0x447   : > { %v774_v10 = vpack.c.bf16 %v2239_v9, %v2238_v7  ;;  %v761_v11 = vpop.f32.mrb[3].mxu1 }
 0x448   : > { %v773_v12 = vpack.c.bf16 %v761_v11, %v758_v8 }
 0x44a   : > { %2241 = vmatpush3.bf16.msra.mxu0 %v773_v12 }
 0x44b   : > { %2242 = vmatprep.subr.bf16.mxu0 %v2664_v2 }
 0x44e   : > { %2243 = vmatpush3.bf16.msra.mxu0 %v774_v10 }
 0x44f   : > { %2248 = vmatprep.subr.bf16.mxu0 %v2474_v32 }
 0x451   : > { %2245 = vmatmul.mubr.msk.bf16.vlgmr.msra.gmra.mrb[4].mxu0 %vm794_vm12, %v2473_v13 }
 0x452   : > { %2249 = vmatpush3.bf16.msra.mxu0 %v2474_v32 }
 0x453   : > { %2250 = vmatprep.subr.bf16.mxu0 %v2475_v33 }
 0x456   : > { %2251 = vmatpush3.bf16.msra.mxu0 %v2475_v33 }
 0x457   : > { %2252 = vmatprep.subr.bf16.mxu0 %v2476_v34 }
 0x45a   : > { %2253 = vmatpush3.bf16.msra.mxu0 %v2476_v34  ;;  %v2480_v34 = vld [vmem:[%s3244_s9] sm:$0xff]  }
 0x45b   : > { %2254 = vmatprep.subr.bf16.mxu0 %v2477_v35 }
 0x45e   : > { %2255 = vmatpush3.bf16.msra.mxu0 %v2477_v35  ;;  %v1129_v35 = vld [vmem:[#allocation7 + $0x8] sm:$0xff] }
 0x524   : > { %v832_v15 = vpop.f32.mrb[4].mxu0 }
 0x525   : > { %v833_v17 = vadd.f32 %v832_v15, %v782_v14  ;;  %v2246_v18 = vpop.f32.mrb[5].mxu0 }
 0x526   : > { %v835_v19 = vpop.f32.mrb[6].mxu0 }
 0x527   : > { %v841_v20 = vmin.f32 %v833_v17, 0.0  ;;  %v836_v21 = vadd.f32 %v835_v19, %v787_v16  ;;  %v2247_v22 = vpop.f32.mrb[7].mxu0  ;;  %vm839_vm13 = vcmp.gt.f32.partialorder %v833_v17, 0.0 }
 0x529   : > { %v843_v23 = vmul.f32 1.442695, %v841_v20  ;;  %v842_v24 = vmin.f32 %v836_v21, 0.0  ;;  %vm840_vm14 = vcmp.gt.f32.partialorder %v836_v21, 0.0 }
 0x52b   : > { %2484 = vpow2.f32 %v843_v23  ;;  %v845_v2 = vmul.f32 1.442695, %v842_v24 }
 0x52d   : > { %2486 = vpow2.f32 %v845_v2 }
 0x535   : > { %v2485_v25 = vpop.eup %2484 }
 0x536   : > { %v2060_v26 = vadd.f32 -1.0, %v2485_v25 }
 0x537   : > { %v2487_v27 = vpop.eup %2486 }
 0x538   : > { %v2061_v28 = vadd.f32 -1.0, %v2487_v27  ;;  %v849_v29 = vsel %vm839_vm13, %v833_v17, %v2060_v26 }
 0x53a   : > { %v850_v30 = vsel %vm840_vm14, %v836_v21, %v2061_v28 }
 0x53b   : > { %v851_v31 = vpack.c.bf16 %v850_v30, %v849_v29 }
 0x53d   : > { %853 = vrot.lane.b32.xlu1 %v851_v31, %s2673_s18 }
 0x5af   : > { %v854_v36 = vpop.permute.xlu1 %853 }
 0x5b0   : > { %v856_v37 = vsel %vm630_vm11, 0, %v854_v36  ;;  %v1128_v36 = vld [vmem:[#allocation7] sm:$0xff] }
 0x5b1   : > { %v858_v38 = vsel %vm857_vm15, %v856_v37, 0  ;;  %v1131_v37 = vld [vmem:[#allocation7 + $0x18] sm:$0xff] }
 0x5b2   : > { %862 = vrot.lane.b32.xlu0 %v858_v38, %s2665_s21  ;;  %860 = vrot.lane.b32.xlu1 %v858_v38, %s2668_s24 }
 0x5b3   : > { %2256 = vmatprep.mubr.msk.bf16.mxu0 %vm898_vm0, %v858_v38 }
 0x5b6   : > { %989 = vperm.xlu0 %2464, %v983_v39   ;;  %864 = vrot.lane.b32.xlu1 %v858_v38, %s2666_s22  ;;  %v1130_v38 = vld [vmem:[#allocation7 + $0x10] sm:$0xff]  ;;  %v1365_v39 = vld [vmem:[#allocation9 + $0x8] sm:$0xff] }
 0x5ba   : > { %999 = vperm.xlu0 %2464, %v985_v40   ;;  %994 = vperm.xlu1 %2463, %v984_v41   ;;  %v1364_v40 = vld [vmem:[#allocation9] sm:$0xff]  ;;  %v1367_v41 = vld [vmem:[#allocation9 + $0x18] sm:$0xff] }
 0x5be   : > { %1004 = vperm.xlu1 %2463, %v986_v42   ;;  %v1366_v42 = vld [vmem:[#allocation9 + $0x10] sm:$0xff] }
 0x624   : > { %v863_v43 = vpop.permute.xlu0 %862  ;;  %v861_v44 = vpop.permute.xlu1 %860 }
 0x625   : > { %2257 = vmatmul.mubr.msk.bf16.vlgmr.msra.gmra.mrb[8].mxu0 %vm898_vm0, %v861_v44  ;;  %v1368_v44 = vld [vmem:[#allocation9 + $0x20] sm:$0xff] }
 0x626   : > { %2260 = vmatprep.mubr.msk.bf16.mxu0 %vm898_vm0, %v863_v43  ;;  %v1369_v43 = vld [vmem:[#allocation9 + $0x28] sm:$0xff] }
 0x628   : > { %v865_v45 = vpop.permute.xlu1 %864 }
 0x62d   : > { %2261 = vmatmul.mubr.msk.bf16.gmra.mrb[12].mxu0 %vm898_vm0, %v865_v45  ;;  %v1371_v45 = vld [vmem:[#allocation9 + $0x38] sm:$0xff] }
 0x62e   : > { %2288 = vmatprep.mubr.msk.bf16.mxu0 %vm1162_vm6, %v2480_v34 }
 0x635   : > { %v990_v60 = vpop.permute.xlu0 %989 }
 0x639   : > { %v995_v61 = vpop.permute.xlu1 %994  ;;  %v1000_v62 = vpop.permute.xlu0 %999 }
 0x63d   : > { %v1005_v3 = vpop.permute.xlu1 %1004 }
 0x6f8   : > { %v2258_v47 = vpop.f32.mrb[8].mxu0 }
 0x6f9   : > { %v944_v48 = vpop.f32.mrb[9].mxu0 }
 0x6fa   : > { %v2259_v49 = vpop.f32.mrb[10].mxu0 }
 0x6fb   : > { %v976_v50 = vpack.c.bf16 %v2259_v49, %v2258_v47  ;;  %v947_v51 = vpop.f32.mrb[11].mxu0  ;;  %v1792_v47 = vld [vmem:[#allocation9 + $0x40] sm:$0xff]  ;;  %v1794_v49 = vld [vmem:[#allocation9 + $0x50] sm:$0xff] }
 0x6fc   : > { %v975_v52 = vpack.c.bf16 %v947_v51, %v944_v48  ;;  %v1793_v48 = vld [vmem:[#allocation9 + $0x48] sm:$0xff]  ;;  %v1796_v51 = vld [vmem:[#allocation9 + $0x60] sm:$0xff] }
 0x6fe   : > { %2264 = vmatprep.subr.bf16.mxu1 %v975_v52 }
 0x6ff   : > { %2265 = vmatpush3.bf16.msra.mxu1 %v975_v52  ;;  %v1797_v52 = vld [vmem:[#allocation9 + $0x68] sm:$0xff] }
 0x700   : > { %v2262_v53 = vpop.f32.mrb[12].mxu0  ;;  %2266 = vmatprep.subr.bf16.mxu1 %v976_v50 }
 0x701   : > { %v960_v54 = vpop.f32.mrb[13].mxu0 }
 0x702   : > { %v2263_v55 = vpop.f32.mrb[14].mxu0 }
 0x703   : > { %v978_v56 = vpack.c.bf16 %v2263_v55, %v2262_v53  ;;  %v963_v57 = vpop.f32.mrb[15].mxu0  ;;  %2267 = vmatpush3.bf16.msra.mxu1 %v976_v50  ;;  %v1795_v50 = vld [vmem:[#allocation9 + $0x58] sm:$0xff]  ;;  %v1798_v53 = vld [vmem:[#allocation9 + $0x70] sm:$0xff] }
 0x704   : > { %v977_v58 = vpack.c.bf16 %v963_v57, %v960_v54  ;;  %v1799_v54 = vld [vmem:[#allocation9 + $0x78] sm:$0xff] }
 0x706   : > { %2268 = vmatprep.subr.bf16.mxu1 %v977_v58 }
 0x707   : > { %2269 = vmatpush3.bf16.msra.mxu1 %v977_v58 }
 0x708   : > { %2270 = vmatprep.subr.bf16.mxu1 %v978_v56 }
 0x70b   : > { %2271 = vmatpush3.bf16.msra.mxu1 %v978_v56 }
 0x70e   : > { %2273 = vmatmul.mubr.msk.bf16.vlgmr.msra.gmra.mrb[4].mxu1 %vm898_vm0, %v2479_v59  ;;  %v2481_v59 = vld [vmem:[%s3244_s9 + $0x8] sm:$0xff]  }
 0x7e1   : > { %v2274_v63 = vpop.f32.mrb[4].mxu1 }
 0x7e2   : > { %v1066_v0 = vadd.f32 %v2274_v63, %v1000_v62  ;;  %v1057_v1 = vpop.f32.mrb[5].mxu1  ;;  %v1229_v62 = vld [vmem:[%s3246_s11 + $0x10] sm:$0xff]  ;;  %v1230_v63 = vld [vmem:[%s3246_s11 + $0x18] sm:$0xff] }
 0x7e3   : > { %v1058_v4 = vadd.f32 %v1057_v1, %v990_v60  ;;  %v2275_v5 = vpop.f32.mrb[6].mxu1  ;;  %v1227_v60 = vld [vmem:[%s3246_s11] sm:$0xff]  ;;  %v1232_v1 = vld [vmem:[%s3246_s11 + $0x28] sm:$0xff] }
 0x7e4   : > { %v1078_v6 = vmin.f32 %v1066_v0, 0.0  ;;  %v1069_v7 = vadd.f32 %v2275_v5, %v1005_v3  ;;  %v1060_v8 = vpop.f32.mrb[7].mxu1  ;;  %vm1074_vm1 = vcmp.gt.f32.partialorder %v1066_v0, 0.0  ;;  %2300 = vmatprep.mubr.msk.f32.mxu1 %vm794_vm12, %v1227_v60  ;;  %v1233_v3 = vld [vmem:[%s3246_s11 + $0x30] sm:$0xff] }
 0x7e5   : > { %v1076_v9 = vmin.f32 %v1058_v4, 0.0  ;;  %v1061_v10 = vadd.f32 %v1060_v8, %v995_v61  ;;  %vm1072_vm3 = vcmp.gt.f32.partialorder %v1058_v4, 0.0  ;;  %v1228_v61 = vld [vmem:[%s3246_s11 + $0x8] sm:$0xff] }
 0x7e6   : > { %v1084_v11 = vmul.f32 1.442695, %v1078_v6  ;;  %v1079_v12 = vmin.f32 %v1069_v7, 0.0  ;;  %vm1075_vm2 = vcmp.gt.f32.partialorder %v1069_v7, 0.0 }
 0x7e7   : > { %v1080_v13 = vmul.f32 1.442695, %v1076_v9  ;;  %v1077_v14 = vmin.f32 %v1061_v10, 0.0  ;;  %vm1073_vm4 = vcmp.gt.f32.partialorder %v1061_v10, 0.0 }
 0x7e8   : > { %2488 = vpow2.f32 %v1084_v11  ;;  %v1086_v15 = vmul.f32 1.442695, %v1079_v12 }
 0x7e9   : > { %2490 = vpow2.f32 %v1080_v13  ;;  %v1082_v16 = vmul.f32 1.442695, %v1077_v14 }
 0x7ea   : > { %2492 = vpow2.f32 %v1086_v15 }
 0x7eb   : > { %2494 = vpow2.f32 %v1082_v16 }
 0x7f2   : > { %v2489_v17 = vpop.eup %2488 }
 0x7f3   : > { %v2491_v18 = vpop.eup %2490  ;;  %v2076_v19 = vadd.f32 -1.0, %v2489_v17 }
 0x7f4   : > { %v2493_v20 = vpop.eup %2492  ;;  %v2074_v21 = vadd.f32 -1.0, %v2491_v18 }
 0x7f5   : > { %v2495_v22 = vpop.eup %2494  ;;  %v2077_v23 = vadd.f32 -1.0, %v2493_v20  ;;  %v1094_v2 = vsel %vm1074_vm1, %v1066_v0, %v2076_v19  ;;  %v1231_v0 = vld [vmem:[%s3246_s11 + $0x20] sm:$0xff] }
 0x7f6   : > { %v2075_v24 = vadd.f32 -1.0, %v2495_v22  ;;  %v1092_v27 = vsel %vm1072_vm3, %v1058_v4, %v2074_v21  ;;  %v1234_v4 = vld [vmem:[%s3246_s11 + $0x38] sm:$0xff] }
 0x7f7   : > { %v1095_v25 = vsel %vm1075_vm2, %v1069_v7, %v2077_v23 }
 0x7f8   : > { %v1097_v26 = vpack.c.bf16 %v1095_v25, %v1094_v2  ;;  %v1093_v28 = vsel %vm1073_vm4, %v1061_v10, %v2075_v24 }
 0x7f9   : > { %v1096_v29 = vpack.c.bf16 %v1093_v28, %v1092_v27 }
 0x7fa   : > { %1102 = vrot.lane.b32.xlu1 %v1097_v26, %s2673_s18 }
 0x7fb   : > { %1100 = vrot.lane.b32.xlu0 %v1096_v29, %s2673_s18 }
 0x86c   : > { %v1103_v30 = vpop.permute.xlu1 %1102 }
 0x86d   : > { %v1101_v31 = vpop.permute.xlu0 %1100  ;;  %v1108_v32 = vsel %vm630_vm11, 0, %v1103_v30 }
 0x86e   : > { %1114 = vrot.lane.b32.xlu1 %v1108_v32, %s2668_s24  ;;  %2276 = vmatprep.subr.msk.bf16.mxu0 %vm2080_vm5, %v1101_v31  ;;  %v1105_v33 = vsel %vm630_vm11, 0, %v1101_v31 }
 0x86f   : > { %2277 = vmatpush3.bf16.msk.msra.mxu0 %vm2080_vm5, %v1101_v31  ;;  %1112 = vrot.lane.b32.xlu0 %v1105_v33, %s2668_s24 }
 0x870   : > { %2278 = vmatprep.subr.msk.bf16.mxu0 %vm2080_vm5, %v1103_v30 }
 0x872   : > { %1120 = vrot.lane.b32.xlu1 %v1108_v32, %s2665_s21 }
 0x873   : > { %2279 = vmatpush3.bf16.msk.msra.mxu0 %vm2080_vm5, %v1103_v30  ;;  %1118 = vrot.lane.b32.xlu0 %v1105_v33, %s2665_s21  ;;  %s2047_s21 = sshll.u32 %s3267_s28, 1 }
 0x874   : > { %s504_s27 = scalar_lea.vmem %s3248_s13, %s2047_s21 }
 0x876   : > { %1139 = vperm.xlu1 %2463, %v1129_v35  }
 0x877   : > { %1134 = vperm.xlu0 %2464, %v1128_v36  }
 0x87a   : > { %1149 = vperm.xlu1 %2463, %v1131_v37  }
 0x87b   : > { %1144 = vperm.xlu0 %2464, %v1130_v38  }
 0x87e   : > { %1387 = vperm.xlu1 %2463, %v1365_v39  }
 0x87f   : > { %1382 = vperm.xlu0 %2464, %v1364_v40  }
 0x882   : > { %1397 = vperm.xlu1 %2463, %v1367_v41  }
 0x883   : > { %1392 = vperm.xlu0 %2464, %v1366_v42  }
 0x886   : > { %1407 = vperm.xlu1 %2463, %v1369_v43  }
 0x887   : > { %1402 = vperm.xlu0 %2464, %v1368_v44  }
 0x88a   : > { %1417 = vperm.xlu1 %2463, %v1371_v45  }
 0x88b   : > { %1412 = vperm.xlu0 %2464, %v1370_v46  }
 0x88e   : > { %1810 = vperm.xlu1 %2463, %v1792_v47  }
 0x892   : > { %1815 = vperm.xlu1 %2463, %v1793_v48  }
 0x896   : > { %1820 = vperm.xlu1 %2463, %v1794_v49  }
 0x89a   : > { %1825 = vperm.xlu1 %2463, %v1795_v50  }
 0x89e   : > { %1830 = vperm.xlu1 %2463, %v1796_v51  }
 0x8a2   : > { %1835 = vperm.xlu1 %2463, %v1797_v52  }
 0x8a6   : > { %1840 = vperm.xlu1 %2463, %v1798_v53  }
 0x8a9   : > { %1520 = vxpose.xlu0.b32.start [1/8] (short) (narrow) %v1227_v60, 32 }
 0x8aa   : > { %1845 = vperm.xlu1 %2463, %v1799_v54  }
 0x8ad   : > { %1521 = vxpose.xlu0.b32.cont [2/8] (short) (narrow) %v1228_v61, 32 }
 0x8b1   : > { %1522 = vxpose.xlu0.b32.cont [3/8] (short) (narrow) %v1229_v62, 32 }
 0x8b5   : > { %1523 = vxpose.xlu0.b32.cont [4/8] (short) (narrow) %v1230_v63, 32 }
 0x8b9   : > { %1524 = vxpose.xlu0.b32.cont [5/8] (short) (narrow) %v1231_v0, 32 }
 0x8bd   : > { %1525 = vxpose.xlu0.b32.cont [6/8] (short) (narrow) %v1232_v1, 32 }
 0x8c1   : > { %1526 = vxpose.xlu0.b32.cont [7/8] (short) (narrow) %v1233_v3, 32 }
 0x8c5   : > { %1527 = vxpose.xlu0.b32.end [8/8] (short) (narrow) %v1234_v4, 32 }
 0x8e0   : > { %v1115_v56 = vpop.permute.xlu1 %1114 }
 0x8e1   : > { %v1113_v55 = vpop.permute.xlu0 %1112 }
 0x8e2   : > { %2280 = vmatprep.subr.bf16.mxu0 %v1113_v55 }
 0x8e3   : > { %2281 = vmatpush3.bf16.msra.mxu0 %v1113_v55 }
 0x8e4   : > { %2282 = vmatprep.subr.bf16.mxu0 %v1115_v56  ;;  %v1121_v58 = vpop.permute.xlu1 %1120 }
 0x8e5   : > { %v1119_v57 = vpop.permute.xlu0 %1118 }
 0x8e7   : > { %2283 = vmatpush3.bf16.msra.mxu0 %v1115_v56 }
 0x8e8   : > { %2284 = vmatprep.subr.bf16.mxu0 %v1119_v57 }
 0x8eb   : > { %2285 = vmatpush3.bf16.msra.mxu0 %v1119_v57 }
 0x8ec   : > { %2286 = vmatprep.subr.bf16.mxu0 %v1121_v58 }
 0x8ef   : > { %2287 = vmatpush3.bf16.msra.mxu0 %v1121_v58 }
 0x8f2   : > { %2289 = vmatmul.mubr.msk.bf16.vlgmr.msra.gmra.mrb[16].mxu0 %vm1162_vm6, %v2481_v59 }
 0x8f5   : > { %v1140_v5 = vpop.permute.xlu1 %1139 }
 0x8f6   : > { %v1135_v6 = vpop.permute.xlu0 %1134 }
 0x8f9   : > { %v1150_v10 = vpop.permute.xlu1 %1149 }
 0x8fa   : > { %v1145_v15 = vpop.permute.xlu0 %1144 }
 0x8fd   : > { %v1388_v24 = vpop.permute.xlu1 %1387 }
 0x8fe   : > { %v1383_v19 = vpop.permute.xlu0 %1382 }
 0x901   : > { %v1398_v26 = vpop.permute.xlu1 %1397 }
 0x902   : > { %v1393_v20 = vpop.permute.xlu0 %1392 }
 0x905   : > { %v1408_v31 = vpop.permute.xlu1 %1407 }
 0x906   : > { %v1403_v21 = vpop.permute.xlu0 %1402 }
 0x909   : > { %v1418_v49 = vpop.permute.xlu1 %1417 }
 0x90a   : > { %v1413_v22 = vpop.permute.xlu0 %1412 }
 0x929   : > { %v1536_v23 = vpop.trf.xlu0 }
 0x9c5   : > { %v2290_v7 = vpop.f32.mrb[16].mxu0 }
 0x9c6   : > { %v1203_v8 = vpop.f32.mrb[17].mxu0  ;;  %v3073_v16 = vadd.f32 %v2290_v7, %v1145_v15 }
 0x9c7   : > { %v2291_v9 = vpop.f32.mrb[18].mxu0  ;;  %v3067_v12 = vadd.f32 %v1203_v8, %v1135_v6 }
 0x9c8   : > { %v1206_v11 = vpop.f32.mrb[19].mxu0  ;;  %v3069_v13 = vadd.f32 %v2291_v9, %v1150_v10 }
 0x9c9   : > { %v3071_v14 = vadd.f32 %v1206_v11, %v1140_v5 }
 0x9ca   : > { %v2358_v18 = vpack.c.bf16 %v3069_v13, %v3073_v16 }
 0x9cb   : > { %v2354_v17 = vpack.c.bf16 %v3071_v14, %v3067_v12 }
 0x9cd   : > { %2355 = vmatprep.subr.bf16.mxu1 %v2354_v17 }
 0x9ce   : > { %2357 = vmatpush3.bf16.msra.mxu1 %v2354_v17 }
 0x9cf   : > { %2359 = vmatprep.subr.bf16.mxu1 %v2358_v18 }
 0x9d2   : > { %2361 = vmatpush3.bf16.msra.mxu1 %v2358_v18 }
 0x9d5   : > { %2301 = vmatmul.mubr.msk.f32.vlgmr.msra.gmra.mrb[8].mxu1 %vm794_vm12, %v1228_v61 }
 0x9d6   : > { %2303 = vmatprep.mubr.msk.f32.mxu1 %vm794_vm12, %v1229_v62 }
 0x9d9   : > { %2304 = vmatmul.mubr.msk.f32.gmra.mrb[10].mxu1 %vm794_vm12, %v1230_v63 }
 0x9da   : > { %2306 = vmatprep.mubr.msk.f32.mxu1 %vm794_vm12, %v1231_v0 }
 0x9dd   : > { %2307 = vmatmul.mubr.msk.f32.gmra.mrb[12].mxu1 %vm794_vm12, %v1232_v1 }
 0x9de   : > { %2309 = vmatprep.mubr.msk.f32.mxu1 %vm794_vm12, %v1233_v3 }
 0x9e1   : > { %2310 = vmatmul.mubr.msk.f32.gmra.mrb[14].mxu1 %vm794_vm12, %v1234_v4  ;;  %v1218_v4 = vlaneseq }
 0x9e2   : > { %2328 = vmatprep.mubr.msk.f32.mxu1 %vm898_vm0, %v1536_v23 }
 0x9e3   : > { %v3104_v7 = vshrl.u32 %v1218_v4, 7  ;;  %v2119_v4 = vld [vmem:[%s3246_s11 + $0x68] sm:$0xff] }
 0x9e5   : > { %v3107_v10 = vadd.s32 16, %v3104_v7  ;;  %v3110_v11 = vadd.s32 24, %v3104_v7  ;;  %v3113_v15 = vadd.s32 48, %v3104_v7  ;;  %v3116_v17 = vadd.s32 56, %v3104_v7 }
 0xaa8   : > { %v2302_v2 = vpop.f32.mrb[8].mxu1 }
 0xaa9   : > { %v1325_v25 = vpop.f32.mrb[9].mxu1  ;;  %v1373_v27 = vmul.f32 2.0, %v2302_v2 }
 0xaaa   : > { %v1372_v29 = vmul.f32 2.0, %v1325_v25 }
 0xaab   : > { %v3087_v32 = vsub.f32 %v1388_v24, %v1373_v27 }
 0xaac   : > { %v2305_v28 = vpop.f32.mrb[10].mxu1  ;;  %v3089_v34 = vsub.f32 %v1383_v19, %v1372_v29  ;;  %v3119_v19 = vadd.s32 8, %v3104_v7 }
 0xaad   : > { %v1335_v30 = vpop.f32.mrb[11].mxu1  ;;  %v1375_v35 = vmul.f32 2.0, %v2305_v28  ;;  %v1429_v41 = vsel %vm794_vm12, %v3087_v32, inf }
 0xaae   : > { %v1374_v38 = vmul.f32 2.0, %v1335_v30  ;;  %v1428_v44 = vsel %vm794_vm12, %v3089_v34, inf }
 0xaaf   : > { %v1423_v45 = vsub.f32 %v1398_v26, %v1375_v35 }
 0xab0   : > { %v2308_v33 = vpop.f32.mrb[12].mxu1  ;;  %v1422_v50 = vsub.f32 %v1393_v20, %v1374_v38  ;;  %v3122_v20 = vadd.s32 32, %v3104_v7 }
 0xab1   : > { %v1377_v36 = vmul.f32 2.0, %v2308_v33  ;;  %v1345_v37 = vpop.f32.mrb[13].mxu1  ;;  %v1431_v57 = vsel %vm794_vm12, %v1423_v45, inf }
 0xab2   : > { %v1376_v39 = vmul.f32 2.0, %v1345_v37  ;;  %v1430_v60 = vsel %vm794_vm12, %v1422_v50, inf }
 0xab3   : > { %v3091_v40 = vsub.f32 %v1408_v31, %v1377_v36 }
 0xab4   : > { %v1424_v42 = vsub.f32 %v1403_v21, %v1376_v39  ;;  %v2311_v43 = vpop.f32.mrb[14].mxu1  ;;  %v3125_v21 = vadd.s32 40, %v3104_v7 }
 0xab5   : > { %v1434_v46 = vsel %vm794_vm12, %v3091_v40, inf  ;;  %v1379_v47 = vmul.f32 2.0, %v2311_v43  ;;  %v1355_v48 = vpop.f32.mrb[15].mxu1 }
 0xab6   : > { %v1435_v51 = vmin.f32 %v1429_v41, %v1434_v46  ;;  %v1432_v52 = vsel %vm794_vm12, %v1424_v42, inf  ;;  %v1378_v53 = vmul.f32 2.0, %v1355_v48 }
 0xab7   : > { %v1433_v54 = vmin.f32 %v1428_v44, %v1432_v52  ;;  %v1427_v55 = vsub.f32 %v1418_v49, %v1379_v47 }
 0xab8   : > { %v1426_v56 = vsub.f32 %v1413_v22, %v1378_v53 }
 0xab9   : > { %v1440_v58 = vmin.f32 %v1433_v54, %v1435_v51  ;;  %v1438_v59 = vsel %vm794_vm12, %v1427_v55, inf  ;;  %v1537_v51 = vpop.trf.xlu0  ;;  %v2114_v54 = vld [vmem:[%s3246_s11 + $0x40] sm:$0xff] }
 0xaba   : > { %v1439_v61 = vmin.f32 %v1431_v57, %v1438_v59  ;;  %v1436_v62 = vsel %vm794_vm12, %v1426_v56, inf  ;;  %2342 = vmatprep.mubr.msk.f32.mxu0 %vm794_vm12, %v2114_v54 }
 0xabb   : > { %v1437_v63 = vmin.f32 %v1430_v60, %v1436_v62 }
 0xabd   : > { %v1441_v0 = vmin.f32 %v1437_v63, %v1439_v61  ;;  %v1538_v52 = vpop.trf.xlu0 }
 0xabf   : > { %v1442_v1 = vmin.f32 %v1440_v58, %v1441_v0 }
 0xac1   : > { %v1443_v3 = vrot.slane %v1442_v1, 4  ;;  %v1539_v53 = vpop.trf.xlu0 }
 0xac3   : > { %v1444_v5 = vmin.f32 %v1442_v1, %v1443_v3  ;;  %v2118_v3 = vld [vmem:[%s3246_s11 + $0x60] sm:$0xff] }
 0xac5   : > { %v1445_v6 = vrot.slane %v1444_v5, 2 }
 0xac7   : > { %v1446_v8 = vmin.f32 %v1444_v5, %v1445_v6  ;;  %v1811_v5 = vpop.permute.xlu1 %1810 }
 0xac9   : > { %v1447_v9 = vrot.slane %v1446_v8, 1 }
 0xacb   : > { %v1448_v18 = vmin.f32 %v1446_v8, %v1447_v9  ;;  %v1816_v6 = vpop.permute.xlu1 %1815 }
 0xacd   : > { %vm1451_vm7 = vcmp.le.f32.partialorder %v1422_v50, %v1448_v18  ;;  %vm1452_vm8 = vcmp.le.f32.partialorder %v1423_v45, %v1448_v18  ;;  %vm1455_vm9 = vcmp.le.f32.partialorder %v1426_v56, %v1448_v18  ;;  %vm1456_vm10 = vcmp.le.f32.partialorder %v1427_v55, %v1448_v18  ;;  %v2120_v55 = vld [vmem:[%s3246_s11 + $0x70] sm:$0xff] }
 0xace   : > { %v1459_v22 = vsel %vm1451_vm7, %v3107_v10, 63  ;;  %v1460_v23 = vsel %vm1452_vm8, %v3110_v11, 63  ;;  %v1463_v24 = vsel %vm1455_vm9, %v3113_v15, 63  ;;  %v1464_v2 = vsel %vm1456_vm10, %v3116_v17, 63 }
 0xacf   : > { %v1467_v25 = vsel %vm794_vm12, %v1459_v22, 2147483647  ;;  %v1468_v26 = vsel %vm794_vm12, %v1460_v23, 2147483647  ;;  %v1475_v27 = vsel %vm794_vm12, %v1463_v24, 2147483647  ;;  %vm1449_vm11 = vcmp.le.f32.partialorder %v3089_v34, %v1448_v18  ;;  %v1821_v8 = vpop.permute.xlu1 %1820 }
 0xad0   : > { %vm1476_vm13 = vcmp.lt.s32.totalorder %v1467_v25, %v1475_v27  ;;  %v1478_v28 = vsel %vm794_vm12, %v1464_v2, 2147483647  ;;  %vm1450_vm14 = vcmp.le.f32.partialorder %v3087_v32, %v1448_v18  ;;  %vm1453_vm15 = vcmp.le.f32.partialorder %v1424_v42, %v1448_v18 }
 0xad1   : > { %v1477_v29 = vsel %vm1476_vm13, %v1467_v25, %v1475_v27  ;;  %vm1479_vm1 = vcmp.lt.s32.totalorder %v1468_v26, %v1478_v28  ;;  %vm1454_vm2 = vcmp.le.f32.partialorder %v3091_v40, %v1448_v18  ;;  %v1457_v30 = vsel %vm1449_vm11, %v3104_v7, 63 }
 0xad2   : > { %v1480_v31 = vsel %vm1479_vm1, %v1468_v26, %v1478_v28  ;;  %v1458_v33 = vsel %vm1450_vm14, %v3119_v19, 63  ;;  %v1461_v35 = vsel %vm1453_vm15, %v3122_v20, 63  ;;  %v1462_v36 = vsel %vm1454_vm2, %v3125_v21, 63 }
 0xad3   : > { %vm1483_vm3 = vcmp.lt.s32.totalorder %v1477_v29, %v1480_v31  ;;  %v1465_v34 = vsel %vm794_vm12, %v1457_v30, 2147483647  ;;  %v1466_v37 = vsel %vm794_vm12, %v1458_v33, 2147483647  ;;  %v1469_v32 = vsel %vm794_vm12, %v1461_v35, 2147483647  ;;  %v1826_v9 = vpop.permute.xlu1 %1825 }
 0xad4   : > { %v1484_v38 = vsel %vm1483_vm3, %v1477_v29, %v1480_v31  ;;  %vm1470_vm4 = vcmp.lt.s32.totalorder %v1465_v34, %v1469_v32  ;;  %v1472_v39 = vsel %vm794_vm12, %v1462_v36, 2147483647  ;;  %v2674_v50 = vmov 1.0|1.0  }
 0xad5   : > { %v1471_v40 = vsel %vm1470_vm4, %v1465_v34, %v1469_v32  ;;  %vm1473_vm5 = vcmp.lt.s32.totalorder %v1466_v37, %v1472_v39 }
 0xad6   : > { %v1474_v41 = vsel %vm1473_vm5, %v1466_v37, %v1472_v39 }
 0xad7   : > { %vm1481_vm6 = vcmp.lt.s32.totalorder %v1471_v40, %v1474_v41  ;;  %v1831_v18 = vpop.permute.xlu1 %1830 }
 0xad8   : > { %v1482_v42 = vsel %vm1481_vm6, %v1471_v40, %v1474_v41 }
 0xad9   : > { %vm1485_vm7 = vcmp.lt.s32.totalorder %v1482_v42, %v1484_v38 }
 0xada   : > { %v1486_v43 = vsel %vm1485_vm7, %v1482_v42, %v1484_v38 }
 0xadb   : > { %v1487_v44 = vrot.slane %v1486_v43, 4  ;;  %v1836_v22 = vpop.permute.xlu1 %1835 }
 0xadd   : > { %vm1488_vm8 = vcmp.lt.s32.totalorder %v1486_v43, %v1487_v44 }
 0xade   : > { %v1489_v45 = vsel %vm1488_vm8, %v1486_v43, %v1487_v44 }
 0xadf   : > { %v1490_v46 = vrot.slane %v1489_v45, 2  ;;  %v1841_v23 = vpop.permute.xlu1 %1840 }
 0xae1   : > { %vm1491_vm9 = vcmp.lt.s32.totalorder %v1489_v45, %v1490_v46 }
 0xae2   : > { %v1492_v47 = vsel %vm1491_vm9, %v1489_v45, %v1490_v46 }
 0xae3   : > { %v1493_v48 = vrot.slane %v1492_v47, 1  ;;  %v1846_v29 = vpop.permute.xlu1 %1845 }
 0xae5   : > { %vm1494_vm10 = vcmp.lt.s32.totalorder %v1492_v47, %v1493_v48 }
 0xae6   : > { %v3146_v49 = vsel %vm1494_vm10, %v1492_v47, %v1493_v48 }
 0xae7   : > { %vm1496_vm11 = vcmp.eq.s32.totalorder %v3104_v7, %v3146_v49  ;;  %vm1497_vm13 = vcmp.eq.s32.totalorder %v3119_v19, %v3146_v49  ;;  %vm1498_vm14 = vcmp.eq.s32.totalorder %v3107_v10, %v3146_v49  ;;  %vm1499_vm15 = vcmp.eq.s32.totalorder %v3110_v11, %v3146_v49 }
 0xae8   : > { %vm2362_vm1 = vmpackc.low %vm1497_vm13, %vm1496_vm11  ;;  %vm1500_vm3 = vcmp.eq.s32.totalorder %v3122_v20, %v3146_v49  ;;  %vm1501_vm4 = vcmp.eq.s32.totalorder %v3125_v21, %v3146_v49  ;;  %vm1502_vm6 = vcmp.eq.s32.totalorder %v3113_v15, %v3146_v49  ;;  %vm1503_vm7 = vcmp.eq.s32.totalorder %v3116_v17, %v3146_v49 }
 0xae9   : > { %2363 = vmatprep.subr.msk.bf16.mxu1 %vm2362_vm1, %v2674_v50  ;;  %vm2366_vm2 = vmpackc.low %vm1499_vm15, %vm1498_vm14 }
 0xaea   : > { %2365 = vmatpush3.bf16.msk.msra.mxu1 %vm2362_vm1, %v2674_v50  ;;  %vm2370_vm5 = vmpackc.low %vm1501_vm4, %vm1500_vm3 }
 0xaeb   : > { %2367 = vmatprep.subr.msk.bf16.mxu1 %vm2366_vm2, %v2674_v50  ;;  %vm2374_vm8 = vmpackc.low %vm1503_vm7, %vm1502_vm6 }
 0xaee   : > { %2369 = vmatpush3.bf16.msk.msra.mxu1 %vm2366_vm2, %v2674_v50 }
 0xaef   : > { %2371 = vmatprep.subr.msk.bf16.mxu1 %vm2370_vm5, %v2674_v50 }
 0xaf2   : > { %2373 = vmatpush3.bf16.msk.msra.mxu1 %vm2370_vm5, %v2674_v50 }
 0xaf3   : > { %2375 = vmatprep.subr.msk.bf16.mxu1 %vm2374_vm8, %v2674_v50 }
 0xaf6   : > { %2377 = vmatpush3.bf16.msk.msra.mxu1 %vm2374_vm8, %v2674_v50 }
 0xaf9   : > { %2329 = vmatmul.mubr.msk.f32.vlgmr.msra.gmra.mrb[16].mxu1 %vm898_vm0, %v1537_v51 }
 0xafa   : > { %2331 = vmatprep.mubr.msk.f32.mxu1 %vm898_vm0, %v1538_v52 }
 0xafd   : > { %2332 = vmatmul.mubr.msk.f32.gmra.mrb[18].mxu1 %vm898_vm0, %v1539_v53 }
 0xafe   : > { %2351 = vmatprep.mubr.msk.f32.mxu1 %vm794_vm12, %v2120_v55 }
 0xbcc   : > { %v2330_v56 = vpop.f32.mrb[16].mxu1 }
 0xbcd   : > { %v1650_v57 = vsub.f32 %v3071_v14, %v2330_v56  ;;  %v1630_v58 = vpop.f32.mrb[17].mxu1  ;;  %v2116_v14 = vld [vmem:[%s3246_s11 + $0x50] sm:$0xff] }
 0xbce   : > { %v1649_v59 = vsub.f32 %v3067_v12, %v1630_v58  ;;  %v2115_v12 = vld [vmem:[%s3246_s11 + $0x48] sm:$0xff] }
 0xbd0   : > { %v2378_v60 = vpack.c.bf16 %v1650_v57, %v1649_v59  ;;  %v2333_v61 = vpop.f32.mrb[18].mxu1 }
 0xbd1   : > { %v1652_v62 = vsub.f32 %v3069_v13, %v2333_v61  ;;  %v1640_v63 = vpop.f32.mrb[19].mxu1  ;;  %v2121_v13 = vld [vmem:[%s3246_s11 + $0x78] sm:$0xff] }
 0xbd2   : > { %v1651_v0 = vsub.f32 %v3073_v16, %v1640_v63  ;;  %2379 = vmatprep.subr.bf16.mxu0 %v2378_v60  ;;  %2386 = vmatprep.subr.bf16.mxu1 %v2378_v60  ;;  %v2117_v16 = vld [vmem:[%s3246_s11 + $0x58] sm:$0xff] }
 0xbd3   : > { %2381 = vmatpush3.bf16.msra.mxu0 %v2378_v60  ;;  %2388 = vmatpush3.bf16.msra.mxu1 %v2378_v60 }
 0xbd4   : > { %v2382_v1 = vpack.c.bf16 %v1652_v62, %v1651_v0 }
 0xbd6   : > { %2383 = vmatprep.subr.bf16.mxu0 %v2382_v1  ;;  %2387 = vmatprep.subr.bf16.mxu1 %v2382_v1 }
 0xbd7   : > { %2385 = vmatpush3.bf16.msra.mxu0 %v2382_v1  ;;  %2389 = vmatpush3.bf16.msra.mxu1 %v2382_v1 }
 0xbda   : > { %2343 = vmatmul.mubr.msk.f32.vlgmr.msra.gmra.mrb[20].mxu0 %vm794_vm12, %v2115_v12  ;;  %2352 = vmatmul.mubr.msk.f32.vlgmr.msra.gmra.mrb[20].mxu1 %vm794_vm12, %v2121_v13 }
 0xbdb   : > { %2345 = vmatprep.mubr.msk.f32.mxu0 %vm794_vm12, %v2116_v14 }
 0xbde   : > { %2346 = vmatmul.mubr.msk.f32.gmra.mrb[22].mxu0 %vm794_vm12, %v2117_v16 }
 0xbdf   : > { %2348 = vmatprep.mubr.msk.f32.mxu0 %vm794_vm12, %v2118_v3 }
 0xbe2   : > { %2349 = vmatmul.mubr.msk.f32.gmra.mrb[24].mxu0 %vm794_vm12, %v2119_v4 }
 0xcad   : > { %v2344_v24 = vpop.f32.mrb[20].mxu0  ;;  %v2353_v2 = vpop.f32.mrb[20].mxu1 }
 0xcae   : > { %v1807_v25 = vmul.f32 2.0, %v2353_v2  ;;  %v1752_v26 = vpop.f32.mrb[21].mxu0  ;;  %v1782_v27 = vpop.f32.mrb[21].mxu1  ;;  %v1801_v30 = vmul.f32 2.0, %v2344_v24 }
 0xcaf   : > { %v1806_v28 = vmul.f32 2.0, %v1782_v27  ;;  %v1800_v35 = vmul.f32 2.0, %v1752_v26 }
 0xcb0   : > { %v1855_v33 = vsub.f32 %v1846_v29, %v1807_v25  ;;  %v1849_v39 = vsub.f32 %v1816_v6, %v1801_v30 }
 0xcb1   : > { %v2347_v31 = vpop.f32.mrb[22].mxu0  ;;  %v1854_v37 = vsub.f32 %v1841_v23, %v1806_v28  ;;  %v1848_v43 = vsub.f32 %v1811_v5, %v1800_v35 }
 0xcb2   : > { %v1803_v36 = vmul.f32 2.0, %v2347_v31  ;;  %v1762_v34 = vpop.f32.mrb[23].mxu0  ;;  %v1866_v42 = vsel %vm794_vm12, %v1855_v33, inf  ;;  %v1857_v55 = vsel %vm794_vm12, %v1849_v39, inf }
 0xcb3   : > { %v1802_v32 = vmul.f32 2.0, %v1762_v34  ;;  %v1864_v47 = vsel %vm794_vm12, %v1854_v37, inf  ;;  %v1856_v58 = vsel %vm794_vm12, %v1848_v43, inf }
 0xcb4   : > { %v1851_v38 = vsub.f32 %v1826_v9, %v1803_v36 }
 0xcb5   : > { %v1850_v40 = vsub.f32 %v1821_v8, %v1802_v32  ;;  %v2350_v41 = vpop.f32.mrb[24].mxu0 }
 0xcb6   : > { %v1859_v44 = vsel %vm794_vm12, %v1851_v38, inf  ;;  %v1805_v45 = vmul.f32 2.0, %v2350_v41  ;;  %v1772_v46 = vpop.f32.mrb[25].mxu0 }
 0xcb7   : > { %v1867_v48 = vmin.f32 %v1859_v44, %v1866_v42  ;;  %v1858_v50 = vsel %vm794_vm12, %v1850_v40, inf  ;;  %v1804_v51 = vmul.f32 2.0, %v1772_v46 }
 0xcb8   : > { %v1865_v52 = vmin.f32 %v1858_v50, %v1864_v47  ;;  %v1853_v53 = vsub.f32 %v1836_v22, %v1805_v45 }
 0xcb9   : > { %v1852_v54 = vsub.f32 %v1831_v18, %v1804_v51 }
 0xcba   : > { %v1869_v56 = vmin.f32 %v1865_v52, %v1867_v48  ;;  %v1862_v57 = vsel %vm794_vm12, %v1853_v53, inf }
 0xcbb   : > { %v1863_v59 = vmin.f32 %v1857_v55, %v1862_v57  ;;  %v1860_v60 = vsel %vm794_vm12, %v1852_v54, inf }
 0xcbc   : > { %v1861_v61 = vmin.f32 %v1856_v58, %v1860_v60 }
 0xcbe   : > { %v1868_v62 = vmin.f32 %v1861_v61, %v1863_v59 }
 0xcc0   : > { %v1870_v63 = vmin.f32 %v1868_v62, %v1869_v56 }
 0xcc2   : > { %v1871_v0 = vrot.slane %v1870_v63, 4 }
 0xcc4   : > { %v1872_v1 = vmin.f32 %v1870_v63, %v1871_v0 }
 0xcc6   : > { %v1873_v12 = vrot.slane %v1872_v1, 2 }
 0xcc8   : > { %v1874_v13 = vmin.f32 %v1872_v1, %v1873_v12 }
 0xcca   : > { %v1875_v14 = vrot.slane %v1874_v13, 1 }
 0xccc   : > { %v1876_v16 = vmin.f32 %v1874_v13, %v1875_v14 }
 0xcce   : > { %vm1877_vm0 = vcmp.le.f32.partialorder %v1848_v43, %v1876_v16  ;;  %vm1878_vm9 = vcmp.le.f32.partialorder %v1849_v39, %v1876_v16  ;;  %vm1879_vm10 = vcmp.le.f32.partialorder %v1850_v40, %v1876_v16  ;;  %vm1880_vm11 = vcmp.le.f32.partialorder %v1851_v38, %v1876_v16 }
 0xccf   : > { %vm1881_vm13 = vcmp.le.f32.partialorder %v1852_v54, %v1876_v16  ;;  %vm1882_vm14 = vcmp.le.f32.partialorder %v1853_v53, %v1876_v16  ;;  %vm1883_vm15 = vcmp.le.f32.partialorder %v1854_v37, %v1876_v16  ;;  %vm1884_vm1 = vcmp.le.f32.partialorder %v1855_v33, %v1876_v16 }
 0xcd0   : > { %v1885_v3 = vsel %vm1877_vm0, %v3104_v7, 63  ;;  %v1886_v4 = vsel %vm1878_vm9, %v3119_v19, 63  ;;  %v1887_v5 = vsel %vm1879_vm10, %v3107_v10, 63  ;;  %v1888_v6 = vsel %vm1880_vm11, %v3110_v11, 63 }
 0xcd1   : > { %v1889_v8 = vsel %vm1881_vm13, %v3122_v20, 63  ;;  %v1890_v9 = vsel %vm1882_vm14, %v3125_v21, 63  ;;  %v1891_v18 = vsel %vm1883_vm15, %v3113_v15, 63  ;;  %v1892_v22 = vsel %vm1884_vm1, %v3116_v17, 63 }
 0xcd2   : > { %v1893_v23 = vsel %vm794_vm12, %v1885_v3, 2147483647  ;;  %v1894_v24 = vsel %vm794_vm12, %v1886_v4, 2147483647  ;;  %v1895_v7 = vsel %vm794_vm12, %v1887_v5, 2147483647 }
 0xcd3   : > { %v1896_v19 = vsel %vm794_vm12, %v1888_v6, 2147483647  ;;  %v1897_v10 = vsel %vm794_vm12, %v1889_v8, 2147483647  ;;  %v1900_v11 = vsel %vm794_vm12, %v1890_v9, 2147483647 }
 0xcd4   : > { %vm1898_vm2 = vcmp.lt.s32.totalorder %v1893_v23, %v1897_v10  ;;  %vm1901_vm3 = vcmp.lt.s32.totalorder %v1894_v24, %v1900_v11  ;;  %v1903_v20 = vsel %vm794_vm12, %v1891_v18, 2147483647  ;;  %v1906_v15 = vsel %vm794_vm12, %v1892_v22, 2147483647 }
 0xcd5   : > { %v1899_v21 = vsel %vm1898_vm2, %v1893_v23, %v1897_v10  ;;  %v1902_v17 = vsel %vm1901_vm3, %v1894_v24, %v1900_v11  ;;  %vm1904_vm4 = vcmp.lt.s32.totalorder %v1895_v7, %v1903_v20  ;;  %vm1907_vm5 = vcmp.lt.s32.totalorder %v1896_v19, %v1906_v15 }
 0xcd6   : > { %v1905_v2 = vsel %vm1904_vm4, %v1895_v7, %v1903_v20  ;;  %v1908_v25 = vsel %vm1907_vm5, %v1896_v19, %v1906_v15  ;;  %vm1909_vm6 = vcmp.lt.s32.totalorder %v1899_v21, %v1902_v17  ;;  %vm1924_vm12 = vcmask 1040384  }
 0xcd7   : > { %v1910_v26 = vsel %vm1909_vm6, %v1899_v21, %v1902_v17  ;;  %vm1911_vm7 = vcmp.lt.s32.totalorder %v1905_v2, %v1908_v25  ;;  %vm1926_vm11 = vcmask 254976  }
 0xcd8   : > { %v1912_v27 = vsel %vm1911_vm7, %v1905_v2, %v1908_v25 }
 0xcd9   : > { %vm1913_vm8 = vcmp.lt.s32.totalorder %v1910_v26, %v1912_v27 }
 0xcda   : > { %v1914_v28 = vsel %vm1913_vm8, %v1910_v26, %v1912_v27 }
 0xcdb   : > { %v1915_v29 = vrot.slane %v1914_v28, 4 }
 0xcdd   : > { %vm1916_vm0 = vcmp.lt.s32.totalorder %v1914_v28, %v1915_v29 }
 0xcde   : > { %v1917_v30 = vsel %vm1916_vm0, %v1914_v28, %v1915_v29 }
 0xcdf   : > { %v1918_v31 = vrot.slane %v1917_v30, 2 }
 0xce1   : > { %vm1919_vm9 = vcmp.lt.s32.totalorder %v1917_v30, %v1918_v31 }
 0xce2   : > { %v1920_v33 = vsel %vm1919_vm9, %v1917_v30, %v1918_v31 }
 0xce3   : > { %v1921_v35 = vrot.slane %v1920_v33, 1 }
 0xce5   : > { %vm1922_vm10 = vcmp.lt.s32.totalorder %v1920_v33, %v1921_v35 }
 0xce6   : > { %v1923_v36 = vsel %vm1922_vm10, %v1920_v33, %v1921_v35 }
 0xce7   : > { %v1925_v34 = vsel %vm1924_vm12, %v3146_v49, %v1923_v36 }
 0xce8   : > { %1927 = vst.msk [vmem:[%s504_s27] sm:$0x3] %vm1926_vm11, %v1925_v34 }
 0xce9 PF: > { %s3265_s14 = sld [smem:[#allocation13_spill]] }
 0xcef   : > { %s26_s25 = sadd.s32 1, %s3265_s14  }
 0xcf0   : > { %p23_p6 = scmp.ge.s32.totalorder %s26_s25, 4  }
 0xcf2   :  { %25 = sbr.rel (!%p23_p6) target bundleno = 5 (0x5), region = 125 }
 0xcf9   :  { %1947 = vsyncpa [#allocation3], 1 }
 0xcfa   :  { %1949 = vsyncpa [#allocation3 + $0x1], 1 }
 0xcfb   :  { %1950 = vsyncpa [#allocation5], 1 }
 0xcfc   :  { %1951 = vsyncpa [#allocation8], 1 }

</bundles_post_ra>
